<compile_context>
chip_gen: v7x
topology: tpu7x:2x2x1
jax: 0.10.0
libtpu: 0.0.40
codegen_flags: <defaults>
</compile_context>

<pallas_src>
import jax
import jax.numpy as jnp
from jax import lax
from jax.experimental import pallas as pl
from jax.experimental.pallas import tpu as pltpu

# ---- model dimensions (fixed by the module __init__ / flat2dict layout) ----
MIN_OBS_DIM = 24                      # obs_dict['minimal_obs']
GOAL_DIM = 8                          # obs_dict['desired_goal']
STATE_DIM = MIN_OBS_DIM + GOAL_DIM    # 32, input dim of states_fc
SENSOR_DIM = 1080                     # dexrep[..., :1080]
POINTL_DIM = 1280                     # dexrep[..., 1080:]
FLAT_DIM = STATE_DIM + SENSOR_DIM + POINTL_DIM   # 2392
POINTNET_OUT = 128                    # args.pointnet_output_dim
HALF = POINTNET_OUT // 2              # 64
OUT_DIM = POINTNET_OUT + 2 * HALF     # 256 (concat order: states|sensor|pointL)
EPS = 1e-12                           # torch F.normalize default eps


def _round_up(n, m):
    return ((n + m - 1) // m) * m


# ----------------------------- kernel ---------------------------------------
def encoder_dexrep_kernel(x_ref, w_ref, b_ref, g_ref, out_ref):
    # Fused projection: one bf16 MXU matmul (f32 accumulate) covers states_fc +
    # dexrep_sensor + dexrep_pointL via the block-diagonal weight; the result
    # is already in the torch.cat output order.
    y = jnp.dot(x_ref[...].astype(jnp.bfloat16), w_ref[...],
                preferred_element_type=jnp.float32)
    y = jnp.maximum(y + b_ref[...], 0.0)                       # bias + ReLU (f32)
    # Per-group L2 normalization, kept in f32: group sums of y*y via a
    # block-diag-ones matmul stay 256-lane aligned (no 64-wide slices).
    gsum = jnp.dot(y * y, g_ref[...], preferred_element_type=jnp.float32)
    inv = lax.rsqrt(jnp.maximum(gsum, EPS * EPS))               # EUP rsqrt
    out_ref[...] = y * inv                                      # lane-dense vst


# ----------------------------- pallas_call builder ---------------------------
def _vmem_budget(tb, x_itemsize):
    est = (2 * tb * FLAT_DIM * x_itemsize        # activation tile, double-buffered
           + 2 * tb * OUT_DIM * 4                # output tile, double-buffered
           + 2 * FLAT_DIM * OUT_DIM * 2          # fused W (bf16), worst-case 2 bufs
           + 2 * OUT_DIM * OUT_DIM * 4           # group matrix, worst-case 2 bufs
           + 6 * tb * OUT_DIM * 4                # in-kernel f32 intermediates
           + (4 << 20))                          # slack
    return int(min(max(1.5 * est, 32 << 20), 48 << 20))


def _pallas_forward(x_pad, w_fused, b_fused, group_mat, *, tb, single_buffer,
                    vmem_bytes):
    b_pad = x_pad.shape[0]
    resident_kw = {"pipeline_mode": pl.Buffered(1)} if single_buffer else {}
    in_specs = [
        pl.BlockSpec((tb, FLAT_DIM), lambda i: (i, 0)),                     # x
        pl.BlockSpec((FLAT_DIM, OUT_DIM), lambda i: (0, 0), **resident_kw), # W
        pl.BlockSpec((1, OUT_DIM), lambda i: (0, 0), **resident_kw),        # bias
        pl.BlockSpec((OUT_DIM, OUT_DIM), lambda i: (0, 0), **resident_kw),  # groups
    ]
    return pl.pallas_call(
        encoder_dexrep_kernel,
        out_shape=jax.ShapeDtypeStruct((b_pad, OUT_DIM), jnp.float32),
        grid=(pl.cdiv(b_pad, tb),),
        in_specs=in_specs,
        out_specs=pl.BlockSpec((tb, OUT_DIM), lambda i: (i, 0)),
        compiler_params=pltpu.CompilerParams(
            dimension_semantics=("parallel",),
            vmem_limit_bytes=vmem_bytes),
    )(x_pad, w_fused, b_fused, group_mat)


_SINGLE_BUFFER_OK = True   # memoized fallback flag for pl.Buffered(1) support


# ----------------------------- wrapper ---------------------------------------
def encoder_dexrep_forward(x, w_fused, b_fused, group_mat, *, tb=512):
    """x: [B, 2392] flat observation (states|goal|sensor|pointL, contiguous).

    x may be float32 or bfloat16; bf16 halves the dominant HBM stream.
    """
    global _SINGLE_BUFFER_OK
    B = x.shape[0]
    b_pad = _round_up(B, 8)                       # sublane alignment only (<=7 rows)
    if b_pad != B:
        x = jnp.pad(x, ((0, b_pad - B), (0, 0)))

    tb = min(tb, b_pad)
    # Give the (megacore-shardable) batch axis at least 2 grid steps when there
    # is more than one sublane-group of rows, so both v7x TCs can be engaged.
    if b_pad > 8 and pl.cdiv(b_pad, tb) < 2:
        tb = _round_up(pl.cdiv(b_pad, 2), 8)

    vmem_bytes = _vmem_budget(tb, x.dtype.itemsize)

    if _SINGLE_BUFFER_OK:
        try:
            out = _pallas_forward(x, w_fused, b_fused, group_mat, tb=tb,
                                  single_buffer=True, vmem_bytes=vmem_bytes)
        except Exception:
            _SINGLE_BUFFER_OK = False
            out = _pallas_forward(x, w_fused, b_fused, group_mat, tb=tb,
                                  single_buffer=False, vmem_bytes=vmem_bytes)
    else:
        out = _pallas_forward(x, w_fused, b_fused, group_mat, tb=tb,
                              single_buffer=False, vmem_bytes=vmem_bytes)

    return out[:B] if b_pad != B else out


# ----------------------------- params ----------------------------------------
def init_params(key):
    """Per-layer synthetic parameters, stored as [in_dim, out_dim] (transpose
    of PyTorch nn.Linear weight layout)."""
    ks = jax.random.split(key, 6)
    scale = 0.02
    return {
        'ws':   scale * jax.random.normal(ks[0], (STATE_DIM, POINTNET_OUT), jnp.float32),
        'bs':   scale * jax.random.normal(ks[1], (1, POINTNET_OUT), jnp.float32),
        'wsen': scale * jax.random.normal(ks[2], (SENSOR_DIM, HALF), jnp.float32),
        'bsen': scale * jax.random.normal(ks[3], (1, HALF), jnp.float32),
        'wpl':  scale * jax.random.normal(ks[4], (POINTL_DIM, HALF), jnp.float32),
        'bpl':  scale * jax.random.normal(ks[5], (1, HALF), jnp.float32),
    }


def fuse_params(params):
    """Build the block-diagonal fused weight (bf16), fused bias (f32) and the
    group-sum matrix (f32).  Done once outside the hot path.  Column order
    matches the torch.cat order: [states_feat(128) | sensor_feat(64) |
    pointL_feat(64)]."""
    w = jnp.zeros((FLAT_DIM, OUT_DIM), jnp.float32)
    w = w.at[:STATE_DIM, :POINTNET_OUT].set(params['ws'])
    w = w.at[STATE_DIM:STATE_DIM + SENSOR_DIM,
             POINTNET_OUT:POINTNET_OUT + HALF].set(params['wsen'])
    w = w.at[STATE_DIM + SENSOR_DIM:,
             POINTNET_OUT + HALF:].set(params['wpl'])
    w = w.astype(jnp.bfloat16)                              # bf16 MXU path
    b = jnp.concatenate([params['bs'], params['bsen'], params['bpl']], axis=-1)

    gid = jnp.concatenate([jnp.zeros((POINTNET_OUT,), jnp.int32),
                           jnp.full((HALF,), 1, jnp.int32),
                           jnp.full((HALF,), 2, jnp.int32)])
    group_mat = (gid[:, None] == gid[None, :]).astype(jnp.float32)  # [256,256]
    return w, b, group_mat


# ----------------------------- reference (for sanity check) ------------------
def reference_forward(x, params):
    def lin_relu_norm(v, w, b):
        y = jnp.maximum(v @ w + b, 0.0)
        n = jnp.sqrt(jnp.sum(y * y, axis=-1, keepdims=True))
        return y / jnp.maximum(n, EPS)
    sg = x[:, :STATE_DIM]
    sensor = x[:, STATE_DIM:STATE_DIM + SENSOR_DIM]
    pointl = x[:, STATE_DIM + SENSOR_DIM:]
    return jnp.concatenate([
        lin_relu_norm(sg, params['ws'], params['bs']),
        lin_relu_norm(sensor, params['wsen'], params['bsen']),
        lin_relu_norm(pointl, params['wpl'], params['bpl']),
    ], axis=-1)


if __name__ == "__main__":
    key = jax.random.PRNGKey(0)
    pkey, xkey = jax.random.split(key)
    params = init_params(pkey)
    w_fused, b_fused, group_mat = fuse_params(params)

    B = 2
    x = jax.random.normal(xkey, (B, FLAT_DIM), jnp.float32)

    out = encoder_dexrep_forward(x, w_fused, b_fused, group_mat)
    out = jax.block_until_ready(out)

    assert out.shape == (B, OUT_DIM), out.shape
    assert bool(jnp.all(jnp.isfinite(out)))

    ref = jax.block_until_ready(reference_forward(x, params))
    # bf16 weights/activations with f32 accumulation: ~0.1-0.5% relative error.
    assert bool(jnp.allclose(out, ref, atol=2e-2, rtol=2e-2)), \
        float(jnp.max(jnp.abs(out - ref)))

    print("KERNEL_OK")
</pallas_src>

<mosaic_0001>
module attributes {stable_mosaic.version = 11 : i64} {
  func.func @encoder_dexrep_kernel(%arg0: i32, %arg1: memref<8x2392xf32, #tpu.memory_space<vmem>>, %arg2: memref<2392x256xbf16, #tpu.memory_space<vmem>>, %arg3: memref<1x256xf32, #tpu.memory_space<vmem>>, %arg4: memref<256x256xf32, #tpu.memory_space<vmem>>, %arg5: memref<8x256xf32, #tpu.memory_space<vmem>>) attributes {dimension_semantics = [#tpu.dimension_semantics<parallel>], iteration_bounds = array<i64: 1>, scalar_prefetch = 0 : i64, scratch_operands = 0 : i64, tpu.core_type = #tpu.core_type<tc>, window_params = [{transform_indices = @transform_0, window_bounds = array<i64: 8, 2392>}, {pipeline_mode = #tpu.pipeline_mode<synchronous>, transform_indices = @transform_1, window_bounds = array<i64: 2392, 256>}, {pipeline_mode = #tpu.pipeline_mode<synchronous>, transform_indices = @transform_2, window_bounds = array<i64: 1, 256>}, {pipeline_mode = #tpu.pipeline_mode<synchronous>, transform_indices = @transform_3, window_bounds = array<i64: 256, 256>}, {transform_indices = @transform_4, window_bounds = array<i64: 8, 256>}]} {
    %c0 = arith.constant 0 : index
    %c0_0 = arith.constant 0 : index
    %0 = vector.load %arg1[%c0, %c0_0] : memref<8x2392xf32, #tpu.memory_space<vmem>>, vector<8x2392xf32>
    %1 = arith.truncf %0 : vector<8x2392xf32> to vector<8x2392xbf16>
    %c0_1 = arith.constant 0 : index
    %c0_2 = arith.constant 0 : index
    %2 = vector.load %arg2[%c0_1, %c0_2] : memref<2392x256xbf16, #tpu.memory_space<vmem>>, vector<2392x256xbf16>
    %cst = arith.constant dense<0.000000e+00> : vector<8x256xf32>
    %3 = tpu.matmul %1, %2, %cst {dimension_numbers = #tpu.dot_dimension_numbers<[1], [0], [0], [1], [0, 0, 1, 1], [], []>} : vector<8x2392xbf16>, vector<2392x256xbf16>, vector<8x256xf32> -> vector<8x256xf32>
    %c0_3 = arith.constant 0 : index
    %c0_4 = arith.constant 0 : index
    %4 = vector.load %arg3[%c0_3, %c0_4] : memref<1x256xf32, #tpu.memory_space<vmem>>, vector<1x256xf32>
    %5 = vector.broadcast %4 : vector<1x256xf32> to vector<8x256xf32>
    %6 = arith.addf %3, %5 : vector<8x256xf32>
    %cst_5 = arith.constant 0.000000e+00 : f32
    %7 = vector.broadcast %cst_5 : f32 to vector<8x256xf32>
    %8 = arith.maximumf %6, %7 : vector<8x256xf32>
    %9 = arith.mulf %8, %8 : vector<8x256xf32>
    %c0_6 = arith.constant 0 : index
    %c0_7 = arith.constant 0 : index
    %10 = vector.load %arg4[%c0_6, %c0_7] : memref<256x256xf32, #tpu.memory_space<vmem>>, vector<256x256xf32>
    %cst_8 = arith.constant dense<0.000000e+00> : vector<8x256xf32>
    %11 = tpu.matmul %9, %10, %cst_8 {dimension_numbers = #tpu.dot_dimension_numbers<[1], [0], [0], [1], [0, 0, 1, 1], [], []>} : vector<8x256xf32>, vector<256x256xf32>, vector<8x256xf32> -> vector<8x256xf32>
    %cst_9 = arith.constant 1.000000e-24 : f32
    %12 = vector.broadcast %cst_9 : f32 to vector<8x256xf32>
    %13 = arith.maximumf %11, %12 : vector<8x256xf32>
    %14 = math.rsqrt %13 : vector<8x256xf32>
    %15 = arith.mulf %8, %14 : vector<8x256xf32>
    %c0_10 = arith.constant 0 : index
    %c0_11 = arith.constant 0 : index
    %16 = vector.load %arg5[%c0_10, %c0_11] : memref<8x256xf32, #tpu.memory_space<vmem>>, vector<8x256xf32>
    tpu.vector_store %arg5[%c0_10, %c0_11], %15 {strides = array<i32>} : memref<8x256xf32, #tpu.memory_space<vmem>>, vector<8x256xf32>,
    return
  }
  func.func @transform_0(%arg0: i32) -> (i32, i32) {
    %c0_i32 = arith.constant 0 : i32
    %c0_i32_0 = arith.constant 0 : i32
    return %arg0, %c0_i32 : i32, i32
  }
  func.func @transform_1(%arg0: i32) -> (i32, i32) {
    %c0_i32 = arith.constant 0 : i32
    %c0_i32_0 = arith.constant 0 : i32
    %c0_i32_1 = arith.constant 0 : i32
    return %c0_i32, %c0_i32_0 : i32, i32
  }
  func.func @transform_2(%arg0: i32) -> (i32, i32) {
    %c0_i32 = arith.constant 0 : i32
    %c0_i32_0 = arith.constant 0 : i32
    %c0_i32_1 = arith.constant 0 : i32
    return %c0_i32, %c0_i32_0 : i32, i32
  }
  func.func @transform_3(%arg0: i32) -> (i32, i32) {
    %c0_i32 = arith.constant 0 : i32
    %c0_i32_0 = arith.constant 0 : i32
    %c0_i32_1 = arith.constant 0 : i32
    return %c0_i32, %c0_i32_0 : i32, i32
  }
  func.func @transform_4(%arg0: i32) -> (i32, i32) {
    %c0_i32 = arith.constant 0 : i32
    %c0_i32_0 = arith.constant 0 : i32
    return %arg0, %c0_i32 : i32, i32
  }
}

module attributes {stable_mosaic.version = 11 : i64} {
  func.func @encoder_dexrep_kernel(%arg0: i32, %arg1: memref<8x2392xf32, #tpu.memory_space<vmem>>, %arg2: memref<2392x256xbf16, #tpu.memory_space<vmem>>, %arg3: memref<1x256xf32, #tpu.memory_space<vmem>>, %arg4: memref<256x256xf32, #tpu.memory_space<vmem>>, %arg5: memref<8x256xf32, #tpu.memory_space<vmem>>) attributes {dimension_semantics = [#tpu.dimension_semantics<parallel>], iteration_bounds = array<i64: 1>, scalar_prefetch = 0 : i64, scratch_operands = 0 : i64, tpu.core_type = #tpu.core_type<tc>, window_params = [{transform_indices = @transform_0, window_bounds = array<i64: 8, 2392>}, {pipeline_mode = #tpu.pipeline_mode<synchronous>, transform_indices = @transform_1, window_bounds = array<i64: 2392, 256>}, {pipeline_mode = #tpu.pipeline_mode<synchronous>, transform_indices = @transform_2, window_bounds = array<i64: 1, 256>}, {pipeline_mode = #tpu.pipeline_mode<synchronous>, transform_indices = @transform_3, window_bounds = array<i64: 256, 256>}, {transform_indices = @transform_4, window_bounds = array<i64: 8, 256>}]} {
    %c0 = arith.constant 0 : index
    %c0_0 = arith.constant 0 : index
    %0 = vector.load %arg1[%c0, %c0_0] : memref<8x2392xf32, #tpu.memory_space<vmem>>, vector<8x2392xf32>
    %1 = arith.truncf %0 : vector<8x2392xf32> to vector<8x2392xbf16>
    %c0_1 = arith.constant 0 : index
    %c0_2 = arith.constant 0 : index
    %2 = vector.load %arg2[%c0_1, %c0_2] : memref<2392x256xbf16, #tpu.memory_space<vmem>>, vector<2392x256xbf16>
    %cst = arith.constant dense<0.000000e+00> : vector<8x256xf32>
    %3 = tpu.matmul %1, %2, %cst {dimension_numbers = #tpu.dot_dimension_numbers<[1], [0], [0], [1], [0, 0, 1, 1], [], []>} : vector<8x2392xbf16>, vector<2392x256xbf16>, vector<8x256xf32> -> vector<8x256xf32>
    %c0_3 = arith.constant 0 : index
    %c0_4 = arith.constant 0 : index
    %4 = vector.load %arg3[%c0_3, %c0_4] : memref<1x256xf32, #tpu.memory_space<vmem>>, vector<1x256xf32>
    %5 = vector.broadcast %4 : vector<1x256xf32> to vector<8x256xf32>
    %6 = arith.addf %3, %5 : vector<8x256xf32>
    %cst_5 = arith.constant 0.000000e+00 : f32
    %7 = vector.broadcast %cst_5 : f32 to vector<8x256xf32>
    %8 = arith.maximumf %6, %7 : vector<8x256xf32>
    %9 = arith.mulf %8, %8 : vector<8x256xf32>
    %c0_6 = arith.constant 0 : index
    %c0_7 = arith.constant 0 : index
    %10 = vector.load %arg4[%c0_6, %c0_7] : memref<256x256xf32, #tpu.memory_space<vmem>>, vector<256x256xf32>
    %cst_8 = arith.constant dense<0.000000e+00> : vector<8x256xf32>
    %11 = tpu.matmul %9, %10, %cst_8 {dimension_numbers = #tpu.dot_dimension_numbers<[1], [0], [0], [1], [0, 0, 1, 1], [], []>} : vector<8x256xf32>, vector<256x256xf32>, vector<8x256xf32> -> vector<8x256xf32>
    %cst_9 = arith.constant 1.000000e-24 : f32
    %12 = vector.broadcast %cst_9 : f32 to vector<8x256xf32>
    %13 = arith.maximumf %11, %12 : vector<8x256xf32>
    %14 = math.rsqrt %13 : vector<8x256xf32>
    %15 = arith.mulf %8, %14 : vector<8x256xf32>
    %c0_10 = arith.constant 0 : index
    %c0_11 = arith.constant 0 : index
    %16 = vector.load %arg5[%c0_10, %c0_11] : memref<8x256xf32, #tpu.memory_space<vmem>>, vector<8x256xf32>
    tpu.vector_store %arg5[%c0_10, %c0_11], %15 {strides = array<i32>} : memref<8x256xf32, #tpu.memory_space<vmem>>, vector<8x256xf32>,
    return
  }
  func.func @transform_0(%arg0: i32) -> (i32, i32) {
    %c0_i32 = arith.constant 0 : i32
    %c0_i32_0 = arith.constant 0 : i32
    return %arg0, %c0_i32 : i32, i32
  }
  func.func @transform_1(%arg0: i32) -> (i32, i32) {
    %c0_i32 = arith.constant 0 : i32
    %c0_i32_0 = arith.constant 0 : i32
    %c0_i32_1 = arith.constant 0 : i32
    return %c0_i32, %c0_i32_0 : i32, i32
  }
  func.func @transform_2(%arg0: i32) -> (i32, i32) {
    %c0_i32 = arith.constant 0 : i32
    %c0_i32_0 = arith.constant 0 : i32
    %c0_i32_1 = arith.constant 0 : i32
    return %c0_i32, %c0_i32_0 : i32, i32
  }
  func.func @transform_3(%arg0: i32) -> (i32, i32) {
    %c0_i32 = arith.constant 0 : i32
    %c0_i32_0 = arith.constant 0 : i32
    %c0_i32_1 = arith.constant 0 : i32
    return %c0_i32, %c0_i32_0 : i32, i32
  }
  func.func @transform_4(%arg0: i32) -> (i32, i32) {
    %c0_i32 = arith.constant 0 : i32
    %c0_i32_0 = arith.constant 0 : i32
    return %arg0, %c0_i32 : i32, i32
  }
}

</mosaic_0001>

<bundles_post_ra>
// kernel: tpu_custom_call.1
= control target key start
LH: loop header
LB: loop body
LE: loop exit
PB: predicated region body
PF: predicated region fallthrough
CT: control target
= control target key end

     0   :  { %9 = vsyncpa [#allocation3], 0  ;;  %s3575_s0 = inlined_call_operand.hbm [shape: f32[8,2392], index: 0, kind: input, shape index: {}]   ;;  %s3576_s1 = inlined_call_operand.hbm [shape: bf16[2392,256], index: 1, kind: input, shape index: {}]   ;;  %s3577_s2 = inlined_call_operand.hbm [shape: f32[1,256], index: 2, kind: input, shape index: {}]   ;;  %s3578_s3 = inlined_call_operand.hbm [shape: f32[256,256], index: 3, kind: input, shape index: {}]   ;;  %s3579_s4 = inlined_call_operand.hbm [shape: f32[8,256], index: 4, kind: output, shape index: {}]  }
   0x1   :  { %10 = vsyncpa [#allocation6], 0 }
   0x2   :  { %11 = vsyncpa [#allocation9], 0 }
   0x3   :  { %12 = vsyncpa [#allocation4], 0  ;;  %s3480_s15 = smov [#allocation5]   ;;  %s3362_s19 = scalar_lea.hbm %s3576_s1, 38272 }
   0x4   :  { %s28_s16 = sshll.u32 %s3480_s15, 4  ;;  %p3363_p0 = scmp.ne.s32.totalorder %s3576_s1, %s3362_s19  ;;  %s29_s16 = int_to_ptr.vmem [resolvable:$true] %s28_s16 }
   0x5   :  { %p3366_p1 = scmp.lt.u32.totalorder %s3362_s19, %s3576_s1 }
   0x7   :  { %p3368_p2 = pnand %p3366_p1, %p3363_p0 }
   0x9   :  { %3371 = shalt.err (!%p3368_p2)
}
   0xa   :  { %s3372_s24 = scalar_lea.vmem %s29_s16, 38272  ;;  %p3377_p4 = scmp.lt.s32.totalorder %s29_s16, %s29_s16 }
   0xb   :  { %p3373_p3 = scmp.ne.s32.totalorder %s29_s16, %s3372_s24  ;;  %p3378_p5 = scmp.lt.s32.totalorder %s3372_s24, %s3372_s24 }
   0xd   :  { %p3379_p6 = por %p3378_p5, %p3377_p4 }
   0xf   :  { %p3380_p7 = pnand %p3379_p6, %p3373_p3 }
  0x11   :  { %3383 = shalt.err (!%p3380_p7)
}
  0x12   :  { %s3481_s25 = smov 128   ;;  %s3482_s26 = smov 8  }
  0x13   :  { %34 = dma.hbm_to_vmem [thread:$0]  %s3576_s1, 38272, %s29_s16, [#allocation6], %s3481_s25, %s3481_s25, %s3482_s26  }
  0x14   :  { %s3483_s29 = smov [#allocation2]   ;;  %s3484_s5 = smov [#allocation7]  }
  0x15   :  { %s19_s30 = sshll.u32 %s3483_s29, 4  ;;  %s41_s6 = sshll.u32 %s3484_s5, 4  ;;  %s20_s30 = int_to_ptr.vmem [resolvable:$true] %s19_s30  ;;  %s42_s6 = int_to_ptr.vmem [resolvable:$true] %s41_s6 }
  0x16   :  { %s3384_s9 = scalar_lea.hbm %s3575_s0, 2432 }
  0x17   :  { %p3385_p8 = scmp.ne.s32.totalorder %s3575_s0, %s3384_s9  ;;  %p3388_p9 = scmp.lt.u32.totalorder %s3384_s9, %s3575_s0 }
  0x19   :  { %p3390_p10 = pnand %p3388_p9, %p3385_p8 }
  0x1b   :  { %3393 = shalt.err (!%p3390_p10)
}
  0x1c   :  { %s3394_s1 = scalar_lea.vmem %s20_s30, 2432  ;;  %p3399_p12 = scmp.lt.s32.totalorder %s20_s30, %s20_s30 }
  0x1d   :  { %p3395_p11 = scmp.ne.s32.totalorder %s20_s30, %s3394_s1  ;;  %p3400_p13 = scmp.lt.s32.totalorder %s3394_s1, %s3394_s1 }
  0x1f   :  { %p3401_p0 = por %p3400_p13, %p3399_p12 }
  0x21   :  { %p3402_p1 = pnand %p3401_p0, %p3395_p11 }
  0x23   :  { %3405 = shalt.err (!%p3402_p1)
}
  0x24   :  { %22 = dma.hbm_to_vmem [thread:$0]  %s3575_s0, 2432, %s20_s30, [#allocation3]  }
  0x25   :  { %s3406_s18 = scalar_lea.hbm %s3577_s2, 32 }
  0x26   :  { %p3407_p2 = scmp.ne.s32.totalorder %s3577_s2, %s3406_s18  ;;  %p3410_p3 = scmp.lt.u32.totalorder %s3406_s18, %s3577_s2 }
  0x28   :  { %p3412_p4 = pnand %p3410_p3, %p3407_p2 }
  0x2a   :  { %3415 = shalt.err (!%p3412_p4)
}
  0x2b   :  { %s3416_s23 = scalar_lea.vmem %s42_s6, 32  ;;  %p3421_p6 = scmp.lt.s32.totalorder %s42_s6, %s42_s6 }
  0x2c   :  { %p3417_p5 = scmp.ne.s32.totalorder %s42_s6, %s3416_s23  ;;  %p3422_p7 = scmp.lt.s32.totalorder %s3416_s23, %s3416_s23 }
  0x2e   :  { %p3423_p8 = por %p3422_p7, %p3421_p6 }
  0x30   :  { %p3424_p9 = pnand %p3423_p8, %p3417_p5 }
  0x32   :  { %3427 = shalt.err (!%p3424_p9)
}
  0x33   :  { %44 = dma.hbm_to_vmem [thread:$0]  %s3577_s2, 32, %s42_s6, [#allocation6]  }
  0x34   :  { %s3485_s25 = smov [#allocation8]   ;;  %s3428_s29 = scalar_lea.hbm %s3578_s3, 8192 }
  0x35   :  { %s50_s26 = sshll.u32 %s3485_s25, 4  ;;  %p3429_p10 = scmp.ne.s32.totalorder %s3578_s3, %s3428_s29  ;;  %s51_s26 = int_to_ptr.vmem [resolvable:$true] %s50_s26 }
  0x36   :  { %p3432_p11 = scmp.lt.u32.totalorder %s3428_s29, %s3578_s3 }
  0x38   :  { %p3434_p12 = pnand %p3432_p11, %p3429_p10 }
  0x3a   :  { %3437 = shalt.err (!%p3434_p12)
}
  0x3b   :  { %s3438_s9 = scalar_lea.vmem %s51_s26, 8192  ;;  %p3443_p0 = scmp.lt.s32.totalorder %s51_s26, %s51_s26 }
  0x3c   :  { %p3439_p13 = scmp.ne.s32.totalorder %s51_s26, %s3438_s9  ;;  %p3444_p1 = scmp.lt.s32.totalorder %s3438_s9, %s3438_s9 }
  0x3e   :  { %p3445_p2 = por %p3444_p1, %p3443_p0 }
  0x40   :  { %p3446_p3 = pnand %p3445_p2, %p3439_p13 }
  0x42   :  { %3449 = shalt.err (!%p3446_p3)
}
  0x43   :  { %s3486_s2 = smov 256   ;;  %s3487_s6 = smov 16  }
  0x44   :  { %56 = dma.hbm_to_vmem [thread:$0]  %s3578_s3, 8192, %s51_s26, [#allocation9], %s3486_s2, %s3486_s2, %s3487_s6  }
  0x45   :  { %3472 = dma.done.wait [#allocation3], 2432  }
  0x46   :  { %3473 = vsyncadd [#allocation3], 4294964864 }
  0x47   :  { %3474 = dma.done.wait [#allocation6], 38304  }
  0x48   :  { %3475 = vsyncadd [#allocation6], 4294928992 }
  0x49   :  { %3476 = dma.done.wait [#allocation9], 8192  }
  0x4a   :  { %3477 = vsyncadd [#allocation9], 4294959104  ;;  %v2909_v0 = vld [vmem:[#allocation5 + $0x4] ss:$8 sps:$4 sm:$0xff]   ;;  %v2913_v2 = vld [vmem:[#allocation5] ss:$8 sps:$4 sm:$0xff]  }
  0x4b   :  { %v2911_v1 = vld [vmem:[#allocation5 + $0x404] ss:$8 sps:$4 sm:$0xff]   ;;  %1925 = vmatprep.subr.bf16.mxu1 %v2909_v0  ;;  %v2914_v3 = vld [vmem:[#allocation5 + $0x400] ss:$8 sps:$4 sm:$0xff]   ;;  %v2915_v4 = vld [vmem:[#allocation5 + $0x14] ss:$8 sps:$4 sm:$0xff]  }
  0x4c   :  { %2089 = vmatprep.subr.bf16.mxu0 %v2911_v1  ;;  %1926 = vmatpush1.bf16.msra.mxu1 %v2913_v2  ;;  %v2917_v5 = vld [vmem:[#allocation5 + $0x414] ss:$8 sps:$4 sm:$0xff]   ;;  %v2919_v6 = vld [vmem:[#allocation5 + $0x10] ss:$8 sps:$4 sm:$0xff]   ;;  %v2921_v8 = vld [vmem:[#allocation5 + $0x24] ss:$8 sps:$4 sm:$0xff]  }
  0x4d   :  { %2090 = vmatpush1.bf16.msra.mxu0 %v2914_v3  ;;  %1927 = vmatprep.subr.bf16.mxu1 %v2915_v4  ;;  %v2920_v7 = vld [vmem:[#allocation5 + $0x410] ss:$8 sps:$4 sm:$0xff]   ;;  %v2923_v9 = vld [vmem:[#allocation5 + $0x424] ss:$8 sps:$4 sm:$0xff]   ;;  %v2925_v10 = vld [vmem:[#allocation5 + $0x20] ss:$8 sps:$4 sm:$0xff]  }
  0x4e   :  { %2091 = vmatprep.subr.bf16.mxu0 %v2917_v5  ;;  %v2926_v11 = vld [vmem:[#allocation5 + $0x420] ss:$8 sps:$4 sm:$0xff]   ;;  %v2927_v12 = vld [vmem:[#allocation5 + $0x34] ss:$8 sps:$4 sm:$0xff]   ;;  %v2931_v14 = vld [vmem:[#allocation5 + $0x30] ss:$8 sps:$4 sm:$0xff]  }
  0x4f   :  { %v2929_v13 = vld [vmem:[#allocation5 + $0x434] ss:$8 sps:$4 sm:$0xff]   ;;  %v2932_v15 = vld [vmem:[#allocation5 + $0x430] ss:$8 sps:$4 sm:$0xff]   ;;  %v2933_v16 = vld [vmem:[#allocation5 + $0x44] ss:$8 sps:$4 sm:$0xff]  }
  0x50   :  { %1928 = vmatpush1.bf16.msra.mxu1 %v2919_v6  ;;  %v2935_v17 = vld [vmem:[#allocation5 + $0x444] ss:$8 sps:$4 sm:$0xff]   ;;  %v2937_v18 = vld [vmem:[#allocation5 + $0x40] ss:$8 sps:$4 sm:$0xff]   ;;  %v2939_v20 = vld [vmem:[#allocation5 + $0x54] ss:$8 sps:$4 sm:$0xff]  }
  0x51   :  { %2092 = vmatpush1.bf16.msra.mxu0 %v2920_v7  ;;  %1929 = vmatprep.subr.bf16.mxu1 %v2921_v8  ;;  %v2938_v19 = vld [vmem:[#allocation5 + $0x440] ss:$8 sps:$4 sm:$0xff]   ;;  %v2941_v21 = vld [vmem:[#allocation5 + $0x454] ss:$8 sps:$4 sm:$0xff]   ;;  %v2943_v22 = vld [vmem:[#allocation5 + $0x50] ss:$8 sps:$4 sm:$0xff]  }
  0x52   :  { %2093 = vmatprep.subr.bf16.mxu0 %v2923_v9  ;;  %v2944_v23 = vld [vmem:[#allocation5 + $0x450] ss:$8 sps:$4 sm:$0xff]   ;;  %v2945_v24 = vld [vmem:[#allocation5 + $0x64] ss:$8 sps:$4 sm:$0xff]   ;;  %v2949_v26 = vld [vmem:[#allocation5 + $0x60] ss:$8 sps:$4 sm:$0xff]  }
  0x53   :  { %v2947_v25 = vld [vmem:[#allocation5 + $0x464] ss:$8 sps:$4 sm:$0xff]   ;;  %v2950_v27 = vld [vmem:[#allocation5 + $0x460] ss:$8 sps:$4 sm:$0xff]   ;;  %v2951_v28 = vld [vmem:[#allocation5 + $0x74] ss:$8 sps:$4 sm:$0xff]  }
  0x54   :  { %1930 = vmatpush1.bf16.msra.mxu1 %v2925_v10  ;;  %v2953_v29 = vld [vmem:[#allocation5 + $0x474] ss:$8 sps:$4 sm:$0xff]   ;;  %v2955_v30 = vld [vmem:[#allocation5 + $0x70] ss:$8 sps:$4 sm:$0xff]   ;;  %v2957_v32 = vld [vmem:[#allocation5 + $0x84] ss:$8 sps:$4 sm:$0xff]  }
  0x55   :  { %2094 = vmatpush1.bf16.msra.mxu0 %v2926_v11  ;;  %1931 = vmatprep.subr.bf16.mxu1 %v2927_v12  ;;  %v2956_v31 = vld [vmem:[#allocation5 + $0x470] ss:$8 sps:$4 sm:$0xff]   ;;  %v2959_v33 = vld [vmem:[#allocation5 + $0x484] ss:$8 sps:$4 sm:$0xff]   ;;  %v2961_v34 = vld [vmem:[#allocation5 + $0x80] ss:$8 sps:$4 sm:$0xff]  }
  0x56   :  { %2095 = vmatprep.subr.bf16.mxu0 %v2929_v13  ;;  %v2962_v35 = vld [vmem:[#allocation5 + $0x480] ss:$8 sps:$4 sm:$0xff]   ;;  %v2963_v36 = vld [vmem:[#allocation5 + $0x94] ss:$8 sps:$4 sm:$0xff]   ;;  %v2967_v38 = vld [vmem:[#allocation5 + $0x90] ss:$8 sps:$4 sm:$0xff]  }
  0x57   :  { %v2965_v37 = vld [vmem:[#allocation5 + $0x494] ss:$8 sps:$4 sm:$0xff]   ;;  %v2968_v39 = vld [vmem:[#allocation5 + $0x490] ss:$8 sps:$4 sm:$0xff]   ;;  %v2969_v40 = vld [vmem:[#allocation5 + $0xa4] ss:$8 sps:$4 sm:$0xff]  }
  0x58   :  { %1932 = vmatpush1.bf16.msra.mxu1 %v2931_v14  ;;  %v2971_v41 = vld [vmem:[#allocation5 + $0x4a4] ss:$8 sps:$4 sm:$0xff]   ;;  %v2973_v42 = vld [vmem:[#allocation5 + $0xa0] ss:$8 sps:$4 sm:$0xff]   ;;  %v2975_v44 = vld [vmem:[#allocation5 + $0xb4] ss:$8 sps:$4 sm:$0xff]  }
  0x59   :  { %2096 = vmatpush1.bf16.msra.mxu0 %v2932_v15  ;;  %1933 = vmatprep.subr.bf16.mxu1 %v2933_v16  ;;  %v2974_v43 = vld [vmem:[#allocation5 + $0x4a0] ss:$8 sps:$4 sm:$0xff]   ;;  %v2977_v45 = vld [vmem:[#allocation5 + $0x4b4] ss:$8 sps:$4 sm:$0xff]   ;;  %v2979_v47 = vld [vmem:[#allocation5 + $0xb0] ss:$8 sps:$4 sm:$0xff]  }
  0x5a   :  { %2097 = vmatprep.subr.bf16.mxu0 %v2935_v17  ;;  %v71_v46 = vld [vmem:[#allocation2 + $0x8] sm:$0xff]  ;;  %v2981_v51 = vld [vmem:[#allocation5 + $0xc4] ss:$8 sps:$4 sm:$0xff]   ;;  %v2985_v54 = vld [vmem:[#allocation5 + $0xc0] ss:$8 sps:$4 sm:$0xff]   ;;  %vm1918_vm0 = vcmask 1043456  }
  0x5b   :  { %v90_v48 = vpack.c.bf16 %v71_v46, %v71_v46  ;;  %v2980_v49 = vld [vmem:[#allocation5 + $0x4b0] ss:$8 sps:$4 sm:$0xff]   ;;  %v2983_v52 = vld [vmem:[#allocation5 + $0x4c4] ss:$8 sps:$4 sm:$0xff]   ;;  %v2986_v55 = vld [vmem:[#allocation5 + $0x4c0] ss:$8 sps:$4 sm:$0xff]  }
  0x5c   :  { %1934 = vmatpush1.bf16.msra.mxu1 %v2937_v18  ;;  %v79_v50 = vld [vmem:[#allocation2 + $0x48] sm:$0xff]  ;;  %v2993_v60 = vld [vmem:[#allocation5 + $0xe4] ss:$8 sps:$4 sm:$0xff]   ;;  %v2997_v62 = vld [vmem:[#allocation5 + $0xe0] ss:$8 sps:$4 sm:$0xff]   ;;  %vm1914_vm1 = vcmask 719872  }
  0x5d   :  { %2098 = vmatpush1.bf16.msra.mxu0 %v2938_v19  ;;  %1935 = vmatprep.subr.bf16.mxu1 %v2939_v20  ;;  %v98_v53 = vpack.c.bf16 %v79_v50, %v79_v50  ;;  %v2987_v56 = vld [vmem:[#allocation5 + $0xd4] ss:$8 sps:$4 sm:$0xff]   ;;  %v2991_v58 = vld [vmem:[#allocation5 + $0xd0] ss:$8 sps:$4 sm:$0xff]   ;;  %v2995_v61 = vld [vmem:[#allocation5 + $0x4e4] ss:$8 sps:$4 sm:$0xff]  }
  0x5e   :  { %2099 = vmatprep.subr.bf16.mxu0 %v2941_v21  ;;  %1957 = vmatprep.mubr.bf16.mxu1 %v90_v48  ;;  %v2989_v57 = vld [vmem:[#allocation5 + $0x4d4] ss:$8 sps:$4 sm:$0xff]   ;;  %v2992_v59 = vld [vmem:[#allocation5 + $0x4d0] ss:$8 sps:$4 sm:$0xff]   ;;  %v2998_v63 = vld [vmem:[#allocation5 + $0x4e0] ss:$8 sps:$4 sm:$0xff]  }
  0x5f   :  { %2121 = vmatprep.mubr.bf16.mxu0 %v98_v53  ;;  %v2999_v0 = vld [vmem:[#allocation5 + $0xf4] ss:$8 sps:$4 sm:$0xff]   ;;  %v3003_v2 = vld [vmem:[#allocation5 + $0xf0] ss:$8 sps:$4 sm:$0xff]   ;;  %v3007_v4 = vld [vmem:[#allocation5 + $0x104] ss:$8 sps:$4 sm:$0xff]  }
  0x60   :  { %1936 = vmatpush1.bf16.msra.mxu1 %v2943_v22  ;;  %v3001_v1 = vld [vmem:[#allocation5 + $0x4f4] ss:$8 sps:$4 sm:$0xff]   ;;  %v3004_v3 = vld [vmem:[#allocation5 + $0x4f0] ss:$8 sps:$4 sm:$0xff]   ;;  %v70_v5 = vld [vmem:[#allocation2] sm:$0xff]  ;;  %s3489_s3 = smov [#allocation10]  }
  0x61   :  { %2100 = vmatpush1.bf16.msra.mxu0 %v2944_v23  ;;  %1937 = vmatprep.subr.bf16.mxu1 %v2945_v24  ;;  %v78_v6 = vld [vmem:[#allocation2 + $0x40] sm:$0xff]  ;;  %v89_v10 = vpack.c.bf16 %v70_v5, %v70_v5  ;;  %v3013_v12 = vld [vmem:[#allocation5 + $0x114] ss:$8 sps:$4 sm:$0xff]   ;;  %v3011_v14 = vld [vmem:[#allocation5 + $0x110] ss:$8 sps:$4 sm:$0xff]   ;;  %s2488_s12 = sshll.u32 %s3489_s3, 4  ;;  %s2489_s12 = int_to_ptr.vmem [resolvable:$true] %s2488_s12 }
  0x62   :  { %2101 = vmatprep.subr.bf16.mxu0 %v2947_v25  ;;  %v3010_v7 = vld [vmem:[#allocation5 + $0x504] ss:$8 sps:$4 sm:$0xff]   ;;  %v3005_v8 = vld [vmem:[#allocation5 + $0x100] ss:$8 sps:$4 sm:$0xff]   ;;  %v97_v11 = vpack.c.bf16 %v78_v6, %v78_v6  ;;  %v3016_v13 = vld [vmem:[#allocation5 + $0x514] ss:$8 sps:$4 sm:$0xff]   ;;  %p3455_p5 = scmp.lt.s32.totalorder %s2489_s12, %s2489_s12 }
  0x63   :  { %v3008_v9 = vld [vmem:[#allocation5 + $0x500] ss:$8 sps:$4 sm:$0xff]   ;;  %v3014_v15 = vld [vmem:[#allocation5 + $0x510] ss:$8 sps:$4 sm:$0xff]   ;;  %v3019_v16 = vld [vmem:[#allocation5 + $0x124] ss:$8 sps:$4 sm:$0xff]  }
  0x64   :  { %1938 = vmatpush1.bf16.msra.mxu1 %v2949_v26  ;;  %v3022_v17 = vld [vmem:[#allocation5 + $0x524] ss:$8 sps:$4 sm:$0xff]   ;;  %v3017_v18 = vld [vmem:[#allocation5 + $0x120] ss:$8 sps:$4 sm:$0xff]   ;;  %v3025_v20 = vld [vmem:[#allocation5 + $0x134] ss:$8 sps:$4 sm:$0xff]  }
  0x65   :  { %2102 = vmatpush1.bf16.msra.mxu0 %v2950_v27  ;;  %1939 = vmatprep.subr.bf16.mxu1 %v2951_v28  ;;  %v3020_v19 = vld [vmem:[#allocation5 + $0x520] ss:$8 sps:$4 sm:$0xff]   ;;  %v3028_v21 = vld [vmem:[#allocation5 + $0x534] ss:$8 sps:$4 sm:$0xff]   ;;  %v3023_v22 = vld [vmem:[#allocation5 + $0x130] ss:$8 sps:$4 sm:$0xff]  }
  0x66   :  { %2103 = vmatprep.subr.bf16.mxu0 %v2953_v29  ;;  %v3026_v23 = vld [vmem:[#allocation5 + $0x530] ss:$8 sps:$4 sm:$0xff]   ;;  %v3031_v24 = vld [vmem:[#allocation5 + $0x144] ss:$8 sps:$4 sm:$0xff]   ;;  %v3029_v26 = vld [vmem:[#allocation5 + $0x140] ss:$8 sps:$4 sm:$0xff]  }
  0x67   :  { %v3034_v25 = vld [vmem:[#allocation5 + $0x544] ss:$8 sps:$4 sm:$0xff]   ;;  %v3032_v27 = vld [vmem:[#allocation5 + $0x540] ss:$8 sps:$4 sm:$0xff]   ;;  %v3037_v28 = vld [vmem:[#allocation5 + $0x154] ss:$8 sps:$4 sm:$0xff]  }
  0x68   :  { %1940 = vmatpush1.bf16.msra.mxu1 %v2955_v30  ;;  %v3040_v29 = vld [vmem:[#allocation5 + $0x554] ss:$8 sps:$4 sm:$0xff]   ;;  %v3035_v30 = vld [vmem:[#allocation5 + $0x150] ss:$8 sps:$4 sm:$0xff]   ;;  %v3053_v46 = vld [vmem:[#allocation5 + $0x180] ss:$8 sps:$4 sm:$0xff]  }
  0x69   :  { %2104 = vmatpush1.bf16.msra.mxu0 %v2956_v31  ;;  %1941 = vmatprep.subr.bf16.mxu1 %v2957_v32  ;;  %v3038_v31 = vld [vmem:[#allocation5 + $0x550] ss:$8 sps:$4 sm:$0xff]   ;;  %v3043_v32 = vld [vmem:[#allocation5 + $0x164] ss:$8 sps:$4 sm:$0xff]   ;;  %v3061_v48 = vld [vmem:[#allocation5 + $0x194] ss:$8 sps:$4 sm:$0xff]  }
  0x6a   :  { %2105 = vmatprep.subr.bf16.mxu0 %v2959_v33  ;;  %v3046_v33 = vld [vmem:[#allocation5 + $0x564] ss:$8 sps:$4 sm:$0xff]   ;;  %v3059_v50 = vld [vmem:[#allocation5 + $0x190] ss:$8 sps:$4 sm:$0xff]   ;;  %v3089_v6 = vld [vmem:[#allocation5 + $0x1e0] ss:$8 sps:$4 sm:$0xff]  }
  0x6b   :  { %v3070_v53 = vld [vmem:[#allocation5 + $0x5a4] ss:$8 sps:$4 sm:$0xff]   ;;  %s3450_s13 = scalar_lea.vmem %s2489_s12, 256 }
  0x6c   :  { %1942 = vmatpush1.bf16.msra.mxu1 %v2961_v34  ;;  %v73_v34 = vld [vmem:[#allocation2 + $0x18] sm:$0xff]  ;;  %p3451_p4 = scmp.ne.s32.totalorder %s2489_s12, %s3450_s13  ;;  %p3456_p6 = scmp.lt.s32.totalorder %s3450_s13, %s3450_s13 }
  0x6d   :  { %2106 = vmatpush1.bf16.msra.mxu0 %v2962_v35  ;;  %1943 = vmatprep.subr.bf16.mxu1 %v2963_v36  ;;  %v3041_v35 = vld [vmem:[#allocation5 + $0x160] ss:$8 sps:$4 sm:$0xff]   ;;  %v92_v36 = vpack.c.bf16 %v73_v34, %v73_v34  ;;  %v3094_v5 = vld [vmem:[#allocation5 + $0x5e4] ss:$8 sps:$4 sm:$0xff]   ;;  %v3119_v34 = vld [vmem:[#allocation5 + $0x230] ss:$8 sps:$4 sm:$0xff]  }
  0x6e   :  { %2107 = vmatprep.subr.bf16.mxu0 %v2965_v37  ;;  %v3044_v37 = vld [vmem:[#allocation5 + $0x560] ss:$8 sps:$4 sm:$0xff]   ;;  %p3457_p7 = por %p3456_p6, %p3455_p5 }
  0x70   :  { %1944 = vmatpush1.bf16.msra.mxu1 %v2967_v38  ;;  %v81_v38 = vld [vmem:[#allocation2 + $0x58] sm:$0xff]  ;;  %p3458_p8 = pnand %p3457_p7, %p3451_p4 }
  0x71   :  { %2108 = vmatpush1.bf16.msra.mxu0 %v2968_v39  ;;  %1945 = vmatprep.subr.bf16.mxu1 %v2969_v40  ;;  %v3049_v39 = vld [vmem:[#allocation5 + $0x174] ss:$8 sps:$4 sm:$0xff]  }
  0x72   :  { %2109 = vmatprep.subr.bf16.mxu0 %v2971_v41  ;;  %v3052_v40 = vld [vmem:[#allocation5 + $0x574] ss:$8 sps:$4 sm:$0xff]   ;;  %v100_v41 = vpack.c.bf16 %v81_v38, %v81_v38  ;;  %v3125_v38 = vld [vmem:[#allocation5 + $0x240] ss:$8 sps:$4 sm:$0xff]  }
  0x74   :  { %1946 = vmatpush1.bf16.msra.mxu1 %v2973_v42  ;;  %v3047_v42 = vld [vmem:[#allocation5 + $0x170] ss:$8 sps:$4 sm:$0xff]  }
  0x75   :  { %2110 = vmatpush1.bf16.msra.mxu0 %v2974_v43  ;;  %1947 = vmatprep.subr.bf16.mxu1 %v2975_v44  ;;  %v3050_v43 = vld [vmem:[#allocation5 + $0x570] ss:$8 sps:$4 sm:$0xff]   ;;  %v3055_v44 = vld [vmem:[#allocation5 + $0x184] ss:$8 sps:$4 sm:$0xff]  }
  0x76   :  { %2111 = vmatprep.subr.bf16.mxu0 %v2977_v45  ;;  %v3058_v45 = vld [vmem:[#allocation5 + $0x584] ss:$8 sps:$4 sm:$0xff]  }
  0x78   :  { %1948 = vmatpush1.bf16.msra.mxu1 %v2979_v47  ;;  %v3056_v47 = vld [vmem:[#allocation5 + $0x580] ss:$8 sps:$4 sm:$0xff]  }
  0x79   :  { %2112 = vmatpush1.bf16.msra.mxu0 %v2980_v49  ;;  %1949 = vmatprep.subr.bf16.mxu1 %v2981_v51  ;;  %v3064_v49 = vld [vmem:[#allocation5 + $0x594] ss:$8 sps:$4 sm:$0xff]   ;;  %v3062_v51 = vld [vmem:[#allocation5 + $0x590] ss:$8 sps:$4 sm:$0xff]  }
  0x7a   :  { %2113 = vmatprep.subr.bf16.mxu0 %v2983_v52  ;;  %v3067_v52 = vld [vmem:[#allocation5 + $0x1a4] ss:$8 sps:$4 sm:$0xff]  }
  0x7c   :  { %1950 = vmatpush1.bf16.msra.mxu1 %v2985_v54  ;;  %v3065_v54 = vld [vmem:[#allocation5 + $0x1a0] ss:$8 sps:$4 sm:$0xff]  }
  0x7d   :  { %2114 = vmatpush1.bf16.msra.mxu0 %v2986_v55  ;;  %1951 = vmatprep.subr.bf16.mxu1 %v2987_v56  ;;  %v3068_v55 = vld [vmem:[#allocation5 + $0x5a0] ss:$8 sps:$4 sm:$0xff]   ;;  %v3073_v56 = vld [vmem:[#allocation5 + $0x1b4] ss:$8 sps:$4 sm:$0xff]  }
  0x7e   :  { %2115 = vmatprep.subr.bf16.mxu0 %v2989_v57  ;;  %v3076_v57 = vld [vmem:[#allocation5 + $0x5b4] ss:$8 sps:$4 sm:$0xff]  }
  0x80   :  { %1952 = vmatpush1.bf16.msra.mxu1 %v2991_v58  ;;  %v3071_v58 = vld [vmem:[#allocation5 + $0x1b0] ss:$8 sps:$4 sm:$0xff]  }
  0x81   :  { %2116 = vmatpush1.bf16.msra.mxu0 %v2992_v59  ;;  %1953 = vmatprep.subr.bf16.mxu1 %v2993_v60  ;;  %v3074_v59 = vld [vmem:[#allocation5 + $0x5b0] ss:$8 sps:$4 sm:$0xff]   ;;  %v3079_v60 = vld [vmem:[#allocation5 + $0x1c4] ss:$8 sps:$4 sm:$0xff]  }
  0x82   :  { %2117 = vmatprep.subr.bf16.mxu0 %v2995_v61  ;;  %v3082_v61 = vld [vmem:[#allocation5 + $0x5c4] ss:$8 sps:$4 sm:$0xff]  }
  0x84   :  { %1954 = vmatpush1.bf16.msra.mxu1 %v2997_v62  ;;  %v3077_v62 = vld [vmem:[#allocation5 + $0x1c0] ss:$8 sps:$4 sm:$0xff]  }
  0x85   :  { %2118 = vmatpush1.bf16.msra.mxu0 %v2998_v63  ;;  %1955 = vmatprep.subr.bf16.mxu1 %v2999_v0  ;;  %v3080_v63 = vld [vmem:[#allocation5 + $0x5c0] ss:$8 sps:$4 sm:$0xff]   ;;  %v3085_v0 = vld [vmem:[#allocation5 + $0x1d4] ss:$8 sps:$4 sm:$0xff]  }
  0x86   :  { %2119 = vmatprep.subr.bf16.mxu0 %v3001_v1  ;;  %v3088_v1 = vld [vmem:[#allocation5 + $0x5d4] ss:$8 sps:$4 sm:$0xff]  }
  0x88   :  { %1956 = vmatpush1.bf16.msra.mxu1 %v3003_v2  ;;  %v3083_v2 = vld [vmem:[#allocation5 + $0x1d0] ss:$8 sps:$4 sm:$0xff]  }
  0x89   :  { %2120 = vmatpush1.bf16.msra.mxu0 %v3004_v3  ;;  %1966 = vmatprep.subr.bf16.mxu1 %v3007_v4  ;;  %v3086_v3 = vld [vmem:[#allocation5 + $0x5d0] ss:$8 sps:$4 sm:$0xff]   ;;  %v3091_v4 = vld [vmem:[#allocation5 + $0x1e4] ss:$8 sps:$4 sm:$0xff]  }
  0x8a   :  { %2130 = vmatprep.subr.bf16.mxu0 %v3010_v7  ;;  %v3092_v7 = vld [vmem:[#allocation5 + $0x5e0] ss:$8 sps:$4 sm:$0xff]  }
  0x8b   :  { %1958 = vmatmul.mubr.bf16.vlgmr.msra.gmra.mrb[0].mxu1 %v89_v10  ;;  %v3095_v10 = vld [vmem:[#allocation5 + $0x1f0] ss:$8 sps:$4 sm:$0xff]  }
  0x8c   :  { %2122 = vmatmul.mubr.bf16.vlgmr.msra.gmra.mrb[0].mxu0 %v97_v11  ;;  %1967 = vmatpush1.bf16.msra.mxu1 %v3005_v8  ;;  %v3097_v8 = vld [vmem:[#allocation5 + $0x1f4] ss:$8 sps:$4 sm:$0xff]   ;;  %v3098_v11 = vld [vmem:[#allocation5 + $0x5f0] ss:$8 sps:$4 sm:$0xff]  }
  0x8d   :  { %2131 = vmatpush1.bf16.msra.mxu0 %v3008_v9  ;;  %1968 = vmatprep.subr.bf16.mxu1 %v3013_v12  ;;  %v3100_v9 = vld [vmem:[#allocation5 + $0x5f4] ss:$8 sps:$4 sm:$0xff]   ;;  %v3103_v12 = vld [vmem:[#allocation5 + $0x204] ss:$8 sps:$4 sm:$0xff]  }
  0x8e   :  { %2132 = vmatprep.subr.bf16.mxu0 %v3016_v13  ;;  %1998 = vmatprep.mubr.bf16.mxu1 %v92_v36  ;;  %v72_v13 = vld [vmem:[#allocation2 + $0x10] sm:$0xff]  ;;  %v3127_v36 = vld [vmem:[#allocation5 + $0x244] ss:$8 sps:$4 sm:$0xff]  }
  0x8f   :  { %2162 = vmatprep.mubr.bf16.mxu0 %v100_v41  ;;  %v3136_v41 = vld [vmem:[#allocation5 + $0x654] ss:$8 sps:$4 sm:$0xff]  }
  0x90   :  { %1969 = vmatpush1.bf16.msra.mxu1 %v3011_v14  ;;  %v80_v14 = vld [vmem:[#allocation2 + $0x50] sm:$0xff] }
  0x91   :  { %2133 = vmatpush1.bf16.msra.mxu0 %v3014_v15  ;;  %1970 = vmatprep.subr.bf16.mxu1 %v3019_v16  ;;  %v3106_v15 = vld [vmem:[#allocation5 + $0x604] ss:$8 sps:$4 sm:$0xff]   ;;  %v3101_v16 = vld [vmem:[#allocation5 + $0x200] ss:$8 sps:$4 sm:$0xff]  }
  0x92   :  { %2134 = vmatprep.subr.bf16.mxu0 %v3022_v17  ;;  %v3104_v17 = vld [vmem:[#allocation5 + $0x600] ss:$8 sps:$4 sm:$0xff]  }
  0x94   :  { %1971 = vmatpush1.bf16.msra.mxu1 %v3017_v18  ;;  %v91_v18 = vpack.c.bf16 %v72_v13, %v72_v13  ;;  %v3190_v13 = vld [vmem:[#allocation5 + $0x6e4] ss:$8 sps:$4 sm:$0xff]  }
  0x95   :  { %2135 = vmatpush1.bf16.msra.mxu0 %v3020_v19  ;;  %1972 = vmatprep.subr.bf16.mxu1 %v3025_v20  ;;  %v99_v19 = vpack.c.bf16 %v80_v14, %v80_v14  ;;  %v3109_v20 = vld [vmem:[#allocation5 + $0x214] ss:$8 sps:$4 sm:$0xff]   ;;  %v3185_v14 = vld [vmem:[#allocation5 + $0x2e0] ss:$8 sps:$4 sm:$0xff]  }
  0x96   :  { %2136 = vmatprep.subr.bf16.mxu0 %v3028_v21  ;;  %v3112_v21 = vld [vmem:[#allocation5 + $0x614] ss:$8 sps:$4 sm:$0xff]  }
  0x98   :  { %1973 = vmatpush1.bf16.msra.mxu1 %v3023_v22  ;;  %v75_v22 = vld [vmem:[#allocation2 + $0x28] sm:$0xff] }
  0x99   :  { %2137 = vmatpush1.bf16.msra.mxu0 %v3026_v23  ;;  %1974 = vmatprep.subr.bf16.mxu1 %v3031_v24  ;;  %v3107_v23 = vld [vmem:[#allocation5 + $0x210] ss:$8 sps:$4 sm:$0xff]   ;;  %v94_v24 = vpack.c.bf16 %v75_v22, %v75_v22  ;;  %v82_v22 = vld [vmem:[#allocation2 + $0x60] sm:$0xff] }
  0x9a   :  { %2138 = vmatprep.subr.bf16.mxu0 %v3034_v25  ;;  %v3110_v25 = vld [vmem:[#allocation5 + $0x610] ss:$8 sps:$4 sm:$0xff]  }
  0x9c   :  { %1975 = vmatpush1.bf16.msra.mxu1 %v3029_v26  ;;  %v83_v26 = vld [vmem:[#allocation2 + $0x68] sm:$0xff] }
  0x9d   :  { %2139 = vmatpush1.bf16.msra.mxu0 %v3032_v27  ;;  %1976 = vmatprep.subr.bf16.mxu1 %v3037_v28  ;;  %v3115_v27 = vld [vmem:[#allocation5 + $0x224] ss:$8 sps:$4 sm:$0xff]  }
  0x9e   :  { %2140 = vmatprep.subr.bf16.mxu0 %v3040_v29  ;;  %v3118_v28 = vld [vmem:[#allocation5 + $0x624] ss:$8 sps:$4 sm:$0xff]   ;;  %v102_v29 = vpack.c.bf16 %v83_v26, %v83_v26 }
  0xa0   :  { %1977 = vmatpush1.bf16.msra.mxu1 %v3035_v30  ;;  %v3113_v30 = vld [vmem:[#allocation5 + $0x220] ss:$8 sps:$4 sm:$0xff]  }
  0xa1   :  { %2141 = vmatpush1.bf16.msra.mxu0 %v3038_v31  ;;  %1978 = vmatprep.subr.bf16.mxu1 %v3043_v32  ;;  %v3116_v31 = vld [vmem:[#allocation5 + $0x620] ss:$8 sps:$4 sm:$0xff]   ;;  %v3121_v32 = vld [vmem:[#allocation5 + $0x234] ss:$8 sps:$4 sm:$0xff]  }
  0xa2   :  { %2142 = vmatprep.subr.bf16.mxu0 %v3046_v33  ;;  %v3124_v33 = vld [vmem:[#allocation5 + $0x634] ss:$8 sps:$4 sm:$0xff]  }
  0xa4   :  { %1979 = vmatpush1.bf16.msra.mxu1 %v3041_v35  ;;  %v3122_v35 = vld [vmem:[#allocation5 + $0x630] ss:$8 sps:$4 sm:$0xff]  }
  0xa5   :  { %2143 = vmatpush1.bf16.msra.mxu0 %v3044_v37  ;;  %1980 = vmatprep.subr.bf16.mxu1 %v3049_v39  ;;  %v3130_v37 = vld [vmem:[#allocation5 + $0x644] ss:$8 sps:$4 sm:$0xff]   ;;  %v3128_v39 = vld [vmem:[#allocation5 + $0x640] ss:$8 sps:$4 sm:$0xff]  }
  0xa6   :  { %2144 = vmatprep.subr.bf16.mxu0 %v3052_v40  ;;  %v3133_v40 = vld [vmem:[#allocation5 + $0x254] ss:$8 sps:$4 sm:$0xff]  }
  0xa8   :  { %1981 = vmatpush1.bf16.msra.mxu1 %v3047_v42  ;;  %v3131_v42 = vld [vmem:[#allocation5 + $0x250] ss:$8 sps:$4 sm:$0xff]  }
  0xa9   :  { %2145 = vmatpush1.bf16.msra.mxu0 %v3050_v43  ;;  %1982 = vmatprep.subr.bf16.mxu1 %v3055_v44  ;;  %v3134_v43 = vld [vmem:[#allocation5 + $0x650] ss:$8 sps:$4 sm:$0xff]   ;;  %v3139_v44 = vld [vmem:[#allocation5 + $0x264] ss:$8 sps:$4 sm:$0xff]  }
  0xaa   :  { %2146 = vmatprep.subr.bf16.mxu0 %v3058_v45  ;;  %v3142_v45 = vld [vmem:[#allocation5 + $0x664] ss:$8 sps:$4 sm:$0xff]  }
  0xac   :  { %1983 = vmatpush1.bf16.msra.mxu1 %v3053_v46  ;;  %v3137_v46 = vld [vmem:[#allocation5 + $0x260] ss:$8 sps:$4 sm:$0xff]  }
  0xad   :  { %2147 = vmatpush1.bf16.msra.mxu0 %v3056_v47  ;;  %1984 = vmatprep.subr.bf16.mxu1 %v3061_v48  ;;  %v3140_v47 = vld [vmem:[#allocation5 + $0x660] ss:$8 sps:$4 sm:$0xff]   ;;  %v3145_v48 = vld [vmem:[#allocation5 + $0x274] ss:$8 sps:$4 sm:$0xff]  }
  0xae   :  { %2148 = vmatprep.subr.bf16.mxu0 %v3064_v49  ;;  %v3148_v49 = vld [vmem:[#allocation5 + $0x674] ss:$8 sps:$4 sm:$0xff]  }
  0xb0   :  { %1985 = vmatpush1.bf16.msra.mxu1 %v3059_v50  ;;  %v3143_v50 = vld [vmem:[#allocation5 + $0x270] ss:$8 sps:$4 sm:$0xff]  }
  0xb1   :  { %2149 = vmatpush1.bf16.msra.mxu0 %v3062_v51  ;;  %1986 = vmatprep.subr.bf16.mxu1 %v3067_v52  ;;  %v3146_v51 = vld [vmem:[#allocation5 + $0x670] ss:$8 sps:$4 sm:$0xff]   ;;  %v3151_v52 = vld [vmem:[#allocation5 + $0x284] ss:$8 sps:$4 sm:$0xff]  }
  0xb2   :  { %2150 = vmatprep.subr.bf16.mxu0 %v3070_v53  ;;  %v3154_v53 = vld [vmem:[#allocation5 + $0x684] ss:$8 sps:$4 sm:$0xff]  }
  0xb4   :  { %1987 = vmatpush1.bf16.msra.mxu1 %v3065_v54  ;;  %v3149_v54 = vld [vmem:[#allocation5 + $0x280] ss:$8 sps:$4 sm:$0xff]  }
  0xb5   :  { %2151 = vmatpush1.bf16.msra.mxu0 %v3068_v55  ;;  %1988 = vmatprep.subr.bf16.mxu1 %v3073_v56  ;;  %v3152_v55 = vld [vmem:[#allocation5 + $0x680] ss:$8 sps:$4 sm:$0xff]   ;;  %v3157_v56 = vld [vmem:[#allocation5 + $0x294] ss:$8 sps:$4 sm:$0xff]  }
  0xb6   :  { %2152 = vmatprep.subr.bf16.mxu0 %v3076_v57  ;;  %v3160_v57 = vld [vmem:[#allocation5 + $0x694] ss:$8 sps:$4 sm:$0xff]  }
  0xb8   :  { %1989 = vmatpush1.bf16.msra.mxu1 %v3071_v58  ;;  %v3155_v58 = vld [vmem:[#allocation5 + $0x290] ss:$8 sps:$4 sm:$0xff]  }
  0xb9   :  { %2153 = vmatpush1.bf16.msra.mxu0 %v3074_v59  ;;  %1990 = vmatprep.subr.bf16.mxu1 %v3079_v60  ;;  %v3158_v59 = vld [vmem:[#allocation5 + $0x690] ss:$8 sps:$4 sm:$0xff]   ;;  %v3163_v60 = vld [vmem:[#allocation5 + $0x2a4] ss:$8 sps:$4 sm:$0xff]  }
  0xba   :  { %2154 = vmatprep.subr.bf16.mxu0 %v3082_v61  ;;  %v3166_v61 = vld [vmem:[#allocation5 + $0x6a4] ss:$8 sps:$4 sm:$0xff]  }
  0xbc   :  { %1991 = vmatpush1.bf16.msra.mxu1 %v3077_v62  ;;  %v3161_v62 = vld [vmem:[#allocation5 + $0x2a0] ss:$8 sps:$4 sm:$0xff]  }
  0xbd   :  { %2155 = vmatpush1.bf16.msra.mxu0 %v3080_v63  ;;  %1992 = vmatprep.subr.bf16.mxu1 %v3085_v0  ;;  %v3164_v63 = vld [vmem:[#allocation5 + $0x6a0] ss:$8 sps:$4 sm:$0xff]   ;;  %v3169_v0 = vld [vmem:[#allocation5 + $0x2b4] ss:$8 sps:$4 sm:$0xff]  }
  0xbe   :  { %2156 = vmatprep.subr.bf16.mxu0 %v3088_v1  ;;  %v3172_v1 = vld [vmem:[#allocation5 + $0x6b4] ss:$8 sps:$4 sm:$0xff]  }
  0xc0   :  { %1993 = vmatpush1.bf16.msra.mxu1 %v3083_v2  ;;  %v3167_v2 = vld [vmem:[#allocation5 + $0x2b0] ss:$8 sps:$4 sm:$0xff]  }
  0xc1   :  { %2157 = vmatpush1.bf16.msra.mxu0 %v3086_v3  ;;  %1994 = vmatprep.subr.bf16.mxu1 %v3091_v4  ;;  %v3170_v3 = vld [vmem:[#allocation5 + $0x6b0] ss:$8 sps:$4 sm:$0xff]   ;;  %v3175_v4 = vld [vmem:[#allocation5 + $0x2c4] ss:$8 sps:$4 sm:$0xff]  }
  0xc2   :  { %2158 = vmatprep.subr.bf16.mxu0 %v3094_v5  ;;  %v3178_v5 = vld [vmem:[#allocation5 + $0x6c4] ss:$8 sps:$4 sm:$0xff]  }
  0xc4   :  { %1995 = vmatpush1.bf16.msra.mxu1 %v3089_v6  ;;  %v3173_v6 = vld [vmem:[#allocation5 + $0x2c0] ss:$8 sps:$4 sm:$0xff]  }
  0xc5   :  { %2159 = vmatpush1.bf16.msra.mxu0 %v3092_v7  ;;  %1996 = vmatprep.subr.bf16.mxu1 %v3097_v8  ;;  %v3176_v7 = vld [vmem:[#allocation5 + $0x6c0] ss:$8 sps:$4 sm:$0xff]   ;;  %v3181_v8 = vld [vmem:[#allocation5 + $0x2d4] ss:$8 sps:$4 sm:$0xff]  }
  0xc6   :  { %2160 = vmatprep.subr.bf16.mxu0 %v3100_v9  ;;  %v3184_v9 = vld [vmem:[#allocation5 + $0x6d4] ss:$8 sps:$4 sm:$0xff]  }
  0xc8   :  { %1997 = vmatpush1.bf16.msra.mxu1 %v3095_v10  ;;  %v3179_v10 = vld [vmem:[#allocation5 + $0x2d0] ss:$8 sps:$4 sm:$0xff]  }
  0xc9   :  { %2161 = vmatpush1.bf16.msra.mxu0 %v3098_v11  ;;  %2007 = vmatprep.subr.bf16.mxu1 %v3103_v12  ;;  %v3182_v11 = vld [vmem:[#allocation5 + $0x6d0] ss:$8 sps:$4 sm:$0xff]   ;;  %v3187_v12 = vld [vmem:[#allocation5 + $0x2e4] ss:$8 sps:$4 sm:$0xff]  }
  0xca   :  { %2171 = vmatprep.subr.bf16.mxu0 %v3106_v15  ;;  %v3188_v15 = vld [vmem:[#allocation5 + $0x6e0] ss:$8 sps:$4 sm:$0xff]  }
  0xcb   :  { %1999 = vmatmul.mubr.bf16.vlgmr.msra.gmra.mrb[0].mxu1 %v91_v18  ;;  %v3191_v18 = vld [vmem:[#allocation5 + $0x2f0] ss:$8 sps:$4 sm:$0xff]  }
  0xcc   :  { %2163 = vmatmul.mubr.bf16.vlgmr.msra.gmra.mrb[0].mxu0 %v99_v19  ;;  %2008 = vmatpush1.bf16.msra.mxu1 %v3101_v16  ;;  %v3193_v16 = vld [vmem:[#allocation5 + $0x2f4] ss:$8 sps:$4 sm:$0xff]   ;;  %v3194_v19 = vld [vmem:[#allocation5 + $0x6f0] ss:$8 sps:$4 sm:$0xff]  }
  0xcd   :  { %2172 = vmatpush1.bf16.msra.mxu0 %v3104_v17  ;;  %2009 = vmatprep.subr.bf16.mxu1 %v3109_v20  ;;  %v3196_v17 = vld [vmem:[#allocation5 + $0x6f4] ss:$8 sps:$4 sm:$0xff]   ;;  %v3199_v20 = vld [vmem:[#allocation5 + $0x304] ss:$8 sps:$4 sm:$0xff]  }
  0xce   :  { %2173 = vmatprep.subr.bf16.mxu0 %v3112_v21  ;;  %2039 = vmatprep.mubr.bf16.mxu1 %v94_v24  ;;  %v74_v21 = vld [vmem:[#allocation2 + $0x20] sm:$0xff] }
  0xcf   :  { %2203 = vmatprep.mubr.bf16.mxu0 %v102_v29  ;;  %v3197_v24 = vld [vmem:[#allocation5 + $0x300] ss:$8 sps:$4 sm:$0xff]   ;;  %v93_v26 = vpack.c.bf16 %v74_v21, %v74_v21  ;;  %v3286_v21 = vld [vmem:[#allocation5 + $0x7e4] ss:$8 sps:$4 sm:$0xff]  }
  0xd0   :  { %2010 = vmatpush1.bf16.msra.mxu1 %v3107_v23  ;;  %v3202_v23 = vld [vmem:[#allocation5 + $0x704] ss:$8 sps:$4 sm:$0xff]  }
  0xd1   :  { %2174 = vmatpush1.bf16.msra.mxu0 %v3110_v25  ;;  %2011 = vmatprep.subr.bf16.mxu1 %v3115_v27  ;;  %v3200_v25 = vld [vmem:[#allocation5 + $0x700] ss:$8 sps:$4 sm:$0xff]   ;;  %v101_v27 = vpack.c.bf16 %v82_v22, %v82_v22 }
  0xd2   :  { %2175 = vmatprep.subr.bf16.mxu0 %v3118_v28  ;;  %v77_v28 = vld [vmem:[#allocation2 + $0x38] sm:$0xff] }
  0xd3   :  { %v85_v29 = vld [vmem:[#allocation2 + $0x78] sm:$0xff] }
  0xd4   :  { %2012 = vmatpush1.bf16.msra.mxu1 %v3113_v30  ;;  %v3205_v30 = vld [vmem:[#allocation5 + $0x314] ss:$8 sps:$4 sm:$0xff]   ;;  %v3281_v22 = vld [vmem:[#allocation5 + $0x3e0] ss:$8 sps:$4 sm:$0xff]  }
  0xd5   :  { %2176 = vmatpush1.bf16.msra.mxu0 %v3116_v31  ;;  %2013 = vmatprep.subr.bf16.mxu1 %v3121_v32  ;;  %v3208_v31 = vld [vmem:[#allocation5 + $0x714] ss:$8 sps:$4 sm:$0xff]   ;;  %v96_v32 = vpack.c.bf16 %v77_v28, %v77_v28 }
  0xd6   :  { %2177 = vmatprep.subr.bf16.mxu0 %v3124_v33  ;;  %v104_v33 = vpack.c.bf16 %v85_v29, %v85_v29  ;;  %v76_v28 = vld [vmem:[#allocation2 + $0x30] sm:$0xff] }
  0xd7   :  { %v84_v29 = vld [vmem:[#allocation2 + $0x70] sm:$0xff] }
  0xd8   :  { %2014 = vmatpush1.bf16.msra.mxu1 %v3119_v34  ;;  %v3203_v34 = vld [vmem:[#allocation5 + $0x310] ss:$8 sps:$4 sm:$0xff]  }
  0xd9   :  { %2178 = vmatpush1.bf16.msra.mxu0 %v3122_v35  ;;  %2015 = vmatprep.subr.bf16.mxu1 %v3127_v36  ;;  %v3206_v35 = vld [vmem:[#allocation5 + $0x710] ss:$8 sps:$4 sm:$0xff]   ;;  %v3211_v36 = vld [vmem:[#allocation5 + $0x324] ss:$8 sps:$4 sm:$0xff]  }
  0xda   :  { %2179 = vmatprep.subr.bf16.mxu0 %v3130_v37  ;;  %v3214_v37 = vld [vmem:[#allocation5 + $0x724] ss:$8 sps:$4 sm:$0xff]  }
  0xdc   :  { %2016 = vmatpush1.bf16.msra.mxu1 %v3125_v38  ;;  %v3209_v38 = vld [vmem:[#allocation5 + $0x320] ss:$8 sps:$4 sm:$0xff]  }
  0xdd   :  { %2180 = vmatpush1.bf16.msra.mxu0 %v3128_v39  ;;  %2017 = vmatprep.subr.bf16.mxu1 %v3133_v40  ;;  %v3212_v39 = vld [vmem:[#allocation5 + $0x720] ss:$8 sps:$4 sm:$0xff]   ;;  %v3217_v40 = vld [vmem:[#allocation5 + $0x334] ss:$8 sps:$4 sm:$0xff]  }
  0xde   :  { %2181 = vmatprep.subr.bf16.mxu0 %v3136_v41  ;;  %v3220_v41 = vld [vmem:[#allocation5 + $0x734] ss:$8 sps:$4 sm:$0xff]  }
  0xe0   :  { %2018 = vmatpush1.bf16.msra.mxu1 %v3131_v42  ;;  %v3215_v42 = vld [vmem:[#allocation5 + $0x330] ss:$8 sps:$4 sm:$0xff]  }
  0xe1   :  { %2182 = vmatpush1.bf16.msra.mxu0 %v3134_v43  ;;  %2019 = vmatprep.subr.bf16.mxu1 %v3139_v44  ;;  %v3218_v43 = vld [vmem:[#allocation5 + $0x730] ss:$8 sps:$4 sm:$0xff]   ;;  %v3223_v44 = vld [vmem:[#allocation5 + $0x344] ss:$8 sps:$4 sm:$0xff]  }
  0xe2   :  { %2183 = vmatprep.subr.bf16.mxu0 %v3142_v45  ;;  %v3226_v45 = vld [vmem:[#allocation5 + $0x744] ss:$8 sps:$4 sm:$0xff]  }
  0xe4   :  { %2020 = vmatpush1.bf16.msra.mxu1 %v3137_v46  ;;  %v3221_v46 = vld [vmem:[#allocation5 + $0x340] ss:$8 sps:$4 sm:$0xff]  }
  0xe5   :  { %2184 = vmatpush1.bf16.msra.mxu0 %v3140_v47  ;;  %2021 = vmatprep.subr.bf16.mxu1 %v3145_v48  ;;  %v3224_v47 = vld [vmem:[#allocation5 + $0x740] ss:$8 sps:$4 sm:$0xff]   ;;  %v3229_v48 = vld [vmem:[#allocation5 + $0x354] ss:$8 sps:$4 sm:$0xff]  }
  0xe6   :  { %2185 = vmatprep.subr.bf16.mxu0 %v3148_v49  ;;  %v3232_v49 = vld [vmem:[#allocation5 + $0x754] ss:$8 sps:$4 sm:$0xff]  }
  0xe8   :  { %2022 = vmatpush1.bf16.msra.mxu1 %v3143_v50  ;;  %v3227_v50 = vld [vmem:[#allocation5 + $0x350] ss:$8 sps:$4 sm:$0xff]  }
  0xe9   :  { %2186 = vmatpush1.bf16.msra.mxu0 %v3146_v51  ;;  %2023 = vmatprep.subr.bf16.mxu1 %v3151_v52  ;;  %v3230_v51 = vld [vmem:[#allocation5 + $0x750] ss:$8 sps:$4 sm:$0xff]   ;;  %v3235_v52 = vld [vmem:[#allocation5 + $0x364] ss:$8 sps:$4 sm:$0xff]  }
  0xea   :  { %2187 = vmatprep.subr.bf16.mxu0 %v3154_v53  ;;  %v3238_v53 = vld [vmem:[#allocation5 + $0x764] ss:$8 sps:$4 sm:$0xff]  }
  0xec   :  { %2024 = vmatpush1.bf16.msra.mxu1 %v3149_v54  ;;  %v3233_v54 = vld [vmem:[#allocation5 + $0x360] ss:$8 sps:$4 sm:$0xff]  }
  0xed   :  { %2188 = vmatpush1.bf16.msra.mxu0 %v3152_v55  ;;  %2025 = vmatprep.subr.bf16.mxu1 %v3157_v56  ;;  %v3236_v55 = vld [vmem:[#allocation5 + $0x760] ss:$8 sps:$4 sm:$0xff]   ;;  %v3241_v56 = vld [vmem:[#allocation5 + $0x374] ss:$8 sps:$4 sm:$0xff]  }
  0xee   :  { %2189 = vmatprep.subr.bf16.mxu0 %v3160_v57  ;;  %v3244_v57 = vld [vmem:[#allocation5 + $0x774] ss:$8 sps:$4 sm:$0xff]  }
  0xf0   :  { %2026 = vmatpush1.bf16.msra.mxu1 %v3155_v58  ;;  %v3239_v58 = vld [vmem:[#allocation5 + $0x370] ss:$8 sps:$4 sm:$0xff]  }
  0xf1   :  { %2190 = vmatpush1.bf16.msra.mxu0 %v3158_v59  ;;  %2027 = vmatprep.subr.bf16.mxu1 %v3163_v60  ;;  %v3242_v59 = vld [vmem:[#allocation5 + $0x770] ss:$8 sps:$4 sm:$0xff]   ;;  %v3247_v60 = vld [vmem:[#allocation5 + $0x384] ss:$8 sps:$4 sm:$0xff]  }
  0xf2   :  { %2191 = vmatprep.subr.bf16.mxu0 %v3166_v61  ;;  %v3250_v61 = vld [vmem:[#allocation5 + $0x784] ss:$8 sps:$4 sm:$0xff]  }
  0xf4   :  { %2028 = vmatpush1.bf16.msra.mxu1 %v3161_v62  ;;  %v3245_v62 = vld [vmem:[#allocation5 + $0x380] ss:$8 sps:$4 sm:$0xff]  }
  0xf5   :  { %2192 = vmatpush1.bf16.msra.mxu0 %v3164_v63  ;;  %2029 = vmatprep.subr.bf16.mxu1 %v3169_v0  ;;  %v3248_v63 = vld [vmem:[#allocation5 + $0x780] ss:$8 sps:$4 sm:$0xff]   ;;  %v3253_v0 = vld [vmem:[#allocation5 + $0x394] ss:$8 sps:$4 sm:$0xff]  }
  0xf6   :  { %2193 = vmatprep.subr.bf16.mxu0 %v3172_v1  ;;  %v3256_v1 = vld [vmem:[#allocation5 + $0x794] ss:$8 sps:$4 sm:$0xff]  }
  0xf8   :  { %2030 = vmatpush1.bf16.msra.mxu1 %v3167_v2  ;;  %v3251_v2 = vld [vmem:[#allocation5 + $0x390] ss:$8 sps:$4 sm:$0xff]  }
  0xf9   :  { %2194 = vmatpush1.bf16.msra.mxu0 %v3170_v3  ;;  %2031 = vmatprep.subr.bf16.mxu1 %v3175_v4  ;;  %v3254_v3 = vld [vmem:[#allocation5 + $0x790] ss:$8 sps:$4 sm:$0xff]   ;;  %v3259_v4 = vld [vmem:[#allocation5 + $0x3a4] ss:$8 sps:$4 sm:$0xff]  }
  0xfa   :  { %2195 = vmatprep.subr.bf16.mxu0 %v3178_v5  ;;  %v3262_v5 = vld [vmem:[#allocation5 + $0x7a4] ss:$8 sps:$4 sm:$0xff]  }
  0xfc   :  { %2032 = vmatpush1.bf16.msra.mxu1 %v3173_v6  ;;  %v3257_v6 = vld [vmem:[#allocation5 + $0x3a0] ss:$8 sps:$4 sm:$0xff]  }
  0xfd   :  { %2196 = vmatpush1.bf16.msra.mxu0 %v3176_v7  ;;  %2033 = vmatprep.subr.bf16.mxu1 %v3181_v8  ;;  %v3260_v7 = vld [vmem:[#allocation5 + $0x7a0] ss:$8 sps:$4 sm:$0xff]   ;;  %v3265_v8 = vld [vmem:[#allocation5 + $0x3b4] ss:$8 sps:$4 sm:$0xff]  }
  0xfe   :  { %2197 = vmatprep.subr.bf16.mxu0 %v3184_v9  ;;  %v3268_v9 = vld [vmem:[#allocation5 + $0x7b4] ss:$8 sps:$4 sm:$0xff]  }
 0x100   :  { %2034 = vmatpush1.bf16.msra.mxu1 %v3179_v10  ;;  %v3263_v10 = vld [vmem:[#allocation5 + $0x3b0] ss:$8 sps:$4 sm:$0xff]  }
 0x101   :  { %2198 = vmatpush1.bf16.msra.mxu0 %v3182_v11  ;;  %2035 = vmatprep.subr.bf16.mxu1 %v3187_v12  ;;  %v3266_v11 = vld [vmem:[#allocation5 + $0x7b0] ss:$8 sps:$4 sm:$0xff]   ;;  %v3271_v12 = vld [vmem:[#allocation5 + $0x3c4] ss:$8 sps:$4 sm:$0xff]  }
 0x102   :  { %2199 = vmatprep.subr.bf16.mxu0 %v3190_v13  ;;  %v3274_v13 = vld [vmem:[#allocation5 + $0x7c4] ss:$8 sps:$4 sm:$0xff]  }
 0x104   :  { %2036 = vmatpush1.bf16.msra.mxu1 %v3185_v14  ;;  %v3269_v14 = vld [vmem:[#allocation5 + $0x3c0] ss:$8 sps:$4 sm:$0xff]  }
 0x105   :  { %2200 = vmatpush1.bf16.msra.mxu0 %v3188_v15  ;;  %2037 = vmatprep.subr.bf16.mxu1 %v3193_v16  ;;  %v3272_v15 = vld [vmem:[#allocation5 + $0x7c0] ss:$8 sps:$4 sm:$0xff]   ;;  %v3277_v16 = vld [vmem:[#allocation5 + $0x3d4] ss:$8 sps:$4 sm:$0xff]  }
 0x106   :  { %2201 = vmatprep.subr.bf16.mxu0 %v3196_v17  ;;  %v3280_v17 = vld [vmem:[#allocation5 + $0x7d4] ss:$8 sps:$4 sm:$0xff]  }
 0x108   :  { %2038 = vmatpush1.bf16.msra.mxu1 %v3191_v18  ;;  %v3275_v18 = vld [vmem:[#allocation5 + $0x3d0] ss:$8 sps:$4 sm:$0xff]  }
 0x109   :  { %2202 = vmatpush1.bf16.msra.mxu0 %v3194_v19  ;;  %2048 = vmatprep.subr.bf16.mxu1 %v3199_v20  ;;  %v3278_v19 = vld [vmem:[#allocation5 + $0x7d0] ss:$8 sps:$4 sm:$0xff]   ;;  %v3283_v20 = vld [vmem:[#allocation5 + $0x3e4] ss:$8 sps:$4 sm:$0xff]  }
 0x10a   :  { %2212 = vmatprep.subr.bf16.mxu0 %v3202_v23  ;;  %v3284_v23 = vld [vmem:[#allocation5 + $0x7e0] ss:$8 sps:$4 sm:$0xff]  }
 0x10b   :  { %2040 = vmatmul.mubr.bf16.vlgmr.msra.gmra.mrb[0].mxu1 %v93_v26  ;;  %v3287_v26 = vld [vmem:[#allocation5 + $0x3f0] ss:$8 sps:$4 sm:$0xff]  }
 0x10c   :  { %2204 = vmatmul.mubr.bf16.vlgmr.msra.gmra.mrb[0].mxu0 %v101_v27  ;;  %2049 = vmatpush1.bf16.msra.mxu1 %v3197_v24  ;;  %v3289_v24 = vld [vmem:[#allocation5 + $0x3f4] ss:$8 sps:$4 sm:$0xff]   ;;  %v3290_v27 = vld [vmem:[#allocation5 + $0x7f0] ss:$8 sps:$4 sm:$0xff]  }
 0x10d   :  { %2213 = vmatpush1.bf16.msra.mxu0 %v3200_v25  ;;  %2050 = vmatprep.subr.bf16.mxu1 %v3205_v30  ;;  %v3292_v25 = vld [vmem:[#allocation5 + $0x7f4] ss:$8 sps:$4 sm:$0xff]   ;;  %v3295_v30 = vld [vmem:[#allocation5 + $0x804] ss:$8 sps:$4 sm:$0xff]  }
 0x10e   :  { %2214 = vmatprep.subr.bf16.mxu0 %v3208_v31  ;;  %2080 = vmatprep.mubr.bf16.mxu1 %v96_v32  ;;  %v3325_v31 = vld [vmem:[#allocation5 + $0x904] ss:$8 sps:$4 sm:$0xff]   ;;  %v95_v32 = vpack.c.bf16 %v76_v28, %v76_v28 }
 0x10f   :  { %2244 = vmatprep.mubr.bf16.mxu0 %v104_v33  ;;  %v103_v33 = vpack.c.bf16 %v84_v29, %v84_v29 }
 0x110   :  { %2051 = vmatpush1.bf16.msra.mxu1 %v3203_v34  ;;  %v87_v34 = vld [vmem:[#allocation2 + $0x88] sm:$0xff] }
 0x111   :  { %2215 = vmatpush1.bf16.msra.mxu0 %v3206_v35  ;;  %2052 = vmatprep.subr.bf16.mxu1 %v3211_v36  ;;  %v3293_v35 = vld [vmem:[#allocation5 + $0x800] ss:$8 sps:$4 sm:$0xff]  }
 0x112   :  { %2216 = vmatprep.subr.bf16.mxu0 %v3214_v37  ;;  %v3323_v36 = vld [vmem:[#allocation5 + $0x900] ss:$8 sps:$4 sm:$0xff]   ;;  %v3298_v37 = vld [vmem:[#allocation5 + $0x814] ss:$8 sps:$4 sm:$0xff]  }
 0x114   :  { %2053 = vmatpush1.bf16.msra.mxu1 %v3209_v38  ;;  %v3331_v38 = vld [vmem:[#allocation5 + $0x914] ss:$8 sps:$4 sm:$0xff]  }
 0x115   :  { %2217 = vmatpush1.bf16.msra.mxu0 %v3212_v39  ;;  %2054 = vmatprep.subr.bf16.mxu1 %v3217_v40  ;;  %v106_v39 = vpack.c.bf16 %v87_v34, %v87_v34  ;;  %v3296_v40 = vld [vmem:[#allocation5 + $0x810] ss:$8 sps:$4 sm:$0xff]  }
 0x116   :  { %2218 = vmatprep.subr.bf16.mxu0 %v3220_v41  ;;  %v3329_v41 = vld [vmem:[#allocation5 + $0x910] ss:$8 sps:$4 sm:$0xff]  }
 0x118   :  { %2055 = vmatpush1.bf16.msra.mxu1 %v3215_v42  ;;  %v3301_v42 = vld [vmem:[#allocation5 + $0x824] ss:$8 sps:$4 sm:$0xff]  }
 0x119   :  { %2219 = vmatpush1.bf16.msra.mxu0 %v3218_v43  ;;  %2056 = vmatprep.subr.bf16.mxu1 %v3223_v44  ;;  %v3337_v43 = vld [vmem:[#allocation5 + $0x924] ss:$8 sps:$4 sm:$0xff]   ;;  %v3488_v44 = vmov 0  }
 0x11a   :  { %2220 = vmatprep.subr.bf16.mxu0 %v3226_v45  ;;  %v3299_v45 = vld [vmem:[#allocation5 + $0x820] ss:$8 sps:$4 sm:$0xff]  }
 0x11c   :  { %2057 = vmatpush1.bf16.msra.mxu1 %v3221_v46  ;;  %v3335_v46 = vld [vmem:[#allocation5 + $0x920] ss:$8 sps:$4 sm:$0xff]  }
 0x11d   :  { %2221 = vmatpush1.bf16.msra.mxu0 %v3224_v47  ;;  %2058 = vmatprep.subr.bf16.mxu1 %v3229_v48  ;;  %v3304_v47 = vld [vmem:[#allocation5 + $0x834] ss:$8 sps:$4 sm:$0xff]  }
 0x11e   :  { %2222 = vmatprep.subr.bf16.mxu0 %v3232_v49  ;;  %v3343_v48 = vld [vmem:[#allocation5 + $0x934] ss:$8 sps:$4 sm:$0xff]   ;;  %v3302_v49 = vld [vmem:[#allocation5 + $0x830] ss:$8 sps:$4 sm:$0xff]  }
 0x120   :  { %2059 = vmatpush1.bf16.msra.mxu1 %v3227_v50  ;;  %v3341_v50 = vld [vmem:[#allocation5 + $0x930] ss:$8 sps:$4 sm:$0xff]  }
 0x121   :  { %2223 = vmatpush1.bf16.msra.mxu0 %v3230_v51  ;;  %2060 = vmatprep.subr.bf16.mxu1 %v3235_v52  ;;  %v3307_v51 = vld [vmem:[#allocation5 + $0x844] ss:$8 sps:$4 sm:$0xff]  }
 0x122   :  { %2224 = vmatprep.subr.bf16.mxu0 %v3238_v53  ;;  %v3349_v52 = vld [vmem:[#allocation5 + $0x944] ss:$8 sps:$4 sm:$0xff]   ;;  %v406_v53 = vld [vmem:[#allocation5 + $0x950] sm:$0xff] }
 0x124   :  { %2061 = vmatpush1.bf16.msra.mxu1 %v3233_v54  ;;  %v3305_v54 = vld [vmem:[#allocation5 + $0x840] ss:$8 sps:$4 sm:$0xff]  }
 0x125   :  { %2225 = vmatpush1.bf16.msra.mxu0 %v3236_v55  ;;  %2062 = vmatprep.subr.bf16.mxu1 %v3241_v56  ;;  %v3347_v55 = vld [vmem:[#allocation5 + $0x940] ss:$8 sps:$4 sm:$0xff]   ;;  %v3310_v56 = vld [vmem:[#allocation5 + $0x854] ss:$8 sps:$4 sm:$0xff]  }
 0x126   :  { %2226 = vmatprep.subr.bf16.mxu0 %v3244_v57  ;;  %v2798_v57 = vcombine.high %v406_v53, %v406_v53 }
 0x128   :  { %2063 = vmatpush1.bf16.msra.mxu1 %v3239_v58  ;;  %v2797_v58 = vcombine.low %v406_v53, %v406_v53 }
 0x129   :  { %2227 = vmatpush1.bf16.msra.mxu0 %v3242_v59  ;;  %2064 = vmatprep.subr.bf16.mxu1 %v3247_v60  ;;  %v3308_v59 = vld [vmem:[#allocation5 + $0x850] ss:$8 sps:$4 sm:$0xff]  }
 0x12a   :  { %2228 = vmatprep.subr.bf16.mxu0 %v3250_v61  ;;  %v88_v60 = vld [vmem:[#allocation2 + $0x90] sm:$0xff]  ;;  %v3313_v61 = vld [vmem:[#allocation5 + $0x864] ss:$8 sps:$4 sm:$0xff]  }
 0x12c   :  { %2065 = vmatpush1.bf16.msra.mxu1 %v3245_v62  ;;  %v1920_v62 = vsel %vm1918_vm0, %v2797_v58, 0 }
 0x12d   :  { %2229 = vmatpush1.bf16.msra.mxu0 %v3248_v63  ;;  %2066 = vmatprep.subr.bf16.mxu1 %v3253_v0  ;;  %v107_v63 = vpack.c.bf16 %v88_v60, %v88_v60  ;;  %v3311_v0 = vld [vmem:[#allocation5 + $0x860] ss:$8 sps:$4 sm:$0xff]  }
 0x12e   :  { %2230 = vmatprep.subr.bf16.mxu0 %v3256_v1  ;;  %v3316_v1 = vld [vmem:[#allocation5 + $0x874] ss:$8 sps:$4 sm:$0xff]  }
 0x12f   :  { %v2363_v60 = vld [vmem:[#allocation8 + $0xc0] sm:$0xff] }
 0x130   :  { %2067 = vmatpush1.bf16.msra.mxu1 %v3251_v2  ;;  %v3314_v2 = vld [vmem:[#allocation5 + $0x870] ss:$8 sps:$4 sm:$0xff]  }
 0x131   :  { %2231 = vmatpush1.bf16.msra.mxu0 %v3254_v3  ;;  %2068 = vmatprep.subr.bf16.mxu1 %v3259_v4  ;;  %v3319_v3 = vld [vmem:[#allocation5 + $0x884] ss:$8 sps:$4 sm:$0xff]   ;;  %v3317_v4 = vld [vmem:[#allocation5 + $0x880] ss:$8 sps:$4 sm:$0xff]  }
 0x132   :  { %2232 = vmatprep.subr.bf16.mxu0 %v3262_v5  ;;  %v3322_v5 = vld [vmem:[#allocation5 + $0x894] ss:$8 sps:$4 sm:$0xff]  }
 0x134   :  { %2069 = vmatpush1.bf16.msra.mxu1 %v3257_v6  ;;  %v3320_v6 = vld [vmem:[#allocation5 + $0x890] ss:$8 sps:$4 sm:$0xff]  }
 0x135   :  { %2233 = vmatpush1.bf16.msra.mxu0 %v3260_v7  ;;  %2070 = vmatprep.subr.bf16.mxu1 %v3265_v8  ;;  %v3328_v7 = vld [vmem:[#allocation5 + $0x8a4] ss:$8 sps:$4 sm:$0xff]   ;;  %v3326_v8 = vld [vmem:[#allocation5 + $0x8a0] ss:$8 sps:$4 sm:$0xff]  }
 0x136   :  { %2234 = vmatprep.subr.bf16.mxu0 %v3268_v9  ;;  %v3334_v9 = vld [vmem:[#allocation5 + $0x8b4] ss:$8 sps:$4 sm:$0xff]  }
 0x138   :  { %2071 = vmatpush1.bf16.msra.mxu1 %v3263_v10  ;;  %v3332_v10 = vld [vmem:[#allocation5 + $0x8b0] ss:$8 sps:$4 sm:$0xff]  }
 0x139   :  { %2235 = vmatpush1.bf16.msra.mxu0 %v3266_v11  ;;  %2072 = vmatprep.subr.bf16.mxu1 %v3271_v12  ;;  %v3340_v11 = vld [vmem:[#allocation5 + $0x8c4] ss:$8 sps:$4 sm:$0xff]   ;;  %v3338_v12 = vld [vmem:[#allocation5 + $0x8c0] ss:$8 sps:$4 sm:$0xff]  }
 0x13a   :  { %2236 = vmatprep.subr.bf16.mxu0 %v3274_v13  ;;  %v3346_v13 = vld [vmem:[#allocation5 + $0x8d4] ss:$8 sps:$4 sm:$0xff]  }
 0x13c   :  { %2073 = vmatpush1.bf16.msra.mxu1 %v3269_v14  ;;  %v3344_v14 = vld [vmem:[#allocation5 + $0x8d0] ss:$8 sps:$4 sm:$0xff]  }
 0x13d   :  { %2237 = vmatpush1.bf16.msra.mxu0 %v3272_v15  ;;  %2074 = vmatprep.subr.bf16.mxu1 %v3277_v16  ;;  %v3352_v15 = vld [vmem:[#allocation5 + $0x8e4] ss:$8 sps:$4 sm:$0xff]   ;;  %v3350_v16 = vld [vmem:[#allocation5 + $0x8e0] ss:$8 sps:$4 sm:$0xff]  }
 0x13e   :  { %2238 = vmatprep.subr.bf16.mxu0 %v3280_v17  ;;  %v3356_v17 = vld [vmem:[#allocation5 + $0x8f4] ss:$8 sps:$4 sm:$0xff]  }
 0x140   :  { %2075 = vmatpush1.bf16.msra.mxu1 %v3275_v18  ;;  %v3354_v18 = vld [vmem:[#allocation5 + $0x8f0] ss:$8 sps:$4 sm:$0xff]  }
 0x141   :  { %2239 = vmatpush1.bf16.msra.mxu0 %v3278_v19  ;;  %2076 = vmatprep.subr.bf16.mxu1 %v3283_v20  ;;  %v86_v19 = vld [vmem:[#allocation2 + $0x80] sm:$0xff] }
 0x142   :  { %2240 = vmatprep.subr.bf16.mxu0 %v3286_v21  ;;  %v105_v20 = vpack.c.bf16 %v86_v19, %v86_v19  ;;  %v2340_v21 = vld [vmem:[#allocation8 + $0x8] sm:$0xff] }
 0x144   :  { %2077 = vmatpush1.bf16.msra.mxu1 %v3281_v22  ;;  %v2342_v22 = vld [vmem:[#allocation8 + $0x18] sm:$0xff] }
 0x145   :  { %2241 = vmatpush1.bf16.msra.mxu0 %v3284_v23  ;;  %2078 = vmatprep.subr.bf16.mxu1 %v3289_v24  ;;  %v2339_v23 = vld [vmem:[#allocation8] sm:$0xff]  ;;  %v2801_v24 = vpack.c.bf16 %v2342_v22, %v2340_v21  ;;  %v2381_v21 = vld [vmem:[#allocation8 + $0x150] sm:$0xff]  ;;  %v2384_v22 = vld [vmem:[#allocation8 + $0x168] sm:$0xff] }
 0x146   :  { %2242 = vmatprep.subr.bf16.mxu0 %v3292_v25  ;;  %v2341_v25 = vld [vmem:[#allocation8 + $0x10] sm:$0xff] }
 0x147   :  { %v2803_v28 = vpack.c.bf16 %v2341_v25, %v2339_v23  ;;  %v2386_v23 = vld [vmem:[#allocation8 + $0x178] sm:$0xff] }
 0x148   :  { %2079 = vmatpush1.bf16.msra.mxu1 %v3287_v26  ;;  %v2344_v26 = vld [vmem:[#allocation8 + $0x28] sm:$0xff]  ;;  %v2845_v25 = vpack.c.bf16 %v2386_v23, %v2384_v22 }
 0x149   :  { %2243 = vmatpush1.bf16.msra.mxu0 %v3290_v27  ;;  %2294 = vmatprep.subr.bf16.mxu1 %v3325_v31  ;;  %v2346_v27 = vld [vmem:[#allocation8 + $0x38] sm:$0xff]  ;;  %v2345_v31 = vld [vmem:[#allocation8 + $0x30] sm:$0xff] }
 0x14a   :  { %2253 = vmatprep.subr.bf16.mxu0 %v3295_v30  ;;  %v2805_v29 = vpack.c.bf16 %v2346_v27, %v2344_v26  ;;  %v2343_v30 = vld [vmem:[#allocation8 + $0x20] sm:$0xff]  ;;  %v2385_v27 = vld [vmem:[#allocation8 + $0x170] sm:$0xff] }
 0x14b   :  { %2081 = vmatmul.mubr.bf16.vlgmr.msra.gmra.mrb[0].mxu1 %v95_v32  ;;  %v2348_v32 = vld [vmem:[#allocation8 + $0x48] sm:$0xff]  ;;  %v2807_v34 = vpack.c.bf16 %v2345_v31, %v2343_v30  ;;  %v2383_v26 = vld [vmem:[#allocation8 + $0x160] sm:$0xff] }
 0x14c   :  { %2245 = vmatmul.mubr.bf16.vlgmr.msra.gmra.mrb[0].mxu0 %v103_v33  ;;  %2295 = vmatpush1.bf16.msra.mxu1 %v3323_v36  ;;  %v2350_v33 = vld [vmem:[#allocation8 + $0x58] sm:$0xff]  ;;  %v2347_v36 = vld [vmem:[#allocation8 + $0x40] sm:$0xff]  ;;  %v2847_v30 = vpack.c.bf16 %v2385_v27, %v2383_v26 }
 0x14d   :  { %2254 = vmatpush1.bf16.msra.mxu0 %v3293_v35  ;;  %2296 = vmatprep.subr.bf16.mxu1 %v3331_v38  ;;  %v2809_v35 = vpack.c.bf16 %v2350_v33, %v2348_v32  ;;  %v2352_v38 = vld [vmem:[#allocation8 + $0x68] sm:$0xff]  ;;  %v2387_v32 = vld [vmem:[#allocation8 + $0x180] sm:$0xff]  ;;  %v2389_v33 = vld [vmem:[#allocation8 + $0x190] sm:$0xff] }
 0x14e   :  { %2255 = vmatprep.subr.bf16.mxu0 %v3298_v37  ;;  %2326 = vmatprep.mubr.bf16.mxu1 %v3488_v44  ;;  %v2349_v37 = vld [vmem:[#allocation8 + $0x50] sm:$0xff]  ;;  %v2356_v44 = vld [vmem:[#allocation8 + $0x88] sm:$0xff] }
 0x14f   :  { %2285 = vmatprep.mubr.bf16.mxu0 %v106_v39  ;;  %v2354_v39 = vld [vmem:[#allocation8 + $0x78] sm:$0xff] }
 0x150   :  { %2297 = vmatpush1.bf16.msra.mxu1 %v3329_v41  ;;  %v2813_v41 = vpack.c.bf16 %v2354_v39, %v2352_v38  ;;  %v2391_v38 = vld [vmem:[#allocation8 + $0x1a0] sm:$0xff]  ;;  %v2393_v39 = vld [vmem:[#allocation8 + $0x1b0] sm:$0xff] }
 0x151   :  { %2256 = vmatpush1.bf16.msra.mxu0 %v3296_v40  ;;  %2298 = vmatprep.subr.bf16.mxu1 %v3337_v43  ;;  %v2811_v40 = vpack.c.bf16 %v2349_v37, %v2347_v36  ;;  %v2353_v43 = vld [vmem:[#allocation8 + $0x70] sm:$0xff]  ;;  %v2851_v36 = vpack.c.bf16 %v2389_v33, %v2387_v32 }
 0x152   :  { %2257 = vmatprep.subr.bf16.mxu0 %v3301_v42  ;;  %v2351_v42 = vld [vmem:[#allocation8 + $0x60] sm:$0xff] }
 0x154   :  { %2299 = vmatpush1.bf16.msra.mxu1 %v3335_v46  ;;  %v2815_v46 = vpack.c.bf16 %v2353_v43, %v2351_v42  ;;  %v2398_v42 = vld [vmem:[#allocation8 + $0x1d8] sm:$0xff] }
 0x155   :  { %2258 = vmatpush1.bf16.msra.mxu0 %v3299_v45  ;;  %2300 = vmatprep.subr.bf16.mxu1 %v3343_v48  ;;  %v2358_v45 = vld [vmem:[#allocation8 + $0x98] sm:$0xff]  ;;  %v2355_v48 = vld [vmem:[#allocation8 + $0x80] sm:$0xff] }
 0x156   :  { %2259 = vmatprep.subr.bf16.mxu0 %v3304_v47  ;;  %v2817_v47 = vpack.c.bf16 %v2358_v45, %v2356_v44  ;;  %v2395_v44 = vld [vmem:[#allocation8 + $0x1c0] sm:$0xff]  ;;  %v2397_v45 = vld [vmem:[#allocation8 + $0x1d0] sm:$0xff] }
 0x158   :  { %2301 = vmatpush1.bf16.msra.mxu1 %v3341_v50  ;;  %v2360_v50 = vld [vmem:[#allocation8 + $0xa8] sm:$0xff] }
 0x159   :  { %2260 = vmatpush1.bf16.msra.mxu0 %v3302_v49  ;;  %2302 = vmatprep.subr.bf16.mxu1 %v3349_v52  ;;  %v2357_v49 = vld [vmem:[#allocation8 + $0x90] sm:$0xff] }
 0x15a   :  { %2261 = vmatprep.subr.bf16.mxu0 %v3307_v51  ;;  %v2362_v51 = vld [vmem:[#allocation8 + $0xb8] sm:$0xff]  ;;  %v2819_v52 = vpack.c.bf16 %v2357_v49, %v2355_v48 }
 0x15b   :  { %v2821_v53 = vpack.c.bf16 %v2362_v51, %v2360_v50  ;;  %v2402_v48 = vld [vmem:[#allocation8 + $0x1f8] sm:$0xff]  ;;  %v2399_v50 = vld [vmem:[#allocation8 + $0x1e0] sm:$0xff]  ;;  %v2401_v51 = vld [vmem:[#allocation8 + $0x1f0] sm:$0xff] }
 0x15c   :  { %2303 = vmatpush1.bf16.msra.mxu1 %v3347_v55  ;;  %v2361_v55 = vld [vmem:[#allocation8 + $0xb0] sm:$0xff] }
 0x15d   :  { %2262 = vmatpush1.bf16.msra.mxu0 %v3305_v54  ;;  %2799 = vmatprep.subr.msk.bf16.mxu1 %vm1918_vm0, %v2798_v57  ;;  %v2359_v54 = vld [vmem:[#allocation8 + $0xa0] sm:$0xff]  ;;  %v2366_v57 = vld [vmem:[#allocation8 + $0xd8] sm:$0xff] }
 0x15e   :  { %2263 = vmatprep.subr.bf16.mxu0 %v3310_v56  ;;  %v2364_v56 = vld [vmem:[#allocation8 + $0xc8] sm:$0xff]  ;;  %v2823_v58 = vpack.c.bf16 %v2361_v55, %v2359_v54 }
 0x160   :  { %2305 = vmatpush1.bf16.msra.mxu1 %v1920_v62  ;;  %v2368_v62 = vld [vmem:[#allocation8 + $0xe8] sm:$0xff] }
 0x161   :  { %2264 = vmatpush1.bf16.msra.mxu0 %v3308_v59  ;;  %2802 = vmatprep.subr.bf16.mxu1 %v2801_v24  ;;  %v2825_v59 = vpack.c.bf16 %v2366_v57, %v2364_v56 }
 0x162   :  { %2265 = vmatprep.subr.bf16.mxu0 %v3313_v61  ;;  %v2365_v61 = vld [vmem:[#allocation8 + $0xd0] sm:$0xff] }
 0x163   :  { %2800 = vmatmul.mubr.msk.bf16.vlgmr.msra.gmra.mrb[4].mxu1 %vm1914_vm1, %v107_v63  ;;  %v2370_v63 = vld [vmem:[#allocation8 + $0xf8] sm:$0xff] }
 0x164   :  { %2804 = vmatpush1.bf16.msra.mxu1 %v2803_v28  ;;  %v2388_v28 = vld [vmem:[#allocation8 + $0x188] sm:$0xff] }
 0x165   :  { %2266 = vmatpush1.bf16.msra.mxu0 %v3311_v0  ;;  %2806 = vmatprep.subr.bf16.mxu1 %v2805_v29  ;;  %v2827_v0 = vpack.c.bf16 %v2365_v61, %v2363_v60  ;;  %v2390_v29 = vld [vmem:[#allocation8 + $0x198] sm:$0xff]  ;;  %v409_v61 = vlaneseq }
 0x166   :  { %2267 = vmatprep.subr.bf16.mxu0 %v3316_v1  ;;  %v2829_v1 = vpack.c.bf16 %v2370_v63, %v2368_v62  ;;  %v2849_v31 = vpack.c.bf16 %v2390_v29, %v2388_v28 }
 0x167   :  { %v410_v62 = vshrl.u32 %v409_v61, 7 }
 0x168   :  { %2808 = vmatpush1.bf16.msra.mxu1 %v2807_v34  ;;  %v2392_v34 = vld [vmem:[#allocation8 + $0x1a8] sm:$0xff] }
 0x169   :  { %2268 = vmatpush1.bf16.msra.mxu0 %v3314_v2  ;;  %2810 = vmatprep.subr.bf16.mxu1 %v2809_v35  ;;  %v2367_v2 = vld [vmem:[#allocation8 + $0xe0] sm:$0xff]  ;;  %v2394_v35 = vld [vmem:[#allocation8 + $0x1b8] sm:$0xff]  ;;  %v411_v63 = vsub.s32 0, %v410_v62 }
 0x16a   :  { %2269 = vmatprep.subr.bf16.mxu0 %v3319_v3  ;;  %v2369_v3 = vld [vmem:[#allocation8 + $0xf0] sm:$0xff]  ;;  %v2853_v37 = vpack.c.bf16 %v2394_v35, %v2392_v34 }
 0x16c   :  { %2812 = vmatpush1.bf16.msra.mxu1 %v2811_v40  ;;  %v2855_v40 = vpack.c.bf16 %v2393_v39, %v2391_v38 }
 0x16d   :  { %2270 = vmatpush1.bf16.msra.mxu0 %v3317_v4  ;;  %2814 = vmatprep.subr.bf16.mxu1 %v2813_v41  ;;  %v2372_v4 = vld [vmem:[#allocation8 + $0x108] sm:$0xff] }
 0x16e   :  { %2271 = vmatprep.subr.bf16.mxu0 %v3322_v5  ;;  %v2374_v5 = vld [vmem:[#allocation8 + $0x118] sm:$0xff]  ;;  %v2396_v41 = vld [vmem:[#allocation8 + $0x1c8] sm:$0xff] }
 0x16f   :  { %v2857_v43 = vpack.c.bf16 %v2398_v42, %v2396_v41 }
 0x170   :  { %2816 = vmatpush1.bf16.msra.mxu1 %v2815_v46  ;;  %v2859_v46 = vpack.c.bf16 %v2397_v45, %v2395_v44 }
 0x171   :  { %2272 = vmatpush1.bf16.msra.mxu0 %v3320_v6  ;;  %2818 = vmatprep.subr.bf16.mxu1 %v2817_v47  ;;  %v2831_v6 = vpack.c.bf16 %v2369_v3, %v2367_v2  ;;  %v2400_v47 = vld [vmem:[#allocation8 + $0x1e8] sm:$0xff] }
 0x172   :  { %2273 = vmatprep.subr.bf16.mxu0 %v3328_v7  ;;  %v2833_v7 = vpack.c.bf16 %v2374_v5, %v2372_v4  ;;  %v2861_v49 = vpack.c.bf16 %v2402_v48, %v2400_v47 }
 0x174   :  { %2820 = vmatpush1.bf16.msra.mxu1 %v2819_v52  ;;  %v2863_v52 = vpack.c.bf16 %v2401_v51, %v2399_v50 }
 0x175   :  { %2274 = vmatpush1.bf16.msra.mxu0 %v3326_v8  ;;  %2822 = vmatprep.subr.bf16.mxu1 %v2821_v53  ;;  %v2371_v8 = vld [vmem:[#allocation8 + $0x100] sm:$0xff] }
 0x176   :  { %2275 = vmatprep.subr.bf16.mxu0 %v3334_v9  ;;  %v2373_v9 = vld [vmem:[#allocation8 + $0x110] sm:$0xff] }
 0x178   :  { %2824 = vmatpush1.bf16.msra.mxu1 %v2823_v58 }
 0x179   :  { %2276 = vmatpush1.bf16.msra.mxu0 %v3332_v10  ;;  %2826 = vmatprep.subr.bf16.mxu1 %v2825_v59  ;;  %v2376_v10 = vld [vmem:[#allocation8 + $0x128] sm:$0xff] }
 0x17a   :  { %2277 = vmatprep.subr.bf16.mxu0 %v3340_v11  ;;  %v2378_v11 = vld [vmem:[#allocation8 + $0x138] sm:$0xff] }
 0x17c   :  { %2828 = vmatpush1.bf16.msra.mxu1 %v2827_v0  ;;  %v407_v0 = vld [vmem:[#allocation7] sm:$0x3] }
 0x17d   :  { %2278 = vmatpush1.bf16.msra.mxu0 %v3338_v12  ;;  %2830 = vmatprep.subr.bf16.mxu1 %v2829_v1  ;;  %v2835_v12 = vpack.c.bf16 %v2373_v9, %v2371_v8  ;;  %v415_v1 = vsub.s32 1, %v410_v62  ;;  %v412_v2 = vrot.slane %v407_v0, %v411_v63 }
 0x17e   :  { %2279 = vmatprep.subr.bf16.mxu0 %v3346_v13  ;;  %v2837_v13 = vpack.c.bf16 %v2378_v11, %v2376_v10 }
 0x17f   :  { %v416_v3 = vrot.slane %v407_v0, %v415_v1 }
 0x180   :  { %2832 = vmatpush1.bf16.msra.mxu1 %v2831_v6 }
 0x181   :  { %2280 = vmatpush1.bf16.msra.mxu0 %v3344_v14  ;;  %2834 = vmatprep.subr.bf16.mxu1 %v2833_v7  ;;  %v2375_v14 = vld [vmem:[#allocation8 + $0x120] sm:$0xff] }
 0x182   :  { %2281 = vmatprep.subr.bf16.mxu0 %v3352_v15  ;;  %v2377_v15 = vld [vmem:[#allocation8 + $0x130] sm:$0xff] }
 0x184   :  { %2836 = vmatpush1.bf16.msra.mxu1 %v2835_v12 }
 0x185   :  { %2282 = vmatpush1.bf16.msra.mxu0 %v3350_v16  ;;  %v2380_v16 = vld [vmem:[#allocation8 + $0x148] sm:$0xff]  ;;  %2838 = vmatprep.subr.bf16.mxu1 %v2837_v13 }
 0x186   :  { %2283 = vmatprep.subr.bf16.mxu0 %v3356_v17  ;;  %v2382_v17 = vld [vmem:[#allocation8 + $0x158] sm:$0xff] }
 0x187   :  { %v2841_v19 = vpack.c.bf16 %v2382_v17, %v2380_v16 }
 0x189   :  { %2284 = vmatpush1.bf16.msra.mxu0 %v3354_v18  ;;  %v2839_v18 = vpack.c.bf16 %v2377_v15, %v2375_v14 }
 0x18b   :  { %2840 = vmatpush1.bf16.msra.mxu1 %v2839_v18 }
 0x18c   :  { %2286 = vmatmul.mubr.bf16.vlgmr.msra.gmra.mrb[0].mxu0 %v105_v20  ;;  %v2379_v20 = vld [vmem:[#allocation8 + $0x140] sm:$0xff]  ;;  %2842 = vmatprep.subr.bf16.mxu1 %v2841_v19 }
 0x18d   :  { %v2843_v24 = vpack.c.bf16 %v2381_v21, %v2379_v20 }
 0x18f   :  { %2844 = vmatpush1.bf16.msra.mxu1 %v2843_v24 }
 0x190   :  { %2846 = vmatprep.subr.bf16.mxu1 %v2845_v25 }
 0x193   :  { %2848 = vmatpush1.bf16.msra.mxu1 %v2847_v30 }
 0x194   :  { %2850 = vmatprep.subr.bf16.mxu1 %v2849_v31 }
 0x197   :  { %2852 = vmatpush1.bf16.msra.mxu1 %v2851_v36 }
 0x198   :  { %2854 = vmatprep.subr.bf16.mxu1 %v2853_v37 }
 0x19b   :  { %2856 = vmatpush1.bf16.msra.mxu1 %v2855_v40 }
 0x19c   :  { %2858 = vmatprep.subr.bf16.mxu1 %v2857_v43 }
 0x19f   :  { %2860 = vmatpush1.bf16.msra.mxu1 %v2859_v46 }
 0x1a0   :  { %2862 = vmatprep.subr.bf16.mxu1 %v2861_v49 }
 0x1a3   :  { %2864 = vmatpush1.bf16.msra.mxu1 %v2863_v52 }
 0x21e   :  { %v2082_v53 = vpop.f32.mrb[0].mxu1 }
 0x21f   :  { %v2084_v54 = vpop.f32.mrb[1].mxu1  ;;  %v2865_v4 = vadd.f32 %v2082_v53, %v412_v2 }
 0x220   :  { %v2086_v55 = vpop.f32.mrb[2].mxu1  ;;  %v2868_v5 = vadd.f32 %v2084_v54, %v416_v3 }
 0x221   :  { %v2087_v56 = vpop.f32.mrb[3].mxu1 }
 0x236   :  { %v2328_v57 = vpop.f32.mrb[4].mxu1 }
 0x237   :  { %v2330_v58 = vpop.f32.mrb[5].mxu1 }
 0x238   :  { %v2332_v59 = vpop.f32.mrb[6].mxu1 }
 0x239   :  { %v2333_v60 = vpop.f32.mrb[7].mxu1 }
 0x25f   :  { %v2287_v6 = vpop.f32.mrb[0].mxu0 }
 0x260   :  { %v2866_v7 = vadd.f32 %v2865_v4, %v2287_v6  ;;  %v2289_v8 = vpop.f32.mrb[1].mxu0 }
 0x261   :  { %v2869_v9 = vadd.f32 %v2868_v5, %v2289_v8  ;;  %v2291_v10 = vpop.f32.mrb[2].mxu0 }
 0x262   :  { %v2867_v11 = vadd.f32 %v2866_v7, %v2328_v57  ;;  %v2292_v12 = vpop.f32.mrb[3].mxu0 }
 0x263   :  { %v2870_v13 = vadd.f32 %v2869_v9, %v2330_v58 }
 0x264   :  { %v2335_v14 = vmax.f32 %v2867_v11, 0.0 }
 0x265   :  { %v2336_v15 = vmax.f32 %v2870_v13, 0.0 }
 0x266   :  { %v2337_v17 = vmul.f32 %v2335_v14, %v2335_v14 }
 0x267   :  { %v2338_v16 = vmul.f32 %v2336_v15, %v2336_v15 }
 0x269   :  { %2467 = vmatprep.mubr.f32.mxu1 %v2338_v16 }
 0x26a   :  { %2468 = vmatmul.mubr.f32.vlgmr.msra.gmra.mrb[8].mxu1 %v2337_v17 }
 0x33d   :  { %v2469_v18 = vpop.f32.mrb[8].mxu1 }
 0x33e   :  { %v2474_v19 = vmax.f32 %v2469_v18, 1e-24  ;;  %v2471_v20 = vpop.f32.mrb[9].mxu1 }
 0x33f   :  { %v2475_v21 = vmax.f32 %v2471_v20, 1e-24 }
 0x340   :  { %3358 = vrsqrt.f32 %v2474_v19 }
 0x341   :  { %3360 = vrsqrt.f32 %v2475_v21 }
 0x34a   :  { %v3359_v22 = vpop.eup %3358 }
 0x34b   :  { %v3361_v23 = vpop.eup %3360  ;;  %v2478_v24 = vmul.f32 %v3359_v22, %v2335_v14 }
 0x34c   :  { %v2479_v25 = vmul.f32 %v3361_v23, %v2336_v15 }
 0x34d   :  { %2480 = vst [vmem:[#allocation10] sm:$0xff] %v2478_v24 }
 0x34e   :  { %2481 = vst [vmem:[#allocation10 + $0x8] sm:$0xff] %v2479_v25 }
 0x34f   :  { %3461 = shalt.err (!%p3458_p8)
}
 0x350   :  { %s3462_s15 = scalar_lea.hbm %s3579_s4, 256 }
 0x351   :  { %p3463_p9 = scmp.ne.s32.totalorder %s3579_s4, %s3462_s15  ;;  %p3466_p10 = scmp.lt.u32.totalorder %s3462_s15, %s3579_s4 }
 0x353   :  { %p3468_p11 = pnand %p3466_p10, %p3463_p9 }
 0x355   :  { %3471 = shalt.err (!%p3468_p11)
}
 0x356   :  { %2491 = dma.vmem_to_hbm [thread:$0]  %s2489_s12, 256, %s3579_s4, [#allocation4]  }
 0x357   :  { %3478 = dma.done.wait [#allocation4], 256  }
 0x358   :  { %3479 = vsyncadd [#allocation4], 4294967040 }
 0x359   :  { %2495 = vsyncpa [#allocation3], 1 }
 0x35a   :  { %2496 = vsyncpa [#allocation6], 1 }
 0x35b   :  { %2497 = vsyncpa [#allocation9], 1 }
 0x35c   :  { %2498 = vsyncpa [#allocation4], 1 }

// kernel: tpu_custom_call.1
= control target key start
LH: loop header
LB: loop body
LE: loop exit
PB: predicated region body
PF: predicated region fallthrough
CT: control target
= control target key end

     0   :  { %9 = vsyncpa [#allocation3], 0  ;;  %s3575_s0 = inlined_call_operand.hbm [shape: f32[8,2392], index: 0, kind: input, shape index: {}]   ;;  %s3576_s1 = inlined_call_operand.hbm [shape: bf16[2392,256], index: 1, kind: input, shape index: {}]   ;;  %s3577_s2 = inlined_call_operand.hbm [shape: f32[1,256], index: 2, kind: input, shape index: {}]   ;;  %s3578_s3 = inlined_call_operand.hbm [shape: f32[256,256], index: 3, kind: input, shape index: {}]   ;;  %s3579_s4 = inlined_call_operand.hbm [shape: f32[8,256], index: 4, kind: output, shape index: {}]  }
   0x1   :  { %10 = vsyncpa [#allocation6], 0 }
   0x2   :  { %11 = vsyncpa [#allocation9], 0 }
   0x3   :  { %12 = vsyncpa [#allocation4], 0  ;;  %s3480_s15 = smov [#allocation5]   ;;  %s3362_s19 = scalar_lea.hbm %s3576_s1, 38272 }
   0x4   :  { %s28_s16 = sshll.u32 %s3480_s15, 4  ;;  %p3363_p0 = scmp.ne.s32.totalorder %s3576_s1, %s3362_s19  ;;  %s29_s16 = int_to_ptr.vmem [resolvable:$true] %s28_s16 }
   0x5   :  { %p3366_p1 = scmp.lt.u32.totalorder %s3362_s19, %s3576_s1 }
   0x7   :  { %p3368_p2 = pnand %p3366_p1, %p3363_p0 }
   0x9   :  { %3371 = shalt.err (!%p3368_p2)
}
   0xa   :  { %s3372_s24 = scalar_lea.vmem %s29_s16, 38272  ;;  %p3377_p4 = scmp.lt.s32.totalorder %s29_s16, %s29_s16 }
   0xb   :  { %p3373_p3 = scmp.ne.s32.totalorder %s29_s16, %s3372_s24  ;;  %p3378_p5 = scmp.lt.s32.totalorder %s3372_s24, %s3372_s24 }
   0xd   :  { %p3379_p6 = por %p3378_p5, %p3377_p4 }
   0xf   :  { %p3380_p7 = pnand %p3379_p6, %p3373_p3 }
  0x11   :  { %3383 = shalt.err (!%p3380_p7)
}
  0x12   :  { %s3481_s25 = smov 128   ;;  %s3482_s26 = smov 8  }
  0x13   :  { %34 = dma.hbm_to_vmem [thread:$0]  %s3576_s1, 38272, %s29_s16, [#allocation6], %s3481_s25, %s3481_s25, %s3482_s26  }
  0x14   :  { %s3483_s29 = smov [#allocation2]   ;;  %s3484_s5 = smov [#allocation7]  }
  0x15   :  { %s19_s30 = sshll.u32 %s3483_s29, 4  ;;  %s41_s6 = sshll.u32 %s3484_s5, 4  ;;  %s20_s30 = int_to_ptr.vmem [resolvable:$true] %s19_s30  ;;  %s42_s6 = int_to_ptr.vmem [resolvable:$true] %s41_s6 }
  0x16   :  { %s3384_s9 = scalar_lea.hbm %s3575_s0, 2432 }
  0x17   :  { %p3385_p8 = scmp.ne.s32.totalorder %s3575_s0, %s3384_s9  ;;  %p3388_p9 = scmp.lt.u32.totalorder %s3384_s9, %s3575_s0 }
  0x19   :  { %p3390_p10 = pnand %p3388_p9, %p3385_p8 }
  0x1b   :  { %3393 = shalt.err (!%p3390_p10)
}
  0x1c   :  { %s3394_s1 = scalar_lea.vmem %s20_s30, 2432  ;;  %p3399_p12 = scmp.lt.s32.totalorder %s20_s30, %s20_s30 }
  0x1d   :  { %p3395_p11 = scmp.ne.s32.totalorder %s20_s30, %s3394_s1  ;;  %p3400_p13 = scmp.lt.s32.totalorder %s3394_s1, %s3394_s1 }
  0x1f   :  { %p3401_p0 = por %p3400_p13, %p3399_p12 }
  0x21   :  { %p3402_p1 = pnand %p3401_p0, %p3395_p11 }
  0x23   :  { %3405 = shalt.err (!%p3402_p1)
}
  0x24   :  { %22 = dma.hbm_to_vmem [thread:$0]  %s3575_s0, 2432, %s20_s30, [#allocation3]  }
  0x25   :  { %s3406_s18 = scalar_lea.hbm %s3577_s2, 32 }
  0x26   :  { %p3407_p2 = scmp.ne.s32.totalorder %s3577_s2, %s3406_s18  ;;  %p3410_p3 = scmp.lt.u32.totalorder %s3406_s18, %s3577_s2 }
  0x28   :  { %p3412_p4 = pnand %p3410_p3, %p3407_p2 }
  0x2a   :  { %3415 = shalt.err (!%p3412_p4)
}
  0x2b   :  { %s3416_s23 = scalar_lea.vmem %s42_s6, 32  ;;  %p3421_p6 = scmp.lt.s32.totalorder %s42_s6, %s42_s6 }
  0x2c   :  { %p3417_p5 = scmp.ne.s32.totalorder %s42_s6, %s3416_s23  ;;  %p3422_p7 = scmp.lt.s32.totalorder %s3416_s23, %s3416_s23 }
  0x2e   :  { %p3423_p8 = por %p3422_p7, %p3421_p6 }
  0x30   :  { %p3424_p9 = pnand %p3423_p8, %p3417_p5 }
  0x32   :  { %3427 = shalt.err (!%p3424_p9)
}
  0x33   :  { %44 = dma.hbm_to_vmem [thread:$0]  %s3577_s2, 32, %s42_s6, [#allocation6]  }
  0x34   :  { %s3485_s25 = smov [#allocation8]   ;;  %s3428_s29 = scalar_lea.hbm %s3578_s3, 8192 }
  0x35   :  { %s50_s26 = sshll.u32 %s3485_s25, 4  ;;  %p3429_p10 = scmp.ne.s32.totalorder %s3578_s3, %s3428_s29  ;;  %s51_s26 = int_to_ptr.vmem [resolvable:$true] %s50_s26 }
  0x36   :  { %p3432_p11 = scmp.lt.u32.totalorder %s3428_s29, %s3578_s3 }
  0x38   :  { %p3434_p12 = pnand %p3432_p11, %p3429_p10 }
  0x3a   :  { %3437 = shalt.err (!%p3434_p12)
}
  0x3b   :  { %s3438_s9 = scalar_lea.vmem %s51_s26, 8192  ;;  %p3443_p0 = scmp.lt.s32.totalorder %s51_s26, %s51_s26 }
  0x3c   :  { %p3439_p13 = scmp.ne.s32.totalorder %s51_s26, %s3438_s9  ;;  %p3444_p1 = scmp.lt.s32.totalorder %s3438_s9, %s3438_s9 }
  0x3e   :  { %p3445_p2 = por %p3444_p1, %p3443_p0 }
  0x40   :  { %p3446_p3 = pnand %p3445_p2, %p3439_p13 }
  0x42   :  { %3449 = shalt.err (!%p3446_p3)
}
  0x43   :  { %s3486_s2 = smov 256   ;;  %s3487_s6 = smov 16  }
  0x44   :  { %56 = dma.hbm_to_vmem [thread:$0]  %s3578_s3, 8192, %s51_s26, [#allocation9], %s3486_s2, %s3486_s2, %s3487_s6  }
  0x45   :  { %3472 = dma.done.wait [#allocation3], 2432  }
  0x46   :  { %3473 = vsyncadd [#allocation3], 4294964864 }
  0x47   :  { %3474 = dma.done.wait [#allocation6], 38304  }
  0x48   :  { %3475 = vsyncadd [#allocation6], 4294928992 }
  0x49   :  { %3476 = dma.done.wait [#allocation9], 8192  }
  0x4a   :  { %3477 = vsyncadd [#allocation9], 4294959104  ;;  %v2909_v0 = vld [vmem:[#allocation5 + $0x4] ss:$8 sps:$4 sm:$0xff]   ;;  %v2913_v2 = vld [vmem:[#allocation5] ss:$8 sps:$4 sm:$0xff]  }
  0x4b   :  { %v2911_v1 = vld [vmem:[#allocation5 + $0x404] ss:$8 sps:$4 sm:$0xff]   ;;  %1925 = vmatprep.subr.bf16.mxu1 %v2909_v0  ;;  %v2914_v3 = vld [vmem:[#allocation5 + $0x400] ss:$8 sps:$4 sm:$0xff]   ;;  %v2915_v4 = vld [vmem:[#allocation5 + $0x14] ss:$8 sps:$4 sm:$0xff]  }
  0x4c   :  { %2089 = vmatprep.subr.bf16.mxu0 %v2911_v1  ;;  %1926 = vmatpush1.bf16.msra.mxu1 %v2913_v2  ;;  %v2917_v5 = vld [vmem:[#allocation5 + $0x414] ss:$8 sps:$4 sm:$0xff]   ;;  %v2919_v6 = vld [vmem:[#allocation5 + $0x10] ss:$8 sps:$4 sm:$0xff]   ;;  %v2921_v8 = vld [vmem:[#allocation5 + $0x24] ss:$8 sps:$4 sm:$0xff]  }
  0x4d   :  { %2090 = vmatpush1.bf16.msra.mxu0 %v2914_v3  ;;  %1927 = vmatprep.subr.bf16.mxu1 %v2915_v4  ;;  %v2920_v7 = vld [vmem:[#allocation5 + $0x410] ss:$8 sps:$4 sm:$0xff]   ;;  %v2923_v9 = vld [vmem:[#allocation5 + $0x424] ss:$8 sps:$4 sm:$0xff]   ;;  %v2925_v10 = vld [vmem:[#allocation5 + $0x20] ss:$8 sps:$4 sm:$0xff]  }
  0x4e   :  { %2091 = vmatprep.subr.bf16.mxu0 %v2917_v5  ;;  %v2926_v11 = vld [vmem:[#allocation5 + $0x420] ss:$8 sps:$4 sm:$0xff]   ;;  %v2927_v12 = vld [vmem:[#allocation5 + $0x34] ss:$8 sps:$4 sm:$0xff]   ;;  %v2931_v14 = vld [vmem:[#allocation5 + $0x30] ss:$8 sps:$4 sm:$0xff]  }
  0x4f   :  { %v2929_v13 = vld [vmem:[#allocation5 + $0x434] ss:$8 sps:$4 sm:$0xff]   ;;  %v2932_v15 = vld [vmem:[#allocation5 + $0x430] ss:$8 sps:$4 sm:$0xff]   ;;  %v2933_v16 = vld [vmem:[#allocation5 + $0x44] ss:$8 sps:$4 sm:$0xff]  }
  0x50   :  { %1928 = vmatpush1.bf16.msra.mxu1 %v2919_v6  ;;  %v2935_v17 = vld [vmem:[#allocation5 + $0x444] ss:$8 sps:$4 sm:$0xff]   ;;  %v2937_v18 = vld [vmem:[#allocation5 + $0x40] ss:$8 sps:$4 sm:$0xff]   ;;  %v2939_v20 = vld [vmem:[#allocation5 + $0x54] ss:$8 sps:$4 sm:$0xff]  }
  0x51   :  { %2092 = vmatpush1.bf16.msra.mxu0 %v2920_v7  ;;  %1929 = vmatprep.subr.bf16.mxu1 %v2921_v8  ;;  %v2938_v19 = vld [vmem:[#allocation5 + $0x440] ss:$8 sps:$4 sm:$0xff]   ;;  %v2941_v21 = vld [vmem:[#allocation5 + $0x454] ss:$8 sps:$4 sm:$0xff]   ;;  %v2943_v22 = vld [vmem:[#allocation5 + $0x50] ss:$8 sps:$4 sm:$0xff]  }
  0x52   :  { %2093 = vmatprep.subr.bf16.mxu0 %v2923_v9  ;;  %v2944_v23 = vld [vmem:[#allocation5 + $0x450] ss:$8 sps:$4 sm:$0xff]   ;;  %v2945_v24 = vld [vmem:[#allocation5 + $0x64] ss:$8 sps:$4 sm:$0xff]   ;;  %v2949_v26 = vld [vmem:[#allocation5 + $0x60] ss:$8 sps:$4 sm:$0xff]  }
  0x53   :  { %v2947_v25 = vld [vmem:[#allocation5 + $0x464] ss:$8 sps:$4 sm:$0xff]   ;;  %v2950_v27 = vld [vmem:[#allocation5 + $0x460] ss:$8 sps:$4 sm:$0xff]   ;;  %v2951_v28 = vld [vmem:[#allocation5 + $0x74] ss:$8 sps:$4 sm:$0xff]  }
  0x54   :  { %1930 = vmatpush1.bf16.msra.mxu1 %v2925_v10  ;;  %v2953_v29 = vld [vmem:[#allocation5 + $0x474] ss:$8 sps:$4 sm:$0xff]   ;;  %v2955_v30 = vld [vmem:[#allocation5 + $0x70] ss:$8 sps:$4 sm:$0xff]   ;;  %v2957_v32 = vld [vmem:[#allocation5 + $0x84] ss:$8 sps:$4 sm:$0xff]  }
  0x55   :  { %2094 = vmatpush1.bf16.msra.mxu0 %v2926_v11  ;;  %1931 = vmatprep.subr.bf16.mxu1 %v2927_v12  ;;  %v2956_v31 = vld [vmem:[#allocation5 + $0x470] ss:$8 sps:$4 sm:$0xff]   ;;  %v2959_v33 = vld [vmem:[#allocation5 + $0x484] ss:$8 sps:$4 sm:$0xff]   ;;  %v2961_v34 = vld [vmem:[#allocation5 + $0x80] ss:$8 sps:$4 sm:$0xff]  }
  0x56   :  { %2095 = vmatprep.subr.bf16.mxu0 %v2929_v13  ;;  %v2962_v35 = vld [vmem:[#allocation5 + $0x480] ss:$8 sps:$4 sm:$0xff]   ;;  %v2963_v36 = vld [vmem:[#allocation5 + $0x94] ss:$8 sps:$4 sm:$0xff]   ;;  %v2967_v38 = vld [vmem:[#allocation5 + $0x90] ss:$8 sps:$4 sm:$0xff]  }
  0x57   :  { %v2965_v37 = vld [vmem:[#allocation5 + $0x494] ss:$8 sps:$4 sm:$0xff]   ;;  %v2968_v39 = vld [vmem:[#allocation5 + $0x490] ss:$8 sps:$4 sm:$0xff]   ;;  %v2969_v40 = vld [vmem:[#allocation5 + $0xa4] ss:$8 sps:$4 sm:$0xff]  }
  0x58   :  { %1932 = vmatpush1.bf16.msra.mxu1 %v2931_v14  ;;  %v2971_v41 = vld [vmem:[#allocation5 + $0x4a4] ss:$8 sps:$4 sm:$0xff]   ;;  %v2973_v42 = vld [vmem:[#allocation5 + $0xa0] ss:$8 sps:$4 sm:$0xff]   ;;  %v2975_v44 = vld [vmem:[#allocation5 + $0xb4] ss:$8 sps:$4 sm:$0xff]  }
  0x59   :  { %2096 = vmatpush1.bf16.msra.mxu0 %v2932_v15  ;;  %1933 = vmatprep.subr.bf16.mxu1 %v2933_v16  ;;  %v2974_v43 = vld [vmem:[#allocation5 + $0x4a0] ss:$8 sps:$4 sm:$0xff]   ;;  %v2977_v45 = vld [vmem:[#allocation5 + $0x4b4] ss:$8 sps:$4 sm:$0xff]   ;;  %v2979_v47 = vld [vmem:[#allocation5 + $0xb0] ss:$8 sps:$4 sm:$0xff]  }
  0x5a   :  { %2097 = vmatprep.subr.bf16.mxu0 %v2935_v17  ;;  %v71_v46 = vld [vmem:[#allocation2 + $0x8] sm:$0xff]  ;;  %v2981_v51 = vld [vmem:[#allocation5 + $0xc4] ss:$8 sps:$4 sm:$0xff]   ;;  %v2985_v54 = vld [vmem:[#allocation5 + $0xc0] ss:$8 sps:$4 sm:$0xff]   ;;  %vm1918_vm0 = vcmask 1043456  }
  0x5b   :  { %v90_v48 = vpack.c.bf16 %v71_v46, %v71_v46  ;;  %v2980_v49 = vld [vmem:[#allocation5 + $0x4b0] ss:$8 sps:$4 sm:$0xff]   ;;  %v2983_v52 = vld [vmem:[#allocation5 + $0x4c4] ss:$8 sps:$4 sm:$0xff]   ;;  %v2986_v55 = vld [vmem:[#allocation5 + $0x4c0] ss:$8 sps:$4 sm:$0xff]  }
  0x5c   :  { %1934 = vmatpush1.bf16.msra.mxu1 %v2937_v18  ;;  %v79_v50 = vld [vmem:[#allocation2 + $0x48] sm:$0xff]  ;;  %v2993_v60 = vld [vmem:[#allocation5 + $0xe4] ss:$8 sps:$4 sm:$0xff]   ;;  %v2997_v62 = vld [vmem:[#allocation5 + $0xe0] ss:$8 sps:$4 sm:$0xff]   ;;  %vm1914_vm1 = vcmask 719872  }
  0x5d   :  { %2098 = vmatpush1.bf16.msra.mxu0 %v2938_v19  ;;  %1935 = vmatprep.subr.bf16.mxu1 %v2939_v20  ;;  %v98_v53 = vpack.c.bf16 %v79_v50, %v79_v50  ;;  %v2987_v56 = vld [vmem:[#allocation5 + $0xd4] ss:$8 sps:$4 sm:$0xff]   ;;  %v2991_v58 = vld [vmem:[#allocation5 + $0xd0] ss:$8 sps:$4 sm:$0xff]   ;;  %v2995_v61 = vld [vmem:[#allocation5 + $0x4e4] ss:$8 sps:$4 sm:$0xff]  }
  0x5e   :  { %2099 = vmatprep.subr.bf16.mxu0 %v2941_v21  ;;  %1957 = vmatprep.mubr.bf16.mxu1 %v90_v48  ;;  %v2989_v57 = vld [vmem:[#allocation5 + $0x4d4] ss:$8 sps:$4 sm:$0xff]   ;;  %v2992_v59 = vld [vmem:[#allocation5 + $0x4d0] ss:$8 sps:$4 sm:$0xff]   ;;  %v2998_v63 = vld [vmem:[#allocation5 + $0x4e0] ss:$8 sps:$4 sm:$0xff]  }
  0x5f   :  { %2121 = vmatprep.mubr.bf16.mxu0 %v98_v53  ;;  %v2999_v0 = vld [vmem:[#allocation5 + $0xf4] ss:$8 sps:$4 sm:$0xff]   ;;  %v3003_v2 = vld [vmem:[#allocation5 + $0xf0] ss:$8 sps:$4 sm:$0xff]   ;;  %v3007_v4 = vld [vmem:[#allocation5 + $0x104] ss:$8 sps:$4 sm:$0xff]  }
  0x60   :  { %1936 = vmatpush1.bf16.msra.mxu1 %v2943_v22  ;;  %v3001_v1 = vld [vmem:[#allocation5 + $0x4f4] ss:$8 sps:$4 sm:$0xff]   ;;  %v3004_v3 = vld [vmem:[#allocation5 + $0x4f0] ss:$8 sps:$4 sm:$0xff]   ;;  %v70_v5 = vld [vmem:[#allocation2] sm:$0xff]  ;;  %s3489_s3 = smov [#allocation10]  }
  0x61   :  { %2100 = vmatpush1.bf16.msra.mxu0 %v2944_v23  ;;  %1937 = vmatprep.subr.bf16.mxu1 %v2945_v24  ;;  %v78_v6 = vld [vmem:[#allocation2 + $0x40] sm:$0xff]  ;;  %v89_v10 = vpack.c.bf16 %v70_v5, %v70_v5  ;;  %v3013_v12 = vld [vmem:[#allocation5 + $0x114] ss:$8 sps:$4 sm:$0xff]   ;;  %v3011_v14 = vld [vmem:[#allocation5 + $0x110] ss:$8 sps:$4 sm:$0xff]   ;;  %s2488_s12 = sshll.u32 %s3489_s3, 4  ;;  %s2489_s12 = int_to_ptr.vmem [resolvable:$true] %s2488_s12 }
  0x62   :  { %2101 = vmatprep.subr.bf16.mxu0 %v2947_v25  ;;  %v3010_v7 = vld [vmem:[#allocation5 + $0x504] ss:$8 sps:$4 sm:$0xff]   ;;  %v3005_v8 = vld [vmem:[#allocation5 + $0x100] ss:$8 sps:$4 sm:$0xff]   ;;  %v97_v11 = vpack.c.bf16 %v78_v6, %v78_v6  ;;  %v3016_v13 = vld [vmem:[#allocation5 + $0x514] ss:$8 sps:$4 sm:$0xff]   ;;  %p3455_p5 = scmp.lt.s32.totalorder %s2489_s12, %s2489_s12 }
  0x63   :  { %v3008_v9 = vld [vmem:[#allocation5 + $0x500] ss:$8 sps:$4 sm:$0xff]   ;;  %v3014_v15 = vld [vmem:[#allocation5 + $0x510] ss:$8 sps:$4 sm:$0xff]   ;;  %v3019_v16 = vld [vmem:[#allocation5 + $0x124] ss:$8 sps:$4 sm:$0xff]  }
  0x64   :  { %1938 = vmatpush1.bf16.msra.mxu1 %v2949_v26  ;;  %v3022_v17 = vld [vmem:[#allocation5 + $0x524] ss:$8 sps:$4 sm:$0xff]   ;;  %v3017_v18 = vld [vmem:[#allocation5 + $0x120] ss:$8 sps:$4 sm:$0xff]   ;;  %v3025_v20 = vld [vmem:[#allocation5 + $0x134] ss:$8 sps:$4 sm:$0xff]  }
  0x65   :  { %2102 = vmatpush1.bf16.msra.mxu0 %v2950_v27  ;;  %1939 = vmatprep.subr.bf16.mxu1 %v2951_v28  ;;  %v3020_v19 = vld [vmem:[#allocation5 + $0x520] ss:$8 sps:$4 sm:$0xff]   ;;  %v3028_v21 = vld [vmem:[#allocation5 + $0x534] ss:$8 sps:$4 sm:$0xff]   ;;  %v3023_v22 = vld [vmem:[#allocation5 + $0x130] ss:$8 sps:$4 sm:$0xff]  }
  0x66   :  { %2103 = vmatprep.subr.bf16.mxu0 %v2953_v29  ;;  %v3026_v23 = vld [vmem:[#allocation5 + $0x530] ss:$8 sps:$4 sm:$0xff]   ;;  %v3031_v24 = vld [vmem:[#allocation5 + $0x144] ss:$8 sps:$4 sm:$0xff]   ;;  %v3029_v26 = vld [vmem:[#allocation5 + $0x140] ss:$8 sps:$4 sm:$0xff]  }
  0x67   :  { %v3034_v25 = vld [vmem:[#allocation5 + $0x544] ss:$8 sps:$4 sm:$0xff]   ;;  %v3032_v27 = vld [vmem:[#allocation5 + $0x540] ss:$8 sps:$4 sm:$0xff]   ;;  %v3037_v28 = vld [vmem:[#allocation5 + $0x154] ss:$8 sps:$4 sm:$0xff]  }
  0x68   :  { %1940 = vmatpush1.bf16.msra.mxu1 %v2955_v30  ;;  %v3040_v29 = vld [vmem:[#allocation5 + $0x554] ss:$8 sps:$4 sm:$0xff]   ;;  %v3035_v30 = vld [vmem:[#allocation5 + $0x150] ss:$8 sps:$4 sm:$0xff]   ;;  %v3053_v46 = vld [vmem:[#allocation5 + $0x180] ss:$8 sps:$4 sm:$0xff]  }
  0x69   :  { %2104 = vmatpush1.bf16.msra.mxu0 %v2956_v31  ;;  %1941 = vmatprep.subr.bf16.mxu1 %v2957_v32  ;;  %v3038_v31 = vld [vmem:[#allocation5 + $0x550] ss:$8 sps:$4 sm:$0xff]   ;;  %v3043_v32 = vld [vmem:[#allocation5 + $0x164] ss:$8 sps:$4 sm:$0xff]   ;;  %v3061_v48 = vld [vmem:[#allocation5 + $0x194] ss:$8 sps:$4 sm:$0xff]  }
  0x6a   :  { %2105 = vmatprep.subr.bf16.mxu0 %v2959_v33  ;;  %v3046_v33 = vld [vmem:[#allocation5 + $0x564] ss:$8 sps:$4 sm:$0xff]   ;;  %v3059_v50 = vld [vmem:[#allocation5 + $0x190] ss:$8 sps:$4 sm:$0xff]   ;;  %v3089_v6 = vld [vmem:[#allocation5 + $0x1e0] ss:$8 sps:$4 sm:$0xff]  }
  0x6b   :  { %v3070_v53 = vld [vmem:[#allocation5 + $0x5a4] ss:$8 sps:$4 sm:$0xff]   ;;  %s3450_s13 = scalar_lea.vmem %s2489_s12, 256 }
  0x6c   :  { %1942 = vmatpush1.bf16.msra.mxu1 %v2961_v34  ;;  %v73_v34 = vld [vmem:[#allocation2 + $0x18] sm:$0xff]  ;;  %p3451_p4 = scmp.ne.s32.totalorder %s2489_s12, %s3450_s13  ;;  %p3456_p6 = scmp.lt.s32.totalorder %s3450_s13, %s3450_s13 }
  0x6d   :  { %2106 = vmatpush1.bf16.msra.mxu0 %v2962_v35  ;;  %1943 = vmatprep.subr.bf16.mxu1 %v2963_v36  ;;  %v3041_v35 = vld [vmem:[#allocation5 + $0x160] ss:$8 sps:$4 sm:$0xff]   ;;  %v92_v36 = vpack.c.bf16 %v73_v34, %v73_v34  ;;  %v3094_v5 = vld [vmem:[#allocation5 + $0x5e4] ss:$8 sps:$4 sm:$0xff]   ;;  %v3119_v34 = vld [vmem:[#allocation5 + $0x230] ss:$8 sps:$4 sm:$0xff]  }
  0x6e   :  { %2107 = vmatprep.subr.bf16.mxu0 %v2965_v37  ;;  %v3044_v37 = vld [vmem:[#allocation5 + $0x560] ss:$8 sps:$4 sm:$0xff]   ;;  %p3457_p7 = por %p3456_p6, %p3455_p5 }
  0x70   :  { %1944 = vmatpush1.bf16.msra.mxu1 %v2967_v38  ;;  %v81_v38 = vld [vmem:[#allocation2 + $0x58] sm:$0xff]  ;;  %p3458_p8 = pnand %p3457_p7, %p3451_p4 }
  0x71   :  { %2108 = vmatpush1.bf16.msra.mxu0 %v2968_v39  ;;  %1945 = vmatprep.subr.bf16.mxu1 %v2969_v40  ;;  %v3049_v39 = vld [vmem:[#allocation5 + $0x174] ss:$8 sps:$4 sm:$0xff]  }
  0x72   :  { %2109 = vmatprep.subr.bf16.mxu0 %v2971_v41  ;;  %v3052_v40 = vld [vmem:[#allocation5 + $0x574] ss:$8 sps:$4 sm:$0xff]   ;;  %v100_v41 = vpack.c.bf16 %v81_v38, %v81_v38  ;;  %v3125_v38 = vld [vmem:[#allocation5 + $0x240] ss:$8 sps:$4 sm:$0xff]  }
  0x74   :  { %1946 = vmatpush1.bf16.msra.mxu1 %v2973_v42  ;;  %v3047_v42 = vld [vmem:[#allocation5 + $0x170] ss:$8 sps:$4 sm:$0xff]  }
  0x75   :  { %2110 = vmatpush1.bf16.msra.mxu0 %v2974_v43  ;;  %1947 = vmatprep.subr.bf16.mxu1 %v2975_v44  ;;  %v3050_v43 = vld [vmem:[#allocation5 + $0x570] ss:$8 sps:$4 sm:$0xff]   ;;  %v3055_v44 = vld [vmem:[#allocation5 + $0x184] ss:$8 sps:$4 sm:$0xff]  }
  0x76   :  { %2111 = vmatprep.subr.bf16.mxu0 %v2977_v45  ;;  %v3058_v45 = vld [vmem:[#allocation5 + $0x584] ss:$8 sps:$4 sm:$0xff]  }
  0x78   :  { %1948 = vmatpush1.bf16.msra.mxu1 %v2979_v47  ;;  %v3056_v47 = vld [vmem:[#allocation5 + $0x580] ss:$8 sps:$4 sm:$0xff]  }
  0x79   :  { %2112 = vmatpush1.bf16.msra.mxu0 %v2980_v49  ;;  %1949 = vmatprep.subr.bf16.mxu1 %v2981_v51  ;;  %v3064_v49 = vld [vmem:[#allocation5 + $0x594] ss:$8 sps:$4 sm:$0xff]   ;;  %v3062_v51 = vld [vmem:[#allocation5 + $0x590] ss:$8 sps:$4 sm:$0xff]  }
  0x7a   :  { %2113 = vmatprep.subr.bf16.mxu0 %v2983_v52  ;;  %v3067_v52 = vld [vmem:[#allocation5 + $0x1a4] ss:$8 sps:$4 sm:$0xff]  }
  0x7c   :  { %1950 = vmatpush1.bf16.msra.mxu1 %v2985_v54  ;;  %v3065_v54 = vld [vmem:[#allocation5 + $0x1a0] ss:$8 sps:$4 sm:$0xff]  }
  0x7d   :  { %2114 = vmatpush1.bf16.msra.mxu0 %v2986_v55  ;;  %1951 = vmatprep.subr.bf16.mxu1 %v2987_v56  ;;  %v3068_v55 = vld [vmem:[#allocation5 + $0x5a0] ss:$8 sps:$4 sm:$0xff]   ;;  %v3073_v56 = vld [vmem:[#allocation5 + $0x1b4] ss:$8 sps:$4 sm:$0xff]  }
  0x7e   :  { %2115 = vmatprep.subr.bf16.mxu0 %v2989_v57  ;;  %v3076_v57 = vld [vmem:[#allocation5 + $0x5b4] ss:$8 sps:$4 sm:$0xff]  }
  0x80   :  { %1952 = vmatpush1.bf16.msra.mxu1 %v2991_v58  ;;  %v3071_v58 = vld [vmem:[#allocation5 + $0x1b0] ss:$8 sps:$4 sm:$0xff]  }
  0x81   :  { %2116 = vmatpush1.bf16.msra.mxu0 %v2992_v59  ;;  %1953 = vmatprep.subr.bf16.mxu1 %v2993_v60  ;;  %v3074_v59 = vld [vmem:[#allocation5 + $0x5b0] ss:$8 sps:$4 sm:$0xff]   ;;  %v3079_v60 = vld [vmem:[#allocation5 + $0x1c4] ss:$8 sps:$4 sm:$0xff]  }
  0x82   :  { %2117 = vmatprep.subr.bf16.mxu0 %v2995_v61  ;;  %v3082_v61 = vld [vmem:[#allocation5 + $0x5c4] ss:$8 sps:$4 sm:$0xff]  }
  0x84   :  { %1954 = vmatpush1.bf16.msra.mxu1 %v2997_v62  ;;  %v3077_v62 = vld [vmem:[#allocation5 + $0x1c0] ss:$8 sps:$4 sm:$0xff]  }
  0x85   :  { %2118 = vmatpush1.bf16.msra.mxu0 %v2998_v63  ;;  %1955 = vmatprep.subr.bf16.mxu1 %v2999_v0  ;;  %v3080_v63 = vld [vmem:[#allocation5 + $0x5c0] ss:$8 sps:$4 sm:$0xff]   ;;  %v3085_v0 = vld [vmem:[#allocation5 + $0x1d4] ss:$8 sps:$4 sm:$0xff]  }
  0x86   :  { %2119 = vmatprep.subr.bf16.mxu0 %v3001_v1  ;;  %v3088_v1 = vld [vmem:[#allocation5 + $0x5d4] ss:$8 sps:$4 sm:$0xff]  }
  0x88   :  { %1956 = vmatpush1.bf16.msra.mxu1 %v3003_v2  ;;  %v3083_v2 = vld [vmem:[#allocation5 + $0x1d0] ss:$8 sps:$4 sm:$0xff]  }
  0x89   :  { %2120 = vmatpush1.bf16.msra.mxu0 %v3004_v3  ;;  %1966 = vmatprep.subr.bf16.mxu1 %v3007_v4  ;;  %v3086_v3 = vld [vmem:[#allocation5 + $0x5d0] ss:$8 sps:$4 sm:$0xff]   ;;  %v3091_v4 = vld [vmem:[#allocation5 + $0x1e4] ss:$8 sps:$4 sm:$0xff]  }
  0x8a   :  { %2130 = vmatprep.subr.bf16.mxu0 %v3010_v7  ;;  %v3092_v7 = vld [vmem:[#allocation5 + $0x5e0] ss:$8 sps:$4 sm:$0xff]  }
  0x8b   :  { %1958 = vmatmul.mubr.bf16.vlgmr.msra.gmra.mrb[0].mxu1 %v89_v10  ;;  %v3095_v10 = vld [vmem:[#allocation5 + $0x1f0] ss:$8 sps:$4 sm:$0xff]  }
  0x8c   :  { %2122 = vmatmul.mubr.bf16.vlgmr.msra.gmra.mrb[0].mxu0 %v97_v11  ;;  %1967 = vmatpush1.bf16.msra.mxu1 %v3005_v8  ;;  %v3097_v8 = vld [vmem:[#allocation5 + $0x1f4] ss:$8 sps:$4 sm:$0xff]   ;;  %v3098_v11 = vld [vmem:[#allocation5 + $0x5f0] ss:$8 sps:$4 sm:$0xff]  }
  0x8d   :  { %2131 = vmatpush1.bf16.msra.mxu0 %v3008_v9  ;;  %1968 = vmatprep.subr.bf16.mxu1 %v3013_v12  ;;  %v3100_v9 = vld [vmem:[#allocation5 + $0x5f4] ss:$8 sps:$4 sm:$0xff]   ;;  %v3103_v12 = vld [vmem:[#allocation5 + $0x204] ss:$8 sps:$4 sm:$0xff]  }
  0x8e   :  { %2132 = vmatprep.subr.bf16.mxu0 %v3016_v13  ;;  %1998 = vmatprep.mubr.bf16.mxu1 %v92_v36  ;;  %v72_v13 = vld [vmem:[#allocation2 + $0x10] sm:$0xff]  ;;  %v3127_v36 = vld [vmem:[#allocation5 + $0x244] ss:$8 sps:$4 sm:$0xff]  }
  0x8f   :  { %2162 = vmatprep.mubr.bf16.mxu0 %v100_v41  ;;  %v3136_v41 = vld [vmem:[#allocation5 + $0x654] ss:$8 sps:$4 sm:$0xff]  }
  0x90   :  { %1969 = vmatpush1.bf16.msra.mxu1 %v3011_v14  ;;  %v80_v14 = vld [vmem:[#allocation2 + $0x50] sm:$0xff] }
  0x91   :  { %2133 = vmatpush1.bf16.msra.mxu0 %v3014_v15  ;;  %1970 = vmatprep.subr.bf16.mxu1 %v3019_v16  ;;  %v3106_v15 = vld [vmem:[#allocation5 + $0x604] ss:$8 sps:$4 sm:$0xff]   ;;  %v3101_v16 = vld [vmem:[#allocation5 + $0x200] ss:$8 sps:$4 sm:$0xff]  }
  0x92   :  { %2134 = vmatprep.subr.bf16.mxu0 %v3022_v17  ;;  %v3104_v17 = vld [vmem:[#allocation5 + $0x600] ss:$8 sps:$4 sm:$0xff]  }
  0x94   :  { %1971 = vmatpush1.bf16.msra.mxu1 %v3017_v18  ;;  %v91_v18 = vpack.c.bf16 %v72_v13, %v72_v13  ;;  %v3190_v13 = vld [vmem:[#allocation5 + $0x6e4] ss:$8 sps:$4 sm:$0xff]  }
  0x95   :  { %2135 = vmatpush1.bf16.msra.mxu0 %v3020_v19  ;;  %1972 = vmatprep.subr.bf16.mxu1 %v3025_v20  ;;  %v99_v19 = vpack.c.bf16 %v80_v14, %v80_v14  ;;  %v3109_v20 = vld [vmem:[#allocation5 + $0x214] ss:$8 sps:$4 sm:$0xff]   ;;  %v3185_v14 = vld [vmem:[#allocation5 + $0x2e0] ss:$8 sps:$4 sm:$0xff]  }
  0x96   :  { %2136 = vmatprep.subr.bf16.mxu0 %v3028_v21  ;;  %v3112_v21 = vld [vmem:[#allocation5 + $0x614] ss:$8 sps:$4 sm:$0xff]  }
  0x98   :  { %1973 = vmatpush1.bf16.msra.mxu1 %v3023_v22  ;;  %v75_v22 = vld [vmem:[#allocation2 + $0x28] sm:$0xff] }
  0x99   :  { %2137 = vmatpush1.bf16.msra.mxu0 %v3026_v23  ;;  %1974 = vmatprep.subr.bf16.mxu1 %v3031_v24  ;;  %v3107_v23 = vld [vmem:[#allocation5 + $0x210] ss:$8 sps:$4 sm:$0xff]   ;;  %v94_v24 = vpack.c.bf16 %v75_v22, %v75_v22  ;;  %v82_v22 = vld [vmem:[#allocation2 + $0x60] sm:$0xff] }
  0x9a   :  { %2138 = vmatprep.subr.bf16.mxu0 %v3034_v25  ;;  %v3110_v25 = vld [vmem:[#allocation5 + $0x610] ss:$8 sps:$4 sm:$0xff]  }
  0x9c   :  { %1975 = vmatpush1.bf16.msra.mxu1 %v3029_v26  ;;  %v83_v26 = vld [vmem:[#allocation2 + $0x68] sm:$0xff] }
  0x9d   :  { %2139 = vmatpush1.bf16.msra.mxu0 %v3032_v27  ;;  %1976 = vmatprep.subr.bf16.mxu1 %v3037_v28  ;;  %v3115_v27 = vld [vmem:[#allocation5 + $0x224] ss:$8 sps:$4 sm:$0xff]  }
  0x9e   :  { %2140 = vmatprep.subr.bf16.mxu0 %v3040_v29  ;;  %v3118_v28 = vld [vmem:[#allocation5 + $0x624] ss:$8 sps:$4 sm:$0xff]   ;;  %v102_v29 = vpack.c.bf16 %v83_v26, %v83_v26 }
  0xa0   :  { %1977 = vmatpush1.bf16.msra.mxu1 %v3035_v30  ;;  %v3113_v30 = vld [vmem:[#allocation5 + $0x220] ss:$8 sps:$4 sm:$0xff]  }
  0xa1   :  { %2141 = vmatpush1.bf16.msra.mxu0 %v3038_v31  ;;  %1978 = vmatprep.subr.bf16.mxu1 %v3043_v32  ;;  %v3116_v31 = vld [vmem:[#allocation5 + $0x620] ss:$8 sps:$4 sm:$0xff]   ;;  %v3121_v32 = vld [vmem:[#allocation5 + $0x234] ss:$8 sps:$4 sm:$0xff]  }
  0xa2   :  { %2142 = vmatprep.subr.bf16.mxu0 %v3046_v33  ;;  %v3124_v33 = vld [vmem:[#allocation5 + $0x634] ss:$8 sps:$4 sm:$0xff]  }
  0xa4   :  { %1979 = vmatpush1.bf16.msra.mxu1 %v3041_v35  ;;  %v3122_v35 = vld [vmem:[#allocation5 + $0x630] ss:$8 sps:$4 sm:$0xff]  }
  0xa5   :  { %2143 = vmatpush1.bf16.msra.mxu0 %v3044_v37  ;;  %1980 = vmatprep.subr.bf16.mxu1 %v3049_v39  ;;  %v3130_v37 = vld [vmem:[#allocation5 + $0x644] ss:$8 sps:$4 sm:$0xff]   ;;  %v3128_v39 = vld [vmem:[#allocation5 + $0x640] ss:$8 sps:$4 sm:$0xff]  }
  0xa6   :  { %2144 = vmatprep.subr.bf16.mxu0 %v3052_v40  ;;  %v3133_v40 = vld [vmem:[#allocation5 + $0x254] ss:$8 sps:$4 sm:$0xff]  }
  0xa8   :  { %1981 = vmatpush1.bf16.msra.mxu1 %v3047_v42  ;;  %v3131_v42 = vld [vmem:[#allocation5 + $0x250] ss:$8 sps:$4 sm:$0xff]  }
  0xa9   :  { %2145 = vmatpush1.bf16.msra.mxu0 %v3050_v43  ;;  %1982 = vmatprep.subr.bf16.mxu1 %v3055_v44  ;;  %v3134_v43 = vld [vmem:[#allocation5 + $0x650] ss:$8 sps:$4 sm:$0xff]   ;;  %v3139_v44 = vld [vmem:[#allocation5 + $0x264] ss:$8 sps:$4 sm:$0xff]  }
  0xaa   :  { %2146 = vmatprep.subr.bf16.mxu0 %v3058_v45  ;;  %v3142_v45 = vld [vmem:[#allocation5 + $0x664] ss:$8 sps:$4 sm:$0xff]  }
  0xac   :  { %1983 = vmatpush1.bf16.msra.mxu1 %v3053_v46  ;;  %v3137_v46 = vld [vmem:[#allocation5 + $0x260] ss:$8 sps:$4 sm:$0xff]  }
  0xad   :  { %2147 = vmatpush1.bf16.msra.mxu0 %v3056_v47  ;;  %1984 = vmatprep.subr.bf16.mxu1 %v3061_v48  ;;  %v3140_v47 = vld [vmem:[#allocation5 + $0x660] ss:$8 sps:$4 sm:$0xff]   ;;  %v3145_v48 = vld [vmem:[#allocation5 + $0x274] ss:$8 sps:$4 sm:$0xff]  }
  0xae   :  { %2148 = vmatprep.subr.bf16.mxu0 %v3064_v49  ;;  %v3148_v49 = vld [vmem:[#allocation5 + $0x674] ss:$8 sps:$4 sm:$0xff]  }
  0xb0   :  { %1985 = vmatpush1.bf16.msra.mxu1 %v3059_v50  ;;  %v3143_v50 = vld [vmem:[#allocation5 + $0x270] ss:$8 sps:$4 sm:$0xff]  }
  0xb1   :  { %2149 = vmatpush1.bf16.msra.mxu0 %v3062_v51  ;;  %1986 = vmatprep.subr.bf16.mxu1 %v3067_v52  ;;  %v3146_v51 = vld [vmem:[#allocation5 + $0x670] ss:$8 sps:$4 sm:$0xff]   ;;  %v3151_v52 = vld [vmem:[#allocation5 + $0x284] ss:$8 sps:$4 sm:$0xff]  }
  0xb2   :  { %2150 = vmatprep.subr.bf16.mxu0 %v3070_v53  ;;  %v3154_v53 = vld [vmem:[#allocation5 + $0x684] ss:$8 sps:$4 sm:$0xff]  }
  0xb4   :  { %1987 = vmatpush1.bf16.msra.mxu1 %v3065_v54  ;;  %v3149_v54 = vld [vmem:[#allocation5 + $0x280] ss:$8 sps:$4 sm:$0xff]  }
  0xb5   :  { %2151 = vmatpush1.bf16.msra.mxu0 %v3068_v55  ;;  %1988 = vmatprep.subr.bf16.mxu1 %v3073_v56  ;;  %v3152_v55 = vld [vmem:[#allocation5 + $0x680] ss:$8 sps:$4 sm:$0xff]   ;;  %v3157_v56 = vld [vmem:[#allocation5 + $0x294] ss:$8 sps:$4 sm:$0xff]  }
  0xb6   :  { %2152 = vmatprep.subr.bf16.mxu0 %v3076_v57  ;;  %v3160_v57 = vld [vmem:[#allocation5 + $0x694] ss:$8 sps:$4 sm:$0xff]  }
  0xb8   :  { %1989 = vmatpush1.bf16.msra.mxu1 %v3071_v58  ;;  %v3155_v58 = vld [vmem:[#allocation5 + $0x290] ss:$8 sps:$4 sm:$0xff]  }
  0xb9   :  { %2153 = vmatpush1.bf16.msra.mxu0 %v3074_v59  ;;  %1990 = vmatprep.subr.bf16.mxu1 %v3079_v60  ;;  %v3158_v59 = vld [vmem:[#allocation5 + $0x690] ss:$8 sps:$4 sm:$0xff]   ;;  %v3163_v60 = vld [vmem:[#allocation5 + $0x2a4] ss:$8 sps:$4 sm:$0xff]  }
  0xba   :  { %2154 = vmatprep.subr.bf16.mxu0 %v3082_v61  ;;  %v3166_v61 = vld [vmem:[#allocation5 + $0x6a4] ss:$8 sps:$4 sm:$0xff]  }
  0xbc   :  { %1991 = vmatpush1.bf16.msra.mxu1 %v3077_v62  ;;  %v3161_v62 = vld [vmem:[#allocation5 + $0x2a0] ss:$8 sps:$4 sm:$0xff]  }
  0xbd   :  { %2155 = vmatpush1.bf16.msra.mxu0 %v3080_v63  ;;  %1992 = vmatprep.subr.bf16.mxu1 %v3085_v0  ;;  %v3164_v63 = vld [vmem:[#allocation5 + $0x6a0] ss:$8 sps:$4 sm:$0xff]   ;;  %v3169_v0 = vld [vmem:[#allocation5 + $0x2b4] ss:$8 sps:$4 sm:$0xff]  }
  0xbe   :  { %2156 = vmatprep.subr.bf16.mxu0 %v3088_v1  ;;  %v3172_v1 = vld [vmem:[#allocation5 + $0x6b4] ss:$8 sps:$4 sm:$0xff]  }
  0xc0   :  { %1993 = vmatpush1.bf16.msra.mxu1 %v3083_v2  ;;  %v3167_v2 = vld [vmem:[#allocation5 + $0x2b0] ss:$8 sps:$4 sm:$0xff]  }
  0xc1   :  { %2157 = vmatpush1.bf16.msra.mxu0 %v3086_v3  ;;  %1994 = vmatprep.subr.bf16.mxu1 %v3091_v4  ;;  %v3170_v3 = vld [vmem:[#allocation5 + $0x6b0] ss:$8 sps:$4 sm:$0xff]   ;;  %v3175_v4 = vld [vmem:[#allocation5 + $0x2c4] ss:$8 sps:$4 sm:$0xff]  }
  0xc2   :  { %2158 = vmatprep.subr.bf16.mxu0 %v3094_v5  ;;  %v3178_v5 = vld [vmem:[#allocation5 + $0x6c4] ss:$8 sps:$4 sm:$0xff]  }
  0xc4   :  { %1995 = vmatpush1.bf16.msra.mxu1 %v3089_v6  ;;  %v3173_v6 = vld [vmem:[#allocation5 + $0x2c0] ss:$8 sps:$4 sm:$0xff]  }
  0xc5   :  { %2159 = vmatpush1.bf16.msra.mxu0 %v3092_v7  ;;  %1996 = vmatprep.subr.bf16.mxu1 %v3097_v8  ;;  %v3176_v7 = vld [vmem:[#allocation5 + $0x6c0] ss:$8 sps:$4 sm:$0xff]   ;;  %v3181_v8 = vld [vmem:[#allocation5 + $0x2d4] ss:$8 sps:$4 sm:$0xff]  }
  0xc6   :  { %2160 = vmatprep.subr.bf16.mxu0 %v3100_v9  ;;  %v3184_v9 = vld [vmem:[#allocation5 + $0x6d4] ss:$8 sps:$4 sm:$0xff]  }
  0xc8   :  { %1997 = vmatpush1.bf16.msra.mxu1 %v3095_v10  ;;  %v3179_v10 = vld [vmem:[#allocation5 + $0x2d0] ss:$8 sps:$4 sm:$0xff]  }
  0xc9   :  { %2161 = vmatpush1.bf16.msra.mxu0 %v3098_v11  ;;  %2007 = vmatprep.subr.bf16.mxu1 %v3103_v12  ;;  %v3182_v11 = vld [vmem:[#allocation5 + $0x6d0] ss:$8 sps:$4 sm:$0xff]   ;;  %v3187_v12 = vld [vmem:[#allocation5 + $0x2e4] ss:$8 sps:$4 sm:$0xff]  }
  0xca   :  { %2171 = vmatprep.subr.bf16.mxu0 %v3106_v15  ;;  %v3188_v15 = vld [vmem:[#allocation5 + $0x6e0] ss:$8 sps:$4 sm:$0xff]  }
  0xcb   :  { %1999 = vmatmul.mubr.bf16.vlgmr.msra.gmra.mrb[0].mxu1 %v91_v18  ;;  %v3191_v18 = vld [vmem:[#allocation5 + $0x2f0] ss:$8 sps:$4 sm:$0xff]  }
  0xcc   :  { %2163 = vmatmul.mubr.bf16.vlgmr.msra.gmra.mrb[0].mxu0 %v99_v19  ;;  %2008 = vmatpush1.bf16.msra.mxu1 %v3101_v16  ;;  %v3193_v16 = vld [vmem:[#allocation5 + $0x2f4] ss:$8 sps:$4 sm:$0xff]   ;;  %v3194_v19 = vld [vmem:[#allocation5 + $0x6f0] ss:$8 sps:$4 sm:$0xff]  }
  0xcd   :  { %2172 = vmatpush1.bf16.msra.mxu0 %v3104_v17  ;;  %2009 = vmatprep.subr.bf16.mxu1 %v3109_v20  ;;  %v3196_v17 = vld [vmem:[#allocation5 + $0x6f4] ss:$8 sps:$4 sm:$0xff]   ;;  %v3199_v20 = vld [vmem:[#allocation5 + $0x304] ss:$8 sps:$4 sm:$0xff]  }
  0xce   :  { %2173 = vmatprep.subr.bf16.mxu0 %v3112_v21  ;;  %2039 = vmatprep.mubr.bf16.mxu1 %v94_v24  ;;  %v74_v21 = vld [vmem:[#allocation2 + $0x20] sm:$0xff] }
  0xcf   :  { %2203 = vmatprep.mubr.bf16.mxu0 %v102_v29  ;;  %v3197_v24 = vld [vmem:[#allocation5 + $0x300] ss:$8 sps:$4 sm:$0xff]   ;;  %v93_v26 = vpack.c.bf16 %v74_v21, %v74_v21  ;;  %v3286_v21 = vld [vmem:[#allocation5 + $0x7e4] ss:$8 sps:$4 sm:$0xff]  }
  0xd0   :  { %2010 = vmatpush1.bf16.msra.mxu1 %v3107_v23  ;;  %v3202_v23 = vld [vmem:[#allocation5 + $0x704] ss:$8 sps:$4 sm:$0xff]  }
  0xd1   :  { %2174 = vmatpush1.bf16.msra.mxu0 %v3110_v25  ;;  %2011 = vmatprep.subr.bf16.mxu1 %v3115_v27  ;;  %v3200_v25 = vld [vmem:[#allocation5 + $0x700] ss:$8 sps:$4 sm:$0xff]   ;;  %v101_v27 = vpack.c.bf16 %v82_v22, %v82_v22 }
  0xd2   :  { %2175 = vmatprep.subr.bf16.mxu0 %v3118_v28  ;;  %v77_v28 = vld [vmem:[#allocation2 + $0x38] sm:$0xff] }
  0xd3   :  { %v85_v29 = vld [vmem:[#allocation2 + $0x78] sm:$0xff] }
  0xd4   :  { %2012 = vmatpush1.bf16.msra.mxu1 %v3113_v30  ;;  %v3205_v30 = vld [vmem:[#allocation5 + $0x314] ss:$8 sps:$4 sm:$0xff]   ;;  %v3281_v22 = vld [vmem:[#allocation5 + $0x3e0] ss:$8 sps:$4 sm:$0xff]  }
  0xd5   :  { %2176 = vmatpush1.bf16.msra.mxu0 %v3116_v31  ;;  %2013 = vmatprep.subr.bf16.mxu1 %v3121_v32  ;;  %v3208_v31 = vld [vmem:[#allocation5 + $0x714] ss:$8 sps:$4 sm:$0xff]   ;;  %v96_v32 = vpack.c.bf16 %v77_v28, %v77_v28 }
  0xd6   :  { %2177 = vmatprep.subr.bf16.mxu0 %v3124_v33  ;;  %v104_v33 = vpack.c.bf16 %v85_v29, %v85_v29  ;;  %v76_v28 = vld [vmem:[#allocation2 + $0x30] sm:$0xff] }
  0xd7   :  { %v84_v29 = vld [vmem:[#allocation2 + $0x70] sm:$0xff] }
  0xd8   :  { %2014 = vmatpush1.bf16.msra.mxu1 %v3119_v34  ;;  %v3203_v34 = vld [vmem:[#allocation5 + $0x310] ss:$8 sps:$4 sm:$0xff]  }
  0xd9   :  { %2178 = vmatpush1.bf16.msra.mxu0 %v3122_v35  ;;  %2015 = vmatprep.subr.bf16.mxu1 %v3127_v36  ;;  %v3206_v35 = vld [vmem:[#allocation5 + $0x710] ss:$8 sps:$4 sm:$0xff]   ;;  %v3211_v36 = vld [vmem:[#allocation5 + $0x324] ss:$8 sps:$4 sm:$0xff]  }
  0xda   :  { %2179 = vmatprep.subr.bf16.mxu0 %v3130_v37  ;;  %v3214_v37 = vld [vmem:[#allocation5 + $0x724] ss:$8 sps:$4 sm:$0xff]  }
  0xdc   :  { %2016 = vmatpush1.bf16.msra.mxu1 %v3125_v38  ;;  %v3209_v38 = vld [vmem:[#allocation5 + $0x320] ss:$8 sps:$4 sm:$0xff]  }
  0xdd   :  { %2180 = vmatpush1.bf16.msra.mxu0 %v3128_v39  ;;  %2017 = vmatprep.subr.bf16.mxu1 %v3133_v40  ;;  %v3212_v39 = vld [vmem:[#allocation5 + $0x720] ss:$8 sps:$4 sm:$0xff]   ;;  %v3217_v40 = vld [vmem:[#allocation5 + $0x334] ss:$8 sps:$4 sm:$0xff]  }
  0xde   :  { %2181 = vmatprep.subr.bf16.mxu0 %v3136_v41  ;;  %v3220_v41 = vld [vmem:[#allocation5 + $0x734] ss:$8 sps:$4 sm:$0xff]  }
  0xe0   :  { %2018 = vmatpush1.bf16.msra.mxu1 %v3131_v42  ;;  %v3215_v42 = vld [vmem:[#allocation5 + $0x330] ss:$8 sps:$4 sm:$0xff]  }
  0xe1   :  { %2182 = vmatpush1.bf16.msra.mxu0 %v3134_v43  ;;  %2019 = vmatprep.subr.bf16.mxu1 %v3139_v44  ;;  %v3218_v43 = vld [vmem:[#allocation5 + $0x730] ss:$8 sps:$4 sm:$0xff]   ;;  %v3223_v44 = vld [vmem:[#allocation5 + $0x344] ss:$8 sps:$4 sm:$0xff]  }
  0xe2   :  { %2183 = vmatprep.subr.bf16.mxu0 %v3142_v45  ;;  %v3226_v45 = vld [vmem:[#allocation5 + $0x744] ss:$8 sps:$4 sm:$0xff]  }
  0xe4   :  { %2020 = vmatpush1.bf16.msra.mxu1 %v3137_v46  ;;  %v3221_v46 = vld [vmem:[#allocation5 + $0x340] ss:$8 sps:$4 sm:$0xff]  }
  0xe5   :  { %2184 = vmatpush1.bf16.msra.mxu0 %v3140_v47  ;;  %2021 = vmatprep.subr.bf16.mxu1 %v3145_v48  ;;  %v3224_v47 = vld [vmem:[#allocation5 + $0x740] ss:$8 sps:$4 sm:$0xff]   ;;  %v3229_v48 = vld [vmem:[#allocation5 + $0x354] ss:$8 sps:$4 sm:$0xff]  }
  0xe6   :  { %2185 = vmatprep.subr.bf16.mxu0 %v3148_v49  ;;  %v3232_v49 = vld [vmem:[#allocation5 + $0x754] ss:$8 sps:$4 sm:$0xff]  }
  0xe8   :  { %2022 = vmatpush1.bf16.msra.mxu1 %v3143_v50  ;;  %v3227_v50 = vld [vmem:[#allocation5 + $0x350] ss:$8 sps:$4 sm:$0xff]  }
  0xe9   :  { %2186 = vmatpush1.bf16.msra.mxu0 %v3146_v51  ;;  %2023 = vmatprep.subr.bf16.mxu1 %v3151_v52  ;;  %v3230_v51 = vld [vmem:[#allocation5 + $0x750] ss:$8 sps:$4 sm:$0xff]   ;;  %v3235_v52 = vld [vmem:[#allocation5 + $0x364] ss:$8 sps:$4 sm:$0xff]  }
  0xea   :  { %2187 = vmatprep.subr.bf16.mxu0 %v3154_v53  ;;  %v3238_v53 = vld [vmem:[#allocation5 + $0x764] ss:$8 sps:$4 sm:$0xff]  }
  0xec   :  { %2024 = vmatpush1.bf16.msra.mxu1 %v3149_v54  ;;  %v3233_v54 = vld [vmem:[#allocation5 + $0x360] ss:$8 sps:$4 sm:$0xff]  }
  0xed   :  { %2188 = vmatpush1.bf16.msra.mxu0 %v3152_v55  ;;  %2025 = vmatprep.subr.bf16.mxu1 %v3157_v56  ;;  %v3236_v55 = vld [vmem:[#allocation5 + $0x760] ss:$8 sps:$4 sm:$0xff]   ;;  %v3241_v56 = vld [vmem:[#allocation5 + $0x374] ss:$8 sps:$4 sm:$0xff]  }
  0xee   :  { %2189 = vmatprep.subr.bf16.mxu0 %v3160_v57  ;;  %v3244_v57 = vld [vmem:[#allocation5 + $0x774] ss:$8 sps:$4 sm:$0xff]  }
  0xf0   :  { %2026 = vmatpush1.bf16.msra.mxu1 %v3155_v58  ;;  %v3239_v58 = vld [vmem:[#allocation5 + $0x370] ss:$8 sps:$4 sm:$0xff]  }
  0xf1   :  { %2190 = vmatpush1.bf16.msra.mxu0 %v3158_v59  ;;  %2027 = vmatprep.subr.bf16.mxu1 %v3163_v60  ;;  %v3242_v59 = vld [vmem:[#allocation5 + $0x770] ss:$8 sps:$4 sm:$0xff]   ;;  %v3247_v60 = vld [vmem:[#allocation5 + $0x384] ss:$8 sps:$4 sm:$0xff]  }
  0xf2   :  { %2191 = vmatprep.subr.bf16.mxu0 %v3166_v61  ;;  %v3250_v61 = vld [vmem:[#allocation5 + $0x784] ss:$8 sps:$4 sm:$0xff]  }
  0xf4   :  { %2028 = vmatpush1.bf16.msra.mxu1 %v3161_v62  ;;  %v3245_v62 = vld [vmem:[#allocation5 + $0x380] ss:$8 sps:$4 sm:$0xff]  }
  0xf5   :  { %2192 = vmatpush1.bf16.msra.mxu0 %v3164_v63  ;;  %2029 = vmatprep.subr.bf16.mxu1 %v3169_v0  ;;  %v3248_v63 = vld [vmem:[#allocation5 + $0x780] ss:$8 sps:$4 sm:$0xff]   ;;  %v3253_v0 = vld [vmem:[#allocation5 + $0x394] ss:$8 sps:$4 sm:$0xff]  }
  0xf6   :  { %2193 = vmatprep.subr.bf16.mxu0 %v3172_v1  ;;  %v3256_v1 = vld [vmem:[#allocation5 + $0x794] ss:$8 sps:$4 sm:$0xff]  }
  0xf8   :  { %2030 = vmatpush1.bf16.msra.mxu1 %v3167_v2  ;;  %v3251_v2 = vld [vmem:[#allocation5 + $0x390] ss:$8 sps:$4 sm:$0xff]  }
  0xf9   :  { %2194 = vmatpush1.bf16.msra.mxu0 %v3170_v3  ;;  %2031 = vmatprep.subr.bf16.mxu1 %v3175_v4  ;;  %v3254_v3 = vld [vmem:[#allocation5 + $0x790] ss:$8 sps:$4 sm:$0xff]   ;;  %v3259_v4 = vld [vmem:[#allocation5 + $0x3a4] ss:$8 sps:$4 sm:$0xff]  }
  0xfa   :  { %2195 = vmatprep.subr.bf16.mxu0 %v3178_v5  ;;  %v3262_v5 = vld [vmem:[#allocation5 + $0x7a4] ss:$8 sps:$4 sm:$0xff]  }
  0xfc   :  { %2032 = vmatpush1.bf16.msra.mxu1 %v3173_v6  ;;  %v3257_v6 = vld [vmem:[#allocation5 + $0x3a0] ss:$8 sps:$4 sm:$0xff]  }
  0xfd   :  { %2196 = vmatpush1.bf16.msra.mxu0 %v3176_v7  ;;  %2033 = vmatprep.subr.bf16.mxu1 %v3181_v8  ;;  %v3260_v7 = vld [vmem:[#allocation5 + $0x7a0] ss:$8 sps:$4 sm:$0xff]   ;;  %v3265_v8 = vld [vmem:[#allocation5 + $0x3b4] ss:$8 sps:$4 sm:$0xff]  }
  0xfe   :  { %2197 = vmatprep.subr.bf16.mxu0 %v3184_v9  ;;  %v3268_v9 = vld [vmem:[#allocation5 + $0x7b4] ss:$8 sps:$4 sm:$0xff]  }
 0x100   :  { %2034 = vmatpush1.bf16.msra.mxu1 %v3179_v10  ;;  %v3263_v10 = vld [vmem:[#allocation5 + $0x3b0] ss:$8 sps:$4 sm:$0xff]  }
 0x101   :  { %2198 = vmatpush1.bf16.msra.mxu0 %v3182_v11  ;;  %2035 = vmatprep.subr.bf16.mxu1 %v3187_v12  ;;  %v3266_v11 = vld [vmem:[#allocation5 + $0x7b0] ss:$8 sps:$4 sm:$0xff]   ;;  %v3271_v12 = vld [vmem:[#allocation5 + $0x3c4] ss:$8 sps:$4 sm:$0xff]  }
 0x102   :  { %2199 = vmatprep.subr.bf16.mxu0 %v3190_v13  ;;  %v3274_v13 = vld [vmem:[#allocation5 + $0x7c4] ss:$8 sps:$4 sm:$0xff]  }
 0x104   :  { %2036 = vmatpush1.bf16.msra.mxu1 %v3185_v14  ;;  %v3269_v14 = vld [vmem:[#allocation5 + $0x3c0] ss:$8 sps:$4 sm:$0xff]  }
 0x105   :  { %2200 = vmatpush1.bf16.msra.mxu0 %v3188_v15  ;;  %2037 = vmatprep.subr.bf16.mxu1 %v3193_v16  ;;  %v3272_v15 = vld [vmem:[#allocation5 + $0x7c0] ss:$8 sps:$4 sm:$0xff]   ;;  %v3277_v16 = vld [vmem:[#allocation5 + $0x3d4] ss:$8 sps:$4 sm:$0xff]  }
 0x106   :  { %2201 = vmatprep.subr.bf16.mxu0 %v3196_v17  ;;  %v3280_v17 = vld [vmem:[#allocation5 + $0x7d4] ss:$8 sps:$4 sm:$0xff]  }
 0x108   :  { %2038 = vmatpush1.bf16.msra.mxu1 %v3191_v18  ;;  %v3275_v18 = vld [vmem:[#allocation5 + $0x3d0] ss:$8 sps:$4 sm:$0xff]  }
 0x109   :  { %2202 = vmatpush1.bf16.msra.mxu0 %v3194_v19  ;;  %2048 = vmatprep.subr.bf16.mxu1 %v3199_v20  ;;  %v3278_v19 = vld [vmem:[#allocation5 + $0x7d0] ss:$8 sps:$4 sm:$0xff]   ;;  %v3283_v20 = vld [vmem:[#allocation5 + $0x3e4] ss:$8 sps:$4 sm:$0xff]  }
 0x10a   :  { %2212 = vmatprep.subr.bf16.mxu0 %v3202_v23  ;;  %v3284_v23 = vld [vmem:[#allocation5 + $0x7e0] ss:$8 sps:$4 sm:$0xff]  }
 0x10b   :  { %2040 = vmatmul.mubr.bf16.vlgmr.msra.gmra.mrb[0].mxu1 %v93_v26  ;;  %v3287_v26 = vld [vmem:[#allocation5 + $0x3f0] ss:$8 sps:$4 sm:$0xff]  }
 0x10c   :  { %2204 = vmatmul.mubr.bf16.vlgmr.msra.gmra.mrb[0].mxu0 %v101_v27  ;;  %2049 = vmatpush1.bf16.msra.mxu1 %v3197_v24  ;;  %v3289_v24 = vld [vmem:[#allocation5 + $0x3f4] ss:$8 sps:$4 sm:$0xff]   ;;  %v3290_v27 = vld [vmem:[#allocation5 + $0x7f0] ss:$8 sps:$4 sm:$0xff]  }
 0x10d   :  { %2213 = vmatpush1.bf16.msra.mxu0 %v3200_v25  ;;  %2050 = vmatprep.subr.bf16.mxu1 %v3205_v30  ;;  %v3292_v25 = vld [vmem:[#allocation5 + $0x7f4] ss:$8 sps:$4 sm:$0xff]   ;;  %v3295_v30 = vld [vmem:[#allocation5 + $0x804] ss:$8 sps:$4 sm:$0xff]  }
 0x10e   :  { %2214 = vmatprep.subr.bf16.mxu0 %v3208_v31  ;;  %2080 = vmatprep.mubr.bf16.mxu1 %v96_v32  ;;  %v3325_v31 = vld [vmem:[#allocation5 + $0x904] ss:$8 sps:$4 sm:$0xff]   ;;  %v95_v32 = vpack.c.bf16 %v76_v28, %v76_v28 }
 0x10f   :  { %2244 = vmatprep.mubr.bf16.mxu0 %v104_v33  ;;  %v103_v33 = vpack.c.bf16 %v84_v29, %v84_v29 }
 0x110   :  { %2051 = vmatpush1.bf16.msra.mxu1 %v3203_v34  ;;  %v87_v34 = vld [vmem:[#allocation2 + $0x88] sm:$0xff] }
 0x111   :  { %2215 = vmatpush1.bf16.msra.mxu0 %v3206_v35  ;;  %2052 = vmatprep.subr.bf16.mxu1 %v3211_v36  ;;  %v3293_v35 = vld [vmem:[#allocation5 + $0x800] ss:$8 sps:$4 sm:$0xff]  }
 0x112   :  { %2216 = vmatprep.subr.bf16.mxu0 %v3214_v37  ;;  %v3323_v36 = vld [vmem:[#allocation5 + $0x900] ss:$8 sps:$4 sm:$0xff]   ;;  %v3298_v37 = vld [vmem:[#allocation5 + $0x814] ss:$8 sps:$4 sm:$0xff]  }
 0x114   :  { %2053 = vmatpush1.bf16.msra.mxu1 %v3209_v38  ;;  %v3331_v38 = vld [vmem:[#allocation5 + $0x914] ss:$8 sps:$4 sm:$0xff]  }
 0x115   :  { %2217 = vmatpush1.bf16.msra.mxu0 %v3212_v39  ;;  %2054 = vmatprep.subr.bf16.mxu1 %v3217_v40  ;;  %v106_v39 = vpack.c.bf16 %v87_v34, %v87_v34  ;;  %v3296_v40 = vld [vmem:[#allocation5 + $0x810] ss:$8 sps:$4 sm:$0xff]  }
 0x116   :  { %2218 = vmatprep.subr.bf16.mxu0 %v3220_v41  ;;  %v3329_v41 = vld [vmem:[#allocation5 + $0x910] ss:$8 sps:$4 sm:$0xff]  }
 0x118   :  { %2055 = vmatpush1.bf16.msra.mxu1 %v3215_v42  ;;  %v3301_v42 = vld [vmem:[#allocation5 + $0x824] ss:$8 sps:$4 sm:$0xff]  }
 0x119   :  { %2219 = vmatpush1.bf16.msra.mxu0 %v3218_v43  ;;  %2056 = vmatprep.subr.bf16.mxu1 %v3223_v44  ;;  %v3337_v43 = vld [vmem:[#allocation5 + $0x924] ss:$8 sps:$4 sm:$0xff]   ;;  %v3488_v44 = vmov 0  }
 0x11a   :  { %2220 = vmatprep.subr.bf16.mxu0 %v3226_v45  ;;  %v3299_v45 = vld [vmem:[#allocation5 + $0x820] ss:$8 sps:$4 sm:$0xff]  }
 0x11c   :  { %2057 = vmatpush1.bf16.msra.mxu1 %v3221_v46  ;;  %v3335_v46 = vld [vmem:[#allocation5 + $0x920] ss:$8 sps:$4 sm:$0xff]  }
 0x11d   :  { %2221 = vmatpush1.bf16.msra.mxu0 %v3224_v47  ;;  %2058 = vmatprep.subr.bf16.mxu1 %v3229_v48  ;;  %v3304_v47 = vld [vmem:[#allocation5 + $0x834] ss:$8 sps:$4 sm:$0xff]  }
 0x11e   :  { %2222 = vmatprep.subr.bf16.mxu0 %v3232_v49  ;;  %v3343_v48 = vld [vmem:[#allocation5 + $0x934] ss:$8 sps:$4 sm:$0xff]   ;;  %v3302_v49 = vld [vmem:[#allocation5 + $0x830] ss:$8 sps:$4 sm:$0xff]  }
 0x120   :  { %2059 = vmatpush1.bf16.msra.mxu1 %v3227_v50  ;;  %v3341_v50 = vld [vmem:[#allocation5 + $0x930] ss:$8 sps:$4 sm:$0xff]  }
 0x121   :  { %2223 = vmatpush1.bf16.msra.mxu0 %v3230_v51  ;;  %2060 = vmatprep.subr.bf16.mxu1 %v3235_v52  ;;  %v3307_v51 = vld [vmem:[#allocation5 + $0x844] ss:$8 sps:$4 sm:$0xff]  }
 0x122   :  { %2224 = vmatprep.subr.bf16.mxu0 %v3238_v53  ;;  %v3349_v52 = vld [vmem:[#allocation5 + $0x944] ss:$8 sps:$4 sm:$0xff]   ;;  %v406_v53 = vld [vmem:[#allocation5 + $0x950] sm:$0xff] }
 0x124   :  { %2061 = vmatpush1.bf16.msra.mxu1 %v3233_v54  ;;  %v3305_v54 = vld [vmem:[#allocation5 + $0x840] ss:$8 sps:$4 sm:$0xff]  }
 0x125   :  { %2225 = vmatpush1.bf16.msra.mxu0 %v3236_v55  ;;  %2062 = vmatprep.subr.bf16.mxu1 %v3241_v56  ;;  %v3347_v55 = vld [vmem:[#allocation5 + $0x940] ss:$8 sps:$4 sm:$0xff]   ;;  %v3310_v56 = vld [vmem:[#allocation5 + $0x854] ss:$8 sps:$4 sm:$0xff]  }
 0x126   :  { %2226 = vmatprep.subr.bf16.mxu0 %v3244_v57  ;;  %v2798_v57 = vcombine.high %v406_v53, %v406_v53 }
 0x128   :  { %2063 = vmatpush1.bf16.msra.mxu1 %v3239_v58  ;;  %v2797_v58 = vcombine.low %v406_v53, %v406_v53 }
 0x129   :  { %2227 = vmatpush1.bf16.msra.mxu0 %v3242_v59  ;;  %2064 = vmatprep.subr.bf16.mxu1 %v3247_v60  ;;  %v3308_v59 = vld [vmem:[#allocation5 + $0x850] ss:$8 sps:$4 sm:$0xff]  }
 0x12a   :  { %2228 = vmatprep.subr.bf16.mxu0 %v3250_v61  ;;  %v88_v60 = vld [vmem:[#allocation2 + $0x90] sm:$0xff]  ;;  %v3313_v61 = vld [vmem:[#allocation5 + $0x864] ss:$8 sps:$4 sm:$0xff]  }
 0x12c   :  { %2065 = vmatpush1.bf16.msra.mxu1 %v3245_v62  ;;  %v1920_v62 = vsel %vm1918_vm0, %v2797_v58, 0 }
 0x12d   :  { %2229 = vmatpush1.bf16.msra.mxu0 %v3248_v63  ;;  %2066 = vmatprep.subr.bf16.mxu1 %v3253_v0  ;;  %v107_v63 = vpack.c.bf16 %v88_v60, %v88_v60  ;;  %v3311_v0 = vld [vmem:[#allocation5 + $0x860] ss:$8 sps:$4 sm:$0xff]  }
 0x12e   :  { %2230 = vmatprep.subr.bf16.mxu0 %v3256_v1  ;;  %v3316_v1 = vld [vmem:[#allocation5 + $0x874] ss:$8 sps:$4 sm:$0xff]  }
 0x12f   :  { %v2363_v60 = vld [vmem:[#allocation8 + $0xc0] sm:$0xff] }
 0x130   :  { %2067 = vmatpush1.bf16.msra.mxu1 %v3251_v2  ;;  %v3314_v2 = vld [vmem:[#allocation5 + $0x870] ss:$8 sps:$4 sm:$0xff]  }
 0x131   :  { %2231 = vmatpush1.bf16.msra.mxu0 %v3254_v3  ;;  %2068 = vmatprep.subr.bf16.mxu1 %v3259_v4  ;;  %v3319_v3 = vld [vmem:[#allocation5 + $0x884] ss:$8 sps:$4 sm:$0xff]   ;;  %v3317_v4 = vld [vmem:[#allocation5 + $0x880] ss:$8 sps:$4 sm:$0xff]  }
 0x132   :  { %2232 = vmatprep.subr.bf16.mxu0 %v3262_v5  ;;  %v3322_v5 = vld [vmem:[#allocation5 + $0x894] ss:$8 sps:$4 sm:$0xff]  }
 0x134   :  { %2069 = vmatpush1.bf16.msra.mxu1 %v3257_v6  ;;  %v3320_v6 = vld [vmem:[#allocation5 + $0x890] ss:$8 sps:$4 sm:$0xff]  }
 0x135   :  { %2233 = vmatpush1.bf16.msra.mxu0 %v3260_v7  ;;  %2070 = vmatprep.subr.bf16.mxu1 %v3265_v8  ;;  %v3328_v7 = vld [vmem:[#allocation5 + $0x8a4] ss:$8 sps:$4 sm:$0xff]   ;;  %v3326_v8 = vld [vmem:[#allocation5 + $0x8a0] ss:$8 sps:$4 sm:$0xff]  }
 0x136   :  { %2234 = vmatprep.subr.bf16.mxu0 %v3268_v9  ;;  %v3334_v9 = vld [vmem:[#allocation5 + $0x8b4] ss:$8 sps:$4 sm:$0xff]  }
 0x138   :  { %2071 = vmatpush1.bf16.msra.mxu1 %v3263_v10  ;;  %v3332_v10 = vld [vmem:[#allocation5 + $0x8b0] ss:$8 sps:$4 sm:$0xff]  }
 0x139   :  { %2235 = vmatpush1.bf16.msra.mxu0 %v3266_v11  ;;  %2072 = vmatprep.subr.bf16.mxu1 %v3271_v12  ;;  %v3340_v11 = vld [vmem:[#allocation5 + $0x8c4] ss:$8 sps:$4 sm:$0xff]   ;;  %v3338_v12 = vld [vmem:[#allocation5 + $0x8c0] ss:$8 sps:$4 sm:$0xff]  }
 0x13a   :  { %2236 = vmatprep.subr.bf16.mxu0 %v3274_v13  ;;  %v3346_v13 = vld [vmem:[#allocation5 + $0x8d4] ss:$8 sps:$4 sm:$0xff]  }
 0x13c   :  { %2073 = vmatpush1.bf16.msra.mxu1 %v3269_v14  ;;  %v3344_v14 = vld [vmem:[#allocation5 + $0x8d0] ss:$8 sps:$4 sm:$0xff]  }
 0x13d   :  { %2237 = vmatpush1.bf16.msra.mxu0 %v3272_v15  ;;  %2074 = vmatprep.subr.bf16.mxu1 %v3277_v16  ;;  %v3352_v15 = vld [vmem:[#allocation5 + $0x8e4] ss:$8 sps:$4 sm:$0xff]   ;;  %v3350_v16 = vld [vmem:[#allocation5 + $0x8e0] ss:$8 sps:$4 sm:$0xff]  }
 0x13e   :  { %2238 = vmatprep.subr.bf16.mxu0 %v3280_v17  ;;  %v3356_v17 = vld [vmem:[#allocation5 + $0x8f4] ss:$8 sps:$4 sm:$0xff]  }
 0x140   :  { %2075 = vmatpush1.bf16.msra.mxu1 %v3275_v18  ;;  %v3354_v18 = vld [vmem:[#allocation5 + $0x8f0] ss:$8 sps:$4 sm:$0xff]  }
 0x141   :  { %2239 = vmatpush1.bf16.msra.mxu0 %v3278_v19  ;;  %2076 = vmatprep.subr.bf16.mxu1 %v3283_v20  ;;  %v86_v19 = vld [vmem:[#allocation2 + $0x80] sm:$0xff] }
 0x142   :  { %2240 = vmatprep.subr.bf16.mxu0 %v3286_v21  ;;  %v105_v20 = vpack.c.bf16 %v86_v19, %v86_v19  ;;  %v2340_v21 = vld [vmem:[#allocation8 + $0x8] sm:$0xff] }
 0x144   :  { %2077 = vmatpush1.bf16.msra.mxu1 %v3281_v22  ;;  %v2342_v22 = vld [vmem:[#allocation8 + $0x18] sm:$0xff] }
 0x145   :  { %2241 = vmatpush1.bf16.msra.mxu0 %v3284_v23  ;;  %2078 = vmatprep.subr.bf16.mxu1 %v3289_v24  ;;  %v2339_v23 = vld [vmem:[#allocation8] sm:$0xff]  ;;  %v2801_v24 = vpack.c.bf16 %v2342_v22, %v2340_v21  ;;  %v2381_v21 = vld [vmem:[#allocation8 + $0x150] sm:$0xff]  ;;  %v2384_v22 = vld [vmem:[#allocation8 + $0x168] sm:$0xff] }
 0x146   :  { %2242 = vmatprep.subr.bf16.mxu0 %v3292_v25  ;;  %v2341_v25 = vld [vmem:[#allocation8 + $0x10] sm:$0xff] }
 0x147   :  { %v2803_v28 = vpack.c.bf16 %v2341_v25, %v2339_v23  ;;  %v2386_v23 = vld [vmem:[#allocation8 + $0x178] sm:$0xff] }
 0x148   :  { %2079 = vmatpush1.bf16.msra.mxu1 %v3287_v26  ;;  %v2344_v26 = vld [vmem:[#allocation8 + $0x28] sm:$0xff]  ;;  %v2845_v25 = vpack.c.bf16 %v2386_v23, %v2384_v22 }
 0x149   :  { %2243 = vmatpush1.bf16.msra.mxu0 %v3290_v27  ;;  %2294 = vmatprep.subr.bf16.mxu1 %v3325_v31  ;;  %v2346_v27 = vld [vmem:[#allocation8 + $0x38] sm:$0xff]  ;;  %v2345_v31 = vld [vmem:[#allocation8 + $0x30] sm:$0xff] }
 0x14a   :  { %2253 = vmatprep.subr.bf16.mxu0 %v3295_v30  ;;  %v2805_v29 = vpack.c.bf16 %v2346_v27, %v2344_v26  ;;  %v2343_v30 = vld [vmem:[#allocation8 + $0x20] sm:$0xff]  ;;  %v2385_v27 = vld [vmem:[#allocation8 + $0x170] sm:$0xff] }
 0x14b   :  { %2081 = vmatmul.mubr.bf16.vlgmr.msra.gmra.mrb[0].mxu1 %v95_v32  ;;  %v2348_v32 = vld [vmem:[#allocation8 + $0x48] sm:$0xff]  ;;  %v2807_v34 = vpack.c.bf16 %v2345_v31, %v2343_v30  ;;  %v2383_v26 = vld [vmem:[#allocation8 + $0x160] sm:$0xff] }
 0x14c   :  { %2245 = vmatmul.mubr.bf16.vlgmr.msra.gmra.mrb[0].mxu0 %v103_v33  ;;  %2295 = vmatpush1.bf16.msra.mxu1 %v3323_v36  ;;  %v2350_v33 = vld [vmem:[#allocation8 + $0x58] sm:$0xff]  ;;  %v2347_v36 = vld [vmem:[#allocation8 + $0x40] sm:$0xff]  ;;  %v2847_v30 = vpack.c.bf16 %v2385_v27, %v2383_v26 }
 0x14d   :  { %2254 = vmatpush1.bf16.msra.mxu0 %v3293_v35  ;;  %2296 = vmatprep.subr.bf16.mxu1 %v3331_v38  ;;  %v2809_v35 = vpack.c.bf16 %v2350_v33, %v2348_v32  ;;  %v2352_v38 = vld [vmem:[#allocation8 + $0x68] sm:$0xff]  ;;  %v2387_v32 = vld [vmem:[#allocation8 + $0x180] sm:$0xff]  ;;  %v2389_v33 = vld [vmem:[#allocation8 + $0x190] sm:$0xff] }
 0x14e   :  { %2255 = vmatprep.subr.bf16.mxu0 %v3298_v37  ;;  %2326 = vmatprep.mubr.bf16.mxu1 %v3488_v44  ;;  %v2349_v37 = vld [vmem:[#allocation8 + $0x50] sm:$0xff]  ;;  %v2356_v44 = vld [vmem:[#allocation8 + $0x88] sm:$0xff] }
 0x14f   :  { %2285 = vmatprep.mubr.bf16.mxu0 %v106_v39  ;;  %v2354_v39 = vld [vmem:[#allocation8 + $0x78] sm:$0xff] }
 0x150   :  { %2297 = vmatpush1.bf16.msra.mxu1 %v3329_v41  ;;  %v2813_v41 = vpack.c.bf16 %v2354_v39, %v2352_v38  ;;  %v2391_v38 = vld [vmem:[#allocation8 + $0x1a0] sm:$0xff]  ;;  %v2393_v39 = vld [vmem:[#allocation8 + $0x1b0] sm:$0xff] }
 0x151   :  { %2256 = vmatpush1.bf16.msra.mxu0 %v3296_v40  ;;  %2298 = vmatprep.subr.bf16.mxu1 %v3337_v43  ;;  %v2811_v40 = vpack.c.bf16 %v2349_v37, %v2347_v36  ;;  %v2353_v43 = vld [vmem:[#allocation8 + $0x70] sm:$0xff]  ;;  %v2851_v36 = vpack.c.bf16 %v2389_v33, %v2387_v32 }
 0x152   :  { %2257 = vmatprep.subr.bf16.mxu0 %v3301_v42  ;;  %v2351_v42 = vld [vmem:[#allocation8 + $0x60] sm:$0xff] }
 0x154   :  { %2299 = vmatpush1.bf16.msra.mxu1 %v3335_v46  ;;  %v2815_v46 = vpack.c.bf16 %v2353_v43, %v2351_v42  ;;  %v2398_v42 = vld [vmem:[#allocation8 + $0x1d8] sm:$0xff] }
 0x155   :  { %2258 = vmatpush1.bf16.msra.mxu0 %v3299_v45  ;;  %2300 = vmatprep.subr.bf16.mxu1 %v3343_v48  ;;  %v2358_v45 = vld [vmem:[#allocation8 + $0x98] sm:$0xff]  ;;  %v2355_v48 = vld [vmem:[#allocation8 + $0x80] sm:$0xff] }
 0x156   :  { %2259 = vmatprep.subr.bf16.mxu0 %v3304_v47  ;;  %v2817_v47 = vpack.c.bf16 %v2358_v45, %v2356_v44  ;;  %v2395_v44 = vld [vmem:[#allocation8 + $0x1c0] sm:$0xff]  ;;  %v2397_v45 = vld [vmem:[#allocation8 + $0x1d0] sm:$0xff] }
 0x158   :  { %2301 = vmatpush1.bf16.msra.mxu1 %v3341_v50  ;;  %v2360_v50 = vld [vmem:[#allocation8 + $0xa8] sm:$0xff] }
 0x159   :  { %2260 = vmatpush1.bf16.msra.mxu0 %v3302_v49  ;;  %2302 = vmatprep.subr.bf16.mxu1 %v3349_v52  ;;  %v2357_v49 = vld [vmem:[#allocation8 + $0x90] sm:$0xff] }
 0x15a   :  { %2261 = vmatprep.subr.bf16.mxu0 %v3307_v51  ;;  %v2362_v51 = vld [vmem:[#allocation8 + $0xb8] sm:$0xff]  ;;  %v2819_v52 = vpack.c.bf16 %v2357_v49, %v2355_v48 }
 0x15b   :  { %v2821_v53 = vpack.c.bf16 %v2362_v51, %v2360_v50  ;;  %v2402_v48 = vld [vmem:[#allocation8 + $0x1f8] sm:$0xff]  ;;  %v2399_v50 = vld [vmem:[#allocation8 + $0x1e0] sm:$0xff]  ;;  %v2401_v51 = vld [vmem:[#allocation8 + $0x1f0] sm:$0xff] }
 0x15c   :  { %2303 = vmatpush1.bf16.msra.mxu1 %v3347_v55  ;;  %v2361_v55 = vld [vmem:[#allocation8 + $0xb0] sm:$0xff] }
 0x15d   :  { %2262 = vmatpush1.bf16.msra.mxu0 %v3305_v54  ;;  %2799 = vmatprep.subr.msk.bf16.mxu1 %vm1918_vm0, %v2798_v57  ;;  %v2359_v54 = vld [vmem:[#allocation8 + $0xa0] sm:$0xff]  ;;  %v2366_v57 = vld [vmem:[#allocation8 + $0xd8] sm:$0xff] }
 0x15e   :  { %2263 = vmatprep.subr.bf16.mxu0 %v3310_v56  ;;  %v2364_v56 = vld [vmem:[#allocation8 + $0xc8] sm:$0xff]  ;;  %v2823_v58 = vpack.c.bf16 %v2361_v55, %v2359_v54 }
 0x160   :  { %2305 = vmatpush1.bf16.msra.mxu1 %v1920_v62  ;;  %v2368_v62 = vld [vmem:[#allocation8 + $0xe8] sm:$0xff] }
 0x161   :  { %2264 = vmatpush1.bf16.msra.mxu0 %v3308_v59  ;;  %2802 = vmatprep.subr.bf16.mxu1 %v2801_v24  ;;  %v2825_v59 = vpack.c.bf16 %v2366_v57, %v2364_v56 }
 0x162   :  { %2265 = vmatprep.subr.bf16.mxu0 %v3313_v61  ;;  %v2365_v61 = vld [vmem:[#allocation8 + $0xd0] sm:$0xff] }
 0x163   :  { %2800 = vmatmul.mubr.msk.bf16.vlgmr.msra.gmra.mrb[4].mxu1 %vm1914_vm1, %v107_v63  ;;  %v2370_v63 = vld [vmem:[#allocation8 + $0xf8] sm:$0xff] }
 0x164   :  { %2804 = vmatpush1.bf16.msra.mxu1 %v2803_v28  ;;  %v2388_v28 = vld [vmem:[#allocation8 + $0x188] sm:$0xff] }
 0x165   :  { %2266 = vmatpush1.bf16.msra.mxu0 %v3311_v0  ;;  %2806 = vmatprep.subr.bf16.mxu1 %v2805_v29  ;;  %v2827_v0 = vpack.c.bf16 %v2365_v61, %v2363_v60  ;;  %v2390_v29 = vld [vmem:[#allocation8 + $0x198] sm:$0xff]  ;;  %v409_v61 = vlaneseq }
 0x166   :  { %2267 = vmatprep.subr.bf16.mxu0 %v3316_v1  ;;  %v2829_v1 = vpack.c.bf16 %v2370_v63, %v2368_v62  ;;  %v2849_v31 = vpack.c.bf16 %v2390_v29, %v2388_v28 }
 0x167   :  { %v410_v62 = vshrl.u32 %v409_v61, 7 }
 0x168   :  { %2808 = vmatpush1.bf16.msra.mxu1 %v2807_v34  ;;  %v2392_v34 = vld [vmem:[#allocation8 + $0x1a8] sm:$0xff] }
 0x169   :  { %2268 = vmatpush1.bf16.msra.mxu0 %v3314_v2  ;;  %2810 = vmatprep.subr.bf16.mxu1 %v2809_v35  ;;  %v2367_v2 = vld [vmem:[#allocation8 + $0xe0] sm:$0xff]  ;;  %v2394_v35 = vld [vmem:[#allocation8 + $0x1b8] sm:$0xff]  ;;  %v411_v63 = vsub.s32 0, %v410_v62 }
 0x16a   :  { %2269 = vmatprep.subr.bf16.mxu0 %v3319_v3  ;;  %v2369_v3 = vld [vmem:[#allocation8 + $0xf0] sm:$0xff]  ;;  %v2853_v37 = vpack.c.bf16 %v2394_v35, %v2392_v34 }
 0x16c   :  { %2812 = vmatpush1.bf16.msra.mxu1 %v2811_v40  ;;  %v2855_v40 = vpack.c.bf16 %v2393_v39, %v2391_v38 }
 0x16d   :  { %2270 = vmatpush1.bf16.msra.mxu0 %v3317_v4  ;;  %2814 = vmatprep.subr.bf16.mxu1 %v2813_v41  ;;  %v2372_v4 = vld [vmem:[#allocation8 + $0x108] sm:$0xff] }
 0x16e   :  { %2271 = vmatprep.subr.bf16.mxu0 %v3322_v5  ;;  %v2374_v5 = vld [vmem:[#allocation8 + $0x118] sm:$0xff]  ;;  %v2396_v41 = vld [vmem:[#allocation8 + $0x1c8] sm:$0xff] }
 0x16f   :  { %v2857_v43 = vpack.c.bf16 %v2398_v42, %v2396_v41 }
 0x170   :  { %2816 = vmatpush1.bf16.msra.mxu1 %v2815_v46  ;;  %v2859_v46 = vpack.c.bf16 %v2397_v45, %v2395_v44 }
 0x171   :  { %2272 = vmatpush1.bf16.msra.mxu0 %v3320_v6  ;;  %2818 = vmatprep.subr.bf16.mxu1 %v2817_v47  ;;  %v2831_v6 = vpack.c.bf16 %v2369_v3, %v2367_v2  ;;  %v2400_v47 = vld [vmem:[#allocation8 + $0x1e8] sm:$0xff] }
 0x172   :  { %2273 = vmatprep.subr.bf16.mxu0 %v3328_v7  ;;  %v2833_v7 = vpack.c.bf16 %v2374_v5, %v2372_v4  ;;  %v2861_v49 = vpack.c.bf16 %v2402_v48, %v2400_v47 }
 0x174   :  { %2820 = vmatpush1.bf16.msra.mxu1 %v2819_v52  ;;  %v2863_v52 = vpack.c.bf16 %v2401_v51, %v2399_v50 }
 0x175   :  { %2274 = vmatpush1.bf16.msra.mxu0 %v3326_v8  ;;  %2822 = vmatprep.subr.bf16.mxu1 %v2821_v53  ;;  %v2371_v8 = vld [vmem:[#allocation8 + $0x100] sm:$0xff] }
 0x176   :  { %2275 = vmatprep.subr.bf16.mxu0 %v3334_v9  ;;  %v2373_v9 = vld [vmem:[#allocation8 + $0x110] sm:$0xff] }
 0x178   :  { %2824 = vmatpush1.bf16.msra.mxu1 %v2823_v58 }
 0x179   :  { %2276 = vmatpush1.bf16.msra.mxu0 %v3332_v10  ;;  %2826 = vmatprep.subr.bf16.mxu1 %v2825_v59  ;;  %v2376_v10 = vld [vmem:[#allocation8 + $0x128] sm:$0xff] }
 0x17a   :  { %2277 = vmatprep.subr.bf16.mxu0 %v3340_v11  ;;  %v2378_v11 = vld [vmem:[#allocation8 + $0x138] sm:$0xff] }
 0x17c   :  { %2828 = vmatpush1.bf16.msra.mxu1 %v2827_v0  ;;  %v407_v0 = vld [vmem:[#allocation7] sm:$0x3] }
 0x17d   :  { %2278 = vmatpush1.bf16.msra.mxu0 %v3338_v12  ;;  %2830 = vmatprep.subr.bf16.mxu1 %v2829_v1  ;;  %v2835_v12 = vpack.c.bf16 %v2373_v9, %v2371_v8  ;;  %v415_v1 = vsub.s32 1, %v410_v62  ;;  %v412_v2 = vrot.slane %v407_v0, %v411_v63 }
 0x17e   :  { %2279 = vmatprep.subr.bf16.mxu0 %v3346_v13  ;;  %v2837_v13 = vpack.c.bf16 %v2378_v11, %v2376_v10 }
 0x17f   :  { %v416_v3 = vrot.slane %v407_v0, %v415_v1 }
 0x180   :  { %2832 = vmatpush1.bf16.msra.mxu1 %v2831_v6 }
 0x181   :  { %2280 = vmatpush1.bf16.msra.mxu0 %v3344_v14  ;;  %2834 = vmatprep.subr.bf16.mxu1 %v2833_v7  ;;  %v2375_v14 = vld [vmem:[#allocation8 + $0x120] sm:$0xff] }
 0x182   :  { %2281 = vmatprep.subr.bf16.mxu0 %v3352_v15  ;;  %v2377_v15 = vld [vmem:[#allocation8 + $0x130] sm:$0xff] }
 0x184   :  { %2836 = vmatpush1.bf16.msra.mxu1 %v2835_v12 }
 0x185   :  { %2282 = vmatpush1.bf16.msra.mxu0 %v3350_v16  ;;  %v2380_v16 = vld [vmem:[#allocation8 + $0x148] sm:$0xff]  ;;  %2838 = vmatprep.subr.bf16.mxu1 %v2837_v13 }
 0x186   :  { %2283 = vmatprep.subr.bf16.mxu0 %v3356_v17  ;;  %v2382_v17 = vld [vmem:[#allocation8 + $0x158] sm:$0xff] }
 0x187   :  { %v2841_v19 = vpack.c.bf16 %v2382_v17, %v2380_v16 }
 0x189   :  { %2284 = vmatpush1.bf16.msra.mxu0 %v3354_v18  ;;  %v2839_v18 = vpack.c.bf16 %v2377_v15, %v2375_v14 }
 0x18b   :  { %2840 = vmatpush1.bf16.msra.mxu1 %v2839_v18 }
 0x18c   :  { %2286 = vmatmul.mubr.bf16.vlgmr.msra.gmra.mrb[0].mxu0 %v105_v20  ;;  %v2379_v20 = vld [vmem:[#allocation8 + $0x140] sm:$0xff]  ;;  %2842 = vmatprep.subr.bf16.mxu1 %v2841_v19 }
 0x18d   :  { %v2843_v24 = vpack.c.bf16 %v2381_v21, %v2379_v20 }
 0x18f   :  { %2844 = vmatpush1.bf16.msra.mxu1 %v2843_v24 }
 0x190   :  { %2846 = vmatprep.subr.bf16.mxu1 %v2845_v25 }
 0x193   :  { %2848 = vmatpush1.bf16.msra.mxu1 %v2847_v30 }
 0x194   :  { %2850 = vmatprep.subr.bf16.mxu1 %v2849_v31 }
 0x197   :  { %2852 = vmatpush1.bf16.msra.mxu1 %v2851_v36 }
 0x198   :  { %2854 = vmatprep.subr.bf16.mxu1 %v2853_v37 }
 0x19b   :  { %2856 = vmatpush1.bf16.msra.mxu1 %v2855_v40 }
 0x19c   :  { %2858 = vmatprep.subr.bf16.mxu1 %v2857_v43 }
 0x19f   :  { %2860 = vmatpush1.bf16.msra.mxu1 %v2859_v46 }
 0x1a0   :  { %2862 = vmatprep.subr.bf16.mxu1 %v2861_v49 }
 0x1a3   :  { %2864 = vmatpush1.bf16.msra.mxu1 %v2863_v52 }
 0x21e   :  { %v2082_v53 = vpop.f32.mrb[0].mxu1 }
 0x21f   :  { %v2084_v54 = vpop.f32.mrb[1].mxu1  ;;  %v2865_v4 = vadd.f32 %v2082_v53, %v412_v2 }
 0x220   :  { %v2086_v55 = vpop.f32.mrb[2].mxu1  ;;  %v2868_v5 = vadd.f32 %v2084_v54, %v416_v3 }
 0x221   :  { %v2087_v56 = vpop.f32.mrb[3].mxu1 }
 0x236   :  { %v2328_v57 = vpop.f32.mrb[4].mxu1 }
 0x237   :  { %v2330_v58 = vpop.f32.mrb[5].mxu1 }
 0x238   :  { %v2332_v59 = vpop.f32.mrb[6].mxu1 }
 0x239   :  { %v2333_v60 = vpop.f32.mrb[7].mxu1 }
 0x25f   :  { %v2287_v6 = vpop.f32.mrb[0].mxu0 }
 0x260   :  { %v2866_v7 = vadd.f32 %v2865_v4, %v2287_v6  ;;  %v2289_v8 = vpop.f32.mrb[1].mxu0 }
 0x261   :  { %v2869_v9 = vadd.f32 %v2868_v5, %v2289_v8  ;;  %v2291_v10 = vpop.f32.mrb[2].mxu0 }
 0x262   :  { %v2867_v11 = vadd.f32 %v2866_v7, %v2328_v57  ;;  %v2292_v12 = vpop.f32.mrb[3].mxu0 }
 0x263   :  { %v2870_v13 = vadd.f32 %v2869_v9, %v2330_v58 }
 0x264   :  { %v2335_v14 = vmax.f32 %v2867_v11, 0.0 }
 0x265   :  { %v2336_v15 = vmax.f32 %v2870_v13, 0.0 }
 0x266   :  { %v2337_v17 = vmul.f32 %v2335_v14, %v2335_v14 }
 0x267   :  { %v2338_v16 = vmul.f32 %v2336_v15, %v2336_v15 }
 0x269   :  { %2467 = vmatprep.mubr.f32.mxu1 %v2338_v16 }
 0x26a   :  { %2468 = vmatmul.mubr.f32.vlgmr.msra.gmra.mrb[8].mxu1 %v2337_v17 }
 0x33d   :  { %v2469_v18 = vpop.f32.mrb[8].mxu1 }
 0x33e   :  { %v2474_v19 = vmax.f32 %v2469_v18, 1e-24  ;;  %v2471_v20 = vpop.f32.mrb[9].mxu1 }
 0x33f   :  { %v2475_v21 = vmax.f32 %v2471_v20, 1e-24 }
 0x340   :  { %3358 = vrsqrt.f32 %v2474_v19 }
 0x341   :  { %3360 = vrsqrt.f32 %v2475_v21 }
 0x34a   :  { %v3359_v22 = vpop.eup %3358 }
 0x34b   :  { %v3361_v23 = vpop.eup %3360  ;;  %v2478_v24 = vmul.f32 %v3359_v22, %v2335_v14 }
 0x34c   :  { %v2479_v25 = vmul.f32 %v3361_v23, %v2336_v15 }
 0x34d   :  { %2480 = vst [vmem:[#allocation10] sm:$0xff] %v2478_v24 }
 0x34e   :  { %2481 = vst [vmem:[#allocation10 + $0x8] sm:$0xff] %v2479_v25 }
 0x34f   :  { %3461 = shalt.err (!%p3458_p8)
}
 0x350   :  { %s3462_s15 = scalar_lea.hbm %s3579_s4, 256 }
 0x351   :  { %p3463_p9 = scmp.ne.s32.totalorder %s3579_s4, %s3462_s15  ;;  %p3466_p10 = scmp.lt.u32.totalorder %s3462_s15, %s3579_s4 }
 0x353   :  { %p3468_p11 = pnand %p3466_p10, %p3463_p9 }
 0x355   :  { %3471 = shalt.err (!%p3468_p11)
}
 0x356   :  { %2491 = dma.vmem_to_hbm [thread:$0]  %s2489_s12, 256, %s3579_s4, [#allocation4]  }
 0x357   :  { %3478 = dma.done.wait [#allocation4], 256  }
 0x358   :  { %3479 = vsyncadd [#allocation4], 4294967040 }
 0x359   :  { %2495 = vsyncpa [#allocation3], 1 }
 0x35a   :  { %2496 = vsyncpa [#allocation6], 1 }
 0x35b   :  { %2497 = vsyncpa [#allocation9], 1 }
 0x35c   :  { %2498 = vsyncpa [#allocation4], 1 }

</bundles_post_ra>
